<compile_context>
chip_gen: v5e
topology: v5e:2x2
jax: 0.10.0
libtpu: 0.0.40
codegen_flags: <defaults>
</compile_context>

<pallas_src>
import functools

import jax
import jax.numpy as jnp
import numpy as np
from jax.experimental import pallas as pl
from jax.experimental.pallas import tpu as pltpu


def _round_up(n, m):
    return (n + m - 1) // m * m


def _lut_kernel(lut_ref, x_ref, o_ref, *, dim, g_pad, r_pad, binsize, compute_dtype):
    # lut_ref: (3*r_pad, dim*g_pad), lut_ref[c*r_pad + r, b*g_pad + g] == LUT[c, b, g, r]
    # x_ref:   (1, 3, P) f32   (rows: r, g, b)
    # o_ref:   (1, 3, P) f32
    P = x_ref.shape[-1]
    inv_bin = jnp.float32(1.0 / binsize)

    x = x_ref[0]                                   # (3, P) f32
    s = x * inv_bin
    # Saturate out-of-range inputs (CUDA op would index OOB there; clamping is a
    # no-op for in-range pixels and gives sane edge behaviour otherwise).
    s = jnp.clip(s, 0.0, jnp.float32(dim - 1))
    sr, sg, sb = s[0:1, :], s[1:2, :], s[2:3, :]   # (1, P) each

    def tent(sv, n):
        # Hat function: row floor(sv) gets (1 - frac), row floor(sv)+1 gets frac,
        # all other rows 0.  Identical to the floor/frac formulation for s >= 0.
        q = jax.lax.broadcasted_iota(jnp.int32, (n, P), 0).astype(jnp.float32)
        return jnp.maximum(1.0 - jnp.abs(q - sv), 0.0)

    Wb = tent(sb, dim)       # (dim, P)
    Wg = tent(sg, g_pad)     # (g_pad, P); padded rows are 0 since sv <= dim-1
    Wr = tent(sr, r_pad)     # (r_pad, P)

    # Joint (b, g) one-hot weights: (dim, g_pad, P) -> (dim*g_pad, P).
    # g_pad % 8 == 0, so the reshape is layout-preserving.
    Wgb = (Wb[:, None, :] * Wg[None, :, :]).reshape(dim * g_pad, P)
    Wgb = Wgb.astype(compute_dtype)

    # Single channel-stacked MXU contraction over the (b, g) plane.
    S = jnp.dot(lut_ref[...], Wgb, preferred_element_type=jnp.float32)  # (3*r_pad, P)

    # Per-pixel weighted reduction over r (f32, VPU). r_pad % 8 == 0 -> free reshape.
    S3 = S.reshape(3, r_pad, P)
    o_ref[0] = jnp.sum(S3 * Wr[None, :, :], axis=1)                     # one dense store


def trilinear_lut_apply(lut, x, *, tile=512, use_bf16=True):
    """Apply a (3, dim, dim, dim) LUT to x of shape (B, 3, H, W), values in [0, 1]."""
    B, C, H, W = x.shape
    assert C == 3, "LUT is applied to RGB images"
    dim = lut.shape[-1]
    binsize = 1.000001 / (dim - 1)
    g_pad = _round_up(dim, 8)
    r_pad = _round_up(dim, 8)
    compute_dtype = jnp.bfloat16 if use_bf16 else jnp.float32

    HW = H * W
    # Lane tile: multiple of 128, no larger than this image needs.
    tile = max(128, _round_up(min(tile, _round_up(HW, 128)), 128))
    n_pad = _round_up(HW, tile)

    # NCHW -> (B, 3, H*W): a pure reshape (no transpose / extra HBM round-trip).
    xf = x.reshape(B, 3, HW).astype(jnp.float32)
    if n_pad != HW:
        xf = jnp.pad(xf, ((0, 0), (0, 0), (0, n_pad - HW)))

    # LUT[c, b, g, r] -> lut_flat[c*r_pad + r, b*g_pad + g], zero-padded.
    lut_t = jnp.transpose(lut.astype(jnp.float32), (0, 3, 1, 2))           # (3, r, b, g)
    lut_t = jnp.pad(lut_t, ((0, 0), (0, r_pad - dim), (0, 0), (0, g_pad - dim)))
    lut_flat = lut_t.reshape(3 * r_pad, dim * g_pad).astype(compute_dtype)

    kernel = functools.partial(_lut_kernel, dim=dim, g_pad=g_pad, r_pad=r_pad,
                               binsize=binsize, compute_dtype=compute_dtype)

    out = pl.pallas_call(
        kernel,
        out_shape=jax.ShapeDtypeStruct((B, 3, n_pad), jnp.float32),
        grid_spec=pltpu.PrefetchScalarGridSpec(
            num_scalar_prefetch=0,
            grid=(B, n_pad // tile),
            in_specs=[
                # whole (padded) LUT stays resident in VMEM across the grid
                pl.BlockSpec((3 * r_pad, dim * g_pad), lambda b, i: (0, 0)),
                # one lane-dense pixel tile per step
                pl.BlockSpec((1, 3, tile), lambda b, i: (b, 0, i)),
            ],
            out_specs=pl.BlockSpec((1, 3, tile), lambda b, i: (b, 0, i)),
        ),
        compiler_params=pltpu.CompilerParams(
            dimension_semantics=("parallel", "parallel"),
            vmem_limit_bytes=48 * 1024 * 1024,
        ),
    )(lut_flat, xf)

    if n_pad != HW:
        out = out[:, :, :HW]
    return out.reshape(B, 3, H, W)


class Generator3DLUT_zero:
    """JAX/Pallas port of the PyTorch module (forward only).

    __init__ initializes LUT = zeros(3, dim, dim, dim), matching the module.
    """
    # TODO(synk): the custom CUDA autograd backward (trilinear.backward) is not ported.

    def __init__(self, dim=33):
        self.dim = dim
        self.LUT = jnp.zeros((3, dim, dim, dim), dtype=jnp.float32)

    def __call__(self, x):
        return trilinear_lut_apply(self.LUT, x)


def trilinear_ref(lut, x):
    """Pure-JAX reference (direct 8-corner gather), for correctness checking."""
    dim = lut.shape[-1]
    binsize = 1.000001 / (dim - 1)
    inv_bin = jnp.float32(1.0 / binsize)
    s = x.astype(jnp.float32) * inv_bin                      # (B, 3, H, W)
    idx = jnp.floor(s).astype(jnp.int32)
    frac = s - jnp.floor(s)
    rid, gid, bid = idx[:, 0], idx[:, 1], idx[:, 2]
    rd, gd, bd = frac[:, 0], frac[:, 1], frac[:, 2]
    acc = jnp.zeros((3,) + rid.shape, dtype=jnp.float32)     # (3, B, H, W)
    for i in (0, 1):
        for j in (0, 1):
            for k in (0, 1):
                w = ((rd if i else 1.0 - rd)
                     * (gd if j else 1.0 - gd)
                     * (bd if k else 1.0 - bd))              # (B, H, W)
                corner = lut[:, bid + k, gid + j, rid + i]   # (3, B, H, W)
                acc = acc + w[None] * corner
    return acc.transpose(1, 0, 2, 3)                         # (B, 3, H, W)


if __name__ == "__main__":
    key = jax.random.PRNGKey(0)
    k_x, k_lut = jax.random.split(key)

    B, C, H, W = 2, 3, 16, 16
    dim = 33
    x = jax.random.uniform(k_x, (B, C, H, W), dtype=jnp.float32)  # values in [0, 1)

    # 1) Exact module semantics: zero-initialized LUT -> output must be all zeros.
    gen = Generator3DLUT_zero(dim=dim)
    out_zero = jax.block_until_ready(gen(x))
    assert out_zero.shape == x.shape and out_zero.dtype == jnp.float32
    np.testing.assert_allclose(np.asarray(out_zero), 0.0, atol=0.0)

    # 2) Non-zero LUT vs pure-JAX reference.
    lut_rand = 0.5 * jax.random.normal(k_lut, (3, dim, dim, dim), dtype=jnp.float32)
    out_ref = jax.block_until_ready(trilinear_ref(lut_rand, x))

    # exact path (f32 MXU operands)
    out_f32 = jax.block_until_ready(trilinear_lut_apply(lut_rand, x, use_bf16=False))
    np.testing.assert_allclose(np.asarray(out_f32), np.asarray(out_ref),
                               atol=1e-5, rtol=1e-5)

    # fast path (bf16 MXU operands, f32 accumulation) -- the default
    out_bf16 = jax.block_until_ready(trilinear_lut_apply(lut_rand, x))
    np.testing.assert_allclose(np.asarray(out_bf16), np.asarray(out_ref),
                               atol=3e-2, rtol=3e-2)

    print("KERNEL_OK")
</pallas_src>

<mosaic_0001>
module attributes {stable_mosaic.version = 11 : i64} {
  func.func @_lut_kernel(%arg0: i32, %arg1: i32, %arg2: memref<120x1320xbf16, #tpu.memory_space<vmem>>, %arg3: memref<1x3x256xf32, #tpu.memory_space<vmem>>, %arg4: memref<1x3x256xf32, #tpu.memory_space<vmem>>) attributes {dimension_semantics = [#tpu.dimension_semantics<parallel>, #tpu.dimension_semantics<parallel>], iteration_bounds = array<i64: 2, 1>, scalar_prefetch = 0 : i64, scratch_operands = 0 : i64, tpu.core_type = #tpu.core_type<tc>, window_params = [{pipeline_mode = #tpu.pipeline_mode<synchronous>, transform_indices = @transform_0, window_bounds = array<i64: 120, 1320>}, {transform_indices = @transform_1, window_bounds = array<i64: 1, 3, 256>}, {transform_indices = @transform_2, window_bounds = array<i64: 1, 3, 256>}]} {
    %c0 = arith.constant 0 : index
    %c0_0 = arith.constant 0 : index
    %c0_1 = arith.constant 0 : index
    %0 = vector.load %arg3[%c0, %c0_0, %c0_1] : memref<1x3x256xf32, #tpu.memory_space<vmem>>, vector<1x3x256xf32>
    %1 = vector.shape_cast %0 : vector<1x3x256xf32> to vector<3x256xf32>
    %cst = arith.constant 31.9999676 : f32
    %2 = vector.broadcast %cst : f32 to vector<3x256xf32>
    %3 = arith.mulf %1, %2 : vector<3x256xf32>
    %cst_2 = arith.constant 0.000000e+00 : f32
    %cst_3 = arith.constant 3.200000e+01 : f32
    %4 = vector.broadcast %cst_2 : f32 to vector<3x256xf32>
    %5 = arith.maximumf %4, %3 : vector<3x256xf32>
    %6 = vector.broadcast %cst_3 : f32 to vector<3x256xf32>
    %7 = arith.minimumf %6, %5 : vector<3x256xf32>
    %8 = vector.extract_strided_slice %7 {offsets = [0, 0], sizes = [1, 256], strides = [1, 1]} : vector<3x256xf32> to vector<1x256xf32>
    %9 = vector.extract_strided_slice %7 {offsets = [1, 0], sizes = [1, 256], strides = [1, 1]} : vector<3x256xf32> to vector<1x256xf32>
    %10 = vector.extract_strided_slice %7 {offsets = [2, 0], sizes = [1, 256], strides = [1, 1]} : vector<3x256xf32> to vector<1x256xf32>
    %11 = tpu.iota {dimensions = array<i32: 0>} : vector<33x256xi32>
    %12 = arith.sitofp %11 : vector<33x256xi32> to vector<33x256xf32>
    %13 = vector.broadcast %10 : vector<1x256xf32> to vector<33x256xf32>
    %14 = arith.subf %12, %13 : vector<33x256xf32>
    %15 = math.absf %14 : vector<33x256xf32>
    %cst_4 = arith.constant 1.000000e+00 : f32
    %16 = vector.broadcast %cst_4 : f32 to vector<33x256xf32>
    %17 = arith.subf %16, %15 : vector<33x256xf32>
    %cst_5 = arith.constant 0.000000e+00 : f32
    %18 = vector.broadcast %cst_5 : f32 to vector<33x256xf32>
    %19 = arith.maximumf %17, %18 : vector<33x256xf32>
    %20 = tpu.iota {dimensions = array<i32: 0>} : vector<40x256xi32>
    %21 = arith.sitofp %20 : vector<40x256xi32> to vector<40x256xf32>
    %22 = vector.broadcast %9 : vector<1x256xf32> to vector<40x256xf32>
    %23 = arith.subf %21, %22 : vector<40x256xf32>
    %24 = math.absf %23 : vector<40x256xf32>
    %cst_6 = arith.constant 1.000000e+00 : f32
    %25 = vector.broadcast %cst_6 : f32 to vector<40x256xf32>
    %26 = arith.subf %25, %24 : vector<40x256xf32>
    %cst_7 = arith.constant 0.000000e+00 : f32
    %27 = vector.broadcast %cst_7 : f32 to vector<40x256xf32>
    %28 = arith.maximumf %26, %27 : vector<40x256xf32>
    %29 = tpu.iota {dimensions = array<i32: 0>} : vector<40x256xi32>
    %30 = arith.sitofp %29 : vector<40x256xi32> to vector<40x256xf32>
    %31 = vector.broadcast %8 : vector<1x256xf32> to vector<40x256xf32>
    %32 = arith.subf %30, %31 : vector<40x256xf32>
    %33 = math.absf %32 : vector<40x256xf32>
    %cst_8 = arith.constant 1.000000e+00 : f32
    %34 = vector.broadcast %cst_8 : f32 to vector<40x256xf32>
    %35 = arith.subf %34, %33 : vector<40x256xf32>
    %cst_9 = arith.constant 0.000000e+00 : f32
    %36 = vector.broadcast %cst_9 : f32 to vector<40x256xf32>
    %37 = arith.maximumf %35, %36 : vector<40x256xf32>
    %38 = vector.shape_cast %19 : vector<33x256xf32> to vector<33x1x256xf32>
    %39 = vector.shape_cast %28 : vector<40x256xf32> to vector<1x40x256xf32>
    %40 = vector.broadcast %38 : vector<33x1x256xf32> to vector<33x40x256xf32>
    %41 = vector.broadcast %39 : vector<1x40x256xf32> to vector<33x40x256xf32>
    %42 = arith.mulf %40, %41 : vector<33x40x256xf32>
    %43 = vector.shape_cast %42 : vector<33x40x256xf32> to vector<1320x256xf32>
    %44 = arith.truncf %43 : vector<1320x256xf32> to vector<1320x256xbf16>
    %c0_10 = arith.constant 0 : index
    %c0_11 = arith.constant 0 : index
    %45 = vector.load %arg2[%c0_10, %c0_11] : memref<120x1320xbf16, #tpu.memory_space<vmem>>, vector<120x1320xbf16>
    %cst_12 = arith.constant dense<0.000000e+00> : vector<120x256xf32>
    %46 = tpu.matmul %45, %44, %cst_12 {dimension_numbers = #tpu.dot_dimension_numbers<[1], [0], [0], [1], [0, 0, 1, 1], [], []>} : vector<120x1320xbf16>, vector<1320x256xbf16>, vector<120x256xf32> -> vector<120x256xf32>
    %47 = vector.shape_cast %46 : vector<120x256xf32> to vector<3x40x256xf32>
    %48 = vector.shape_cast %37 : vector<40x256xf32> to vector<1x40x256xf32>
    %49 = vector.broadcast %48 : vector<1x40x256xf32> to vector<3x40x256xf32>
    %50 = arith.mulf %47, %49 : vector<3x40x256xf32>
    %cst_13 = arith.constant dense<0.000000e+00> : vector<3x256xf32>
    %51 = vector.multi_reduction <add>, %50, %cst_13 [1] : vector<3x40x256xf32> to vector<3x256xf32>
    %c0_14 = arith.constant 0 : index
    %c0_15 = arith.constant 0 : index
    %c0_16 = arith.constant 0 : index
    %52 = vector.load %arg4[%c0_14, %c0_15, %c0_16] : memref<1x3x256xf32, #tpu.memory_space<vmem>>, vector<1x3x256xf32>
    %53 = vector.shape_cast %52 : vector<1x3x256xf32> to vector<3x256xf32>
    %54 = vector.shape_cast %51 : vector<3x256xf32> to vector<1x3x256xf32>
    tpu.vector_store %arg4[%c0_14, %c0_15, %c0_16], %54 {strides = array<i32>} : memref<1x3x256xf32, #tpu.memory_space<vmem>>, vector<1x3x256xf32>,
    return
  }
  func.func @transform_0(%arg0: i32, %arg1: i32) -> (i32, i32) {
    %c0_i32 = arith.constant 0 : i32
    %c0_i32_0 = arith.constant 0 : i32
    %c0_i32_1 = arith.constant 0 : i32
    return %c0_i32, %c0_i32_0 : i32, i32
  }
  func.func @transform_1(%arg0: i32, %arg1: i32) -> (i32, i32, i32) {
    %c0_i32 = arith.constant 0 : i32
    %c0_i32_0 = arith.constant 0 : i32
    return %arg0, %c0_i32, %arg1 : i32, i32, i32
  }
  func.func @transform_2(%arg0: i32, %arg1: i32) -> (i32, i32, i32) {
    %c0_i32 = arith.constant 0 : i32
    %c0_i32_0 = arith.constant 0 : i32
    return %arg0, %c0_i32, %arg1 : i32, i32, i32
  }
}

</mosaic_0001>

<bundles_post_ra>
// kernel: tpu_custom_call.1
= control target key start
LH: loop header
LB: loop body
LE: loop exit
PB: predicated region body
PF: predicated region fallthrough
CT: control target
= control target key end

     0   :  { %7 = vsyncpa [#allocation3], 0  ;;  %s3422_s9 = smov 0   ;;  %s3424_s10 = smov 0   ;;  %s5252_s0 = inlined_call_operand.hbm [shape: bf16[120,1320], index: 0, kind: input, shape index: {}]   ;;  %s5253_s1 = inlined_call_operand.vmem [shape: f32[2,3,256], index: 1, kind: input, shape index: {}]   ;;  %s5254_s2 = inlined_call_operand.vmem [shape: f32[2,3,256], index: 2, kind: output, shape index: {}]  }
   0x1   :  { %s3426_s11 = smov 0  }
   0x2 LB: > { %s2877_s12 = sadd.s32 4294967295, %s3402_s11   ;;  %s25_s13 = sadd.s32 1, %s3398_s10  ;;  %s3402_s11 = sphi %s3426_s11, %s13_s11   ;;  %s3398_s10 = sphi %s3424_s10, %s5628_s10   ;;  %s3394_s9 = sphi %s3422_s9, %s5627_s9  }
   0x3   : > { %p27_p0 = scmp.ge.s32.totalorder %s25_s13, 2  ;;  %p2879_p1 = scmp.ge.s32.totalorder %s3402_s11, 1 }
   0x4   : > { %p107_p2 = scmp.lt.s32.totalorder %s3402_s11, 3  ;;  %p3317_p4 = scmp.eq.s32.totalorder %s2877_s12, 0 }
   0x5   : > { %s5630_s13 = smov (%p27_p0, %s25_s13), 0  ;;  %s118_s16 = sshll.u32 %s5252_s0, 4  ;;  %s119_s16 = int_to_ptr.hbm [resolvable:$true] %s118_s16 }
   0x6   : > { %p108_p3 = pnand %p2879_p1, %p107_p2  ;;  %s3404_s17 = smov [#allocation2]  }
   0x7   : > { %s120_s18 = sshll.u32 %s3404_s17, 4  ;;  %s3405_s19 = smov 704   ;;  %s121_s18 = int_to_ptr.vmem [resolvable:$true] %s120_s18 }
   0x8   : > { %p3313_p5 = pneg %p108_p3  ;;  %s3406_s20 = smov 44  }
   0x9   : > { %149 = sbr.rel (%p108_p3) target bundleno = 933 (0x3a5), region = 28 }
   0xa   : > { %p3314_p6 = pnand %p3317_p4, %p3313_p5 }
   0xc   : > { %3316 = dma.hbm_to_vmem [thread:$0]  (!%p3314_p6), %s119_s16, 10560, %s121_s18, [#allocation3], %s3405_s19, %s3405_s19, %s3406_s20  }
   0xe   : > { %3389 = dma.done.wait (%p3317_p4), [#allocation3], 10560  }
   0xf   : > { %3391 = vsyncadd (%p3317_p4), [#allocation3], 4294956736  ;;  %p181_p7 = scmp.lt.s32.totalorder %s3394_s9, 1  ;;  %v205_v0 = vlaneseq  ;;  %vm375_vm0 = vcmask 1042434   ;;  %vm378_vm1 = vcmask 1043459   ;;  %vm387_vm2 = vcmask 1046534  }
  0x10   : > { %vm384_vm3 = vcmask 1045509   ;;  %vm372_vm4 = vcmask 1041409   ;;  %vm381_vm5 = vcmask 1044484   ;;  %vm370_vm6 = vcmask 1040384  }
  0x11   : > { %s5632_s9 = smov (!%p181_p7, %s3394_s9), 1  ;;  %v206_v3 = vshrl.u32 %v205_v0, 7  ;;  %vm390_vm7 = vcmask 1046528   ;;  %vm1605_vm8 = vcmask 1043456   ;;  %vm1580_vm9 = vcmask 326656  }
  0x12   : > { %s3214_s21 = sshll.u32 %s5632_s9, 3 }
  0x13   : > { %s188_s24 = scalar_lea.vmem %s5253_s1, %s3214_s21  ;;  %v208_v5 = vadd.s32 16, %v206_v3  ;;  %v209_v7 = vadd.s32 24, %v206_v3  ;;  %v207_v8 = vadd.s32 8, %v206_v3  ;;  %v210_v9 = vadd.s32 32, %v206_v3  ;;  %s198_s27 = scalar_lea.vmem %s5254_s2, %s3214_s21 }
  0x14   : > { %v201_v1 = vld [vmem:[%s188_s24] sm:$0x77]  ;;  %v3454_v10 = vcvt.s32.f32 %v206_v3 }
  0x15   : > { %v202_v2 = vmul.f32 31.999968, %v201_v1  ;;  %v3459_v14 = vcvt.s32.f32 %v208_v5  ;;  %v3461_v15 = vcvt.s32.f32 %v209_v7  ;;  %v3467_v19 = vcvt.s32.f32 %v210_v9 }
  0x16   : > { %5390 = vst [vmem:[#allocation6_spill] sm:$0xff] %v3454_v10  ;;  %v3469_v20 = vcvt.s32.f32 %v207_v8 }
  0x17   : > { %v203_v4 = vmax.f32 %v202_v2, 0.0  ;;  %5391 = vst [vmem:[#allocation7_spill] sm:$0xff] %v3459_v14 }
  0x18   : > { %5392 = vst [vmem:[#allocation8_spill] sm:$0xff] %v3461_v15 }
  0x19   : > { %v3452_v6 = vmin.f32 %v203_v4, 32.0  ;;  %5393 = vst [vmem:[#allocation9_spill] sm:$0xff] %v3467_v19 }
  0x1a   : > { %5394 = vst [vmem:[#allocation10_spill] sm:$0xff] %v3469_v20 }
  0x1b   : > { %5389 = vst [vmem:[#allocation5_spill] sm:$0xff] %v3452_v6  ;;  %v217_v11 = vperm.slane %v3452_v6, 2  ;;  %v218_v12 = vperm.slane %v3452_v6, 6  ;;  %v263_v13 = vperm.slane %v3452_v6, 1 }
  0x1d   : > { %v3463_v16 = vperm.slane %v217_v11, 2  ;;  %v3465_v17 = vperm.slane %v218_v12, 2  ;;  %v267_v18 = vperm.slane %v263_v13, 1 }
  0x1f   : > { %v223_v21 = vsub.f32 %v3454_v10, %v3463_v16  ;;  %v224_v22 = vsub.f32 %v3454_v10, %v3465_v17  ;;  %v269_v23 = vsub.f32 %v3454_v10, %v267_v18  ;;  %v273_v24 = vsub.f32 %v3459_v14, %v267_v18 }
  0x20   : > { %v275_v27 = vsub.f32 %v3461_v15, %v267_v18  ;;  %v277_v28 = vsub.f32 %v3467_v19, %v267_v18  ;;  %v271_v30 = vsub.f32 %v3469_v20, %v267_v18 }
  0x21   : > { %v233_v25 = vand.u32 2147483647, %v223_v21  ;;  %v234_v26 = vand.u32 2147483647, %v224_v22  ;;  %v279_v31 = vand.u32 2147483647, %v269_v23 }
  0x22   : > { %v283_v32 = vand.u32 2147483647, %v273_v24  ;;  %v285_v33 = vand.u32 2147483647, %v275_v27  ;;  %v287_v35 = vand.u32 2147483647, %v277_v28 }
  0x23   : > { %v244_v29 = vsub.f32 1.0, %v234_v26  ;;  %v243_v34 = vsub.f32 1.0, %v233_v25  ;;  %v281_v37 = vand.u32 2147483647, %v271_v30  ;;  %v289_v38 = vsub.f32 1.0, %v279_v31 }
  0x24   : > { %v293_v39 = vsub.f32 1.0, %v283_v32  ;;  %v295_v40 = vsub.f32 1.0, %v285_v33  ;;  %v297_v41 = vsub.f32 1.0, %v287_v35 }
  0x25   : > { %v254_v36 = vmax.f32 %v244_v29, 0.0  ;;  %v3480_v42 = vmax.f32 %v243_v34, 0.0  ;;  %v291_v43 = vsub.f32 1.0, %v281_v37  ;;  %v3484_v45 = vmax.f32 %v289_v38, 0.0 }
  0x26   : > { %v3486_v46 = vmax.f32 %v293_v39, 0.0  ;;  %v3488_v47 = vmax.f32 %v295_v40, 0.0  ;;  %v3490_v48 = vmax.f32 %v297_v41, 0.0 }
  0x27   : > { %v3482_v44 = vrot.slane %v254_v36, 7  ;;  %v3516_v57 = vmax.f32 %v291_v43, 0.0 }
  0x29   : > { %v3495_v49 = vsel %vm375_vm0, %v3480_v42, %v3482_v44  ;;  %v3500_v50 = vsel %vm378_vm1, %v3480_v42, %v3482_v44  ;;  %v3505_v51 = vsel %vm387_vm2, %v3480_v42, %v3482_v44  ;;  %v3510_v52 = vsel %vm384_vm3, %v3480_v42, %v3482_v44 }
  0x2a   : > { %v5262_v53 = vrot.slane %v3495_v49, 2  ;;  %v5261_v54 = vrot.slane %v3500_v50, 3  ;;  %v5260_v55 = vrot.slane %v3505_v51, 6  ;;  %v5258_v56 = vrot.slane %v3510_v52, 5 }
  0x2b   : > { %v3521_v58 = vsel %vm372_vm4, %v3480_v42, %v3482_v44  ;;  %v3539_v0 = vsel %vm381_vm5, %v3480_v42, %v3482_v44  ;;  %v3564_v28 = vsel %vm370_vm6, %v3480_v42, %v3482_v44 }
  0x2c   : > { %v443_v59 = vperm.slane %v5262_v53, 0  ;;  %v3527_v60 = vperm.slane %v5261_v54, 0  ;;  %v3531_v61 = vperm.slane %v5260_v55, 0  ;;  %v449_v62 = vperm.slane %v5258_v56, 0 }
  0x2d   : > { %v5257_v63 = vrot.slane %v3521_v58, 1  ;;  %v5256_v23 = vrot.slane %v3539_v0, 4  ;;  %v439_v35 = vperm.slane %v3564_v28, 0 }
  0x2e   : > { %v599_v1 = vmul.f32 %v443_v59, %v3490_v48  ;;  %v601_v2 = vmul.f32 %v3527_v60, %v3484_v45  ;;  %v595_v3 = vmul.f32 %v443_v59, %v3486_v46  ;;  %v597_v4 = vmul.f32 %v443_v59, %v3488_v47 }
  0x2f   : > { %v631_v5 = vmul.f32 %v3531_v61, %v3484_v45  ;;  %v633_v7 = vmul.f32 %v3531_v61, %v3516_v57  ;;  %v627_v8 = vmul.f32 %v449_v62, %v3488_v47  ;;  %v629_v9 = vmul.f32 %v449_v62, %v3490_v48 }
  0x30   : > { %v915_v11 = vpack.c.bf16 %v601_v2, %v599_v1  ;;  %v913_v13 = vpack.c.bf16 %v597_v4, %v595_v3  ;;  %v591_v18 = vmul.f32 %v443_v59, %v3484_v45  ;;  %v593_v21 = vmul.f32 %v443_v59, %v3516_v57 }
  0x31   : > { %v931_v12 = vpack.c.bf16 %v633_v7, %v631_v5  ;;  %v441_v22 = vperm.slane %v5257_v63, 0  ;;  %v929_v24 = vpack.c.bf16 %v629_v9, %v627_v8  ;;  %v623_v25 = vmul.f32 %v449_v62, %v3516_v57 }
  0x32   : > { %3293 = vmatpush.bf16.msra.mxu2 %v915_v11  ;;  %1612 = vmatpush.bf16.msra.mxu0 %v915_v11  ;;  %v625_v26 = vmul.f32 %v449_v62, %v3486_v46  ;;  %v447_v27 = vperm.slane %v5256_v23, 0  ;;  %v911_v29 = vpack.c.bf16 %v593_v21, %v591_v18  ;;  %v621_v34 = vmul.f32 %v449_v62, %v3484_v45 }
  0x33   : > { %3301 = vmatpush.bf16.msra.mxu3 %v931_v12  ;;  %1660 = vmatpush.bf16.msra.mxu1 %v931_v12  ;;  %v587_v30 = vmul.f32 %v441_v22, %v3488_v47  ;;  %v589_v31 = vmul.f32 %v441_v22, %v3490_v48  ;;  %v583_v37 = vmul.f32 %v441_v22, %v3516_v57 }
  0x34   : > { %v927_v32 = vpack.c.bf16 %v625_v26, %v623_v25  ;;  %v619_v33 = vmul.f32 %v447_v27, %v3490_v48  ;;  %v585_v38 = vmul.f32 %v441_v22, %v3486_v46  ;;  %v615_v40 = vmul.f32 %v447_v27, %v3486_v46 }
  0x35   : > { %v909_v36 = vpack.c.bf16 %v589_v31, %v587_v30  ;;  %v617_v41 = vmul.f32 %v447_v27, %v3488_v47  ;;  %v607_v43 = vmul.f32 %v3527_v60, %v3488_v47  ;;  %v225_v59 = vsub.f32 %v3469_v20, %v3463_v16 }
  0x36   : > { %3294 = vmatpush.bf16.msra.mxu2 %v913_v13  ;;  %1613 = vmatpush.bf16.msra.mxu0 %v913_v13  ;;  %v925_v39 = vpack.c.bf16 %v621_v34, %v619_v33  ;;  %v226_v62 = vsub.f32 %v3469_v20, %v3465_v17  ;;  %v579_v1 = vmul.f32 %v439_v35, %v3490_v48 }
  0x37   : > { %3302 = vmatpush.bf16.msra.mxu3 %v929_v24  ;;  %1661 = vmatpush.bf16.msra.mxu1 %v929_v24  ;;  %v581_v2 = vmul.f32 %v441_v22, %v3484_v45  ;;  %v575_v3 = vmul.f32 %v439_v35, %v3486_v46  ;;  %v227_v4 = vsub.f32 %v3459_v14, %v3463_v16  ;;  %v235_v7 = vand.u32 2147483647, %v225_v59 }
  0x38   : > { %v907_v5 = vpack.c.bf16 %v585_v38, %v583_v37  ;;  %v236_v8 = vand.u32 2147483647, %v226_v62  ;;  %v228_v9 = vsub.f32 %v3459_v14, %v3465_v17  ;;  %v923_v11 = vpack.c.bf16 %v617_v41, %v615_v40  ;;  %v3066_v37 = vld [vmem:[#allocation2 + $0x160] sm:$0xf] }
  0x39   : > { %v611_v12 = vmul.f32 %v447_v27, %v3484_v45  ;;  %v613_v13 = vmul.f32 %v447_v27, %v3516_v57  ;;  %v237_v18 = vand.u32 2147483647, %v227_v4  ;;  %v577_v21 = vmul.f32 %v439_v35, %v3488_v47  ;;  %v3260_v4 = vld [vmem:[#allocation2 + $0x164] sm:$0xf] }
  0x3a   : > { %3295 = vmatpush.bf16.msra.mxu2 %v911_v29  ;;  %1614 = vmatpush.bf16.msra.mxu0 %v911_v29  ;;  %v245_v22 = vsub.f32 1.0, %v235_v7  ;;  %v246_v24 = vsub.f32 1.0, %v236_v8  ;;  %v238_v25 = vand.u32 2147483647, %v228_v9  ;;  %v609_v26 = vmul.f32 %v3527_v60, %v3490_v48 }
  0x3b   : > { %3303 = vmatpush.bf16.msra.mxu3 %v927_v32  ;;  %1662 = vmatpush.bf16.msra.mxu1 %v927_v32  ;;  %v571_v29 = vmul.f32 %v439_v35, %v3484_v45  ;;  %v573_v30 = vmul.f32 %v439_v35, %v3516_v57  ;;  %v247_v31 = vsub.f32 1.0, %v237_v18  ;;  %v905_v32 = vpack.c.bf16 %v581_v2, %v579_v1 }
  0x3c   : > { %v3595_v33 = vmax.f32 %v245_v22, 0.0  ;;  %v256_v27 = vmax.f32 %v246_v24, 0.0  ;;  %v248_v34 = vsub.f32 1.0, %v238_v25  ;;  %v903_v38 = vpack.c.bf16 %v577_v21, %v575_v3 }
  0x3d   : > { %v3599_v41 = vmax.f32 %v247_v31, 0.0  ;;  %v919_v59 = vpack.c.bf16 %v609_v26, %v607_v43  ;;  %v901_v62 = vpack.c.bf16 %v573_v30, %v571_v29  ;;  %v603_v1 = vmul.f32 %v3527_v60, %v3516_v57  ;;  %v2890_v29 = vld [vmem:[#allocation2] sm:$0xf]  ;;  %v3221_v31 = vld [vmem:[#allocation2 + $0x28] sm:$0xf0] }
  0x3e   : > { %3296 = vmatpush.bf16.msra.mxu2 %v909_v36  ;;  %1615 = vmatpush.bf16.msra.mxu0 %v909_v36  ;;  %v921_v36 = vpack.c.bf16 %v613_v13, %v611_v12  ;;  %v3597_v40 = vrot.slane %v256_v27, 7  ;;  %v258_v35 = vmax.f32 %v248_v34, 0.0  ;;  %v605_v2 = vmul.f32 %v3527_v60, %v3486_v46 }
  0x3f   : > { %3304 = vmatpush.bf16.msra.mxu3 %v925_v39  ;;  %1663 = vmatpush.bf16.msra.mxu1 %v925_v39  ;;  %v3265_v39 = vld [vmem:[#allocation2 + $0x188] sm:$0xf0]  ;;  %v3679_v63 = vor.u32 %v3221_v31, %v2890_v29 }
  0x40   : > { %v3608_v3 = vsel %vm372_vm4, %v3595_v33, %v3597_v40  ;;  %v3613_v43 = vsel %vm381_vm5, %v3595_v33, %v3597_v40  ;;  %v3618_v7 = vsel %vm370_vm6, %v3595_v33, %v3597_v40  ;;  %v3620_v60 = vrot.slane %v258_v35, 7  ;;  %v3216_v35 = vld [vmem:[#allocation2 + $0x4] sm:$0xf] }
  0x41   : > { %v3622_v8 = vor.u32 %v3265_v39, %v3066_v37  ;;  %v5259_v9 = vrot.slane %v3608_v3, 1  ;;  %v3627_v12 = vperm.slane %v3618_v7, 0  ;;  %v3632_v13 = vsel %vm390_vm7, %v3597_v40, %v3595_v33  ;;  %5398 = vst [vmem:[#allocation14_spill] sm:$0xff] %v3679_v63 }
  0x42   : > { %3297 = vmatpush.bf16.msra.mxu2 %v907_v5  ;;  %1616 = vmatpush.bf16.msra.mxu0 %v907_v5  ;;  %v3068_v5 = vld [vmem:[#allocation2 + $0x18c] sm:$0xf0]  ;;  %v3637_v18 = vsel %vm375_vm0, %v3599_v41, %v3620_v60  ;;  %v3642_v21 = vsel %vm378_vm1, %v3599_v41, %v3620_v60  ;;  %v3647_v22 = vsel %vm378_vm1, %v3595_v33, %v3597_v40  ;;  %v5264_v27 = vrot.slane %v3632_v13, 7 }
  0x43   : > { %3305 = vmatpush.bf16.msra.mxu3 %v923_v11  ;;  %1664 = vmatpush.bf16.msra.mxu1 %v923_v11  ;;  %5395 = vst [vmem:[#allocation11_spill] sm:$0xff] %v3622_v8  ;;  %v5255_v11 = vrot.slane %v3613_v43, 4  ;;  %v917_v24 = vpack.c.bf16 %v605_v2, %v603_v1  ;;  %v3649_v25 = vor.u32 %v3260_v4, %v3068_v5  ;;  %v3653_v26 = vperm.slane %v5259_v9, 0 }
  0x44   : > { %5396 = vst [vmem:[#allocation12_spill] sm:$0xff] %v3647_v22  ;;  %v5263_v34 = vrot.slane %v3637_v18, 2  ;;  %v469_v56 = vperm.slane %v5264_v27, 0  ;;  %v5400_v31 = vrot.slane %v3642_v21, 3 }
  0x45   : > { %5397 = vst [vmem:[#allocation13_spill] sm:$0xff] %v3649_v25  ;;  %v3657_v30 = vperm.slane %v5255_v11, 0  ;;  %v663_v37 = vmul.f32 %v3653_v26, %v3516_v57  ;;  %v665_v39 = vmul.f32 %v3653_v26, %v3486_v46  ;;  %v661_v5 = vmul.f32 %v3653_v26, %v3484_v45 }
  0x46   : > { %3298 = vmatpush.bf16.msra.mxu2 %v905_v32  ;;  %1617 = vmatpush.bf16.msra.mxu0 %v905_v32  ;;  %v659_v32 = vmul.f32 %v3627_v12, %v3490_v48  ;;  %v475_v9 = vperm.slane %v5263_v34, 0  ;;  %v729_v29 = vmul.f32 %v469_v56, %v3490_v48 }
  0x47   : > { %3306 = vmatpush.bf16.msra.mxu3 %v921_v36  ;;  %1665 = vmatpush.bf16.msra.mxu1 %v921_v36  ;;  %v695_v1 = vmul.f32 %v3657_v30, %v3486_v46  ;;  %v697_v4 = vmul.f32 %v3657_v30, %v3488_v47  ;;  %v693_v11 = vmul.f32 %v3657_v30, %v3516_v57 }
  0x48   : > { %v947_v23 = vpack.c.bf16 %v665_v39, %v663_v37  ;;  %v945_v53 = vpack.c.bf16 %v661_v5, %v659_v32  ;;  %v727_v36 = vmul.f32 %v469_v56, %v3488_v47  ;;  %v3691_v37 = vperm.slane %v5400_v31, 0  ;;  %v3110_v31 = vld [vmem:[#allocation2 + $0x1b8] sm:$0xf] }
  0x49   : > { %v963_v54 = vpack.c.bf16 %v697_v4, %v695_v1  ;;  %v759_v39 = vmul.f32 %v475_v9, %v3490_v48  ;;  %v657_v32 = vmul.f32 %v3627_v12, %v3488_v47 }
  0x4a   : > { %3299 = vmatpush.bf16.msra.mxu2 %v903_v38  ;;  %1618 = vmatpush.bf16.msra.mxu0 %v903_v38  ;;  %v2892_v38 = vld [vmem:[#allocation2 + $0x2c] sm:$0xf0] }
  0x4b   : > { %3307 = vmatpush.bf16.msra.mxu3 %v919_v59  ;;  %1666 = vmatpush.bf16.msra.mxu1 %v919_v59  ;;  %v691_v59 = vmul.f32 %v3657_v30, %v3484_v45  ;;  %v3685_v55 = vor.u32 %v3216_v35, %v2892_v38  ;;  %v979_v35 = vpack.c.bf16 %v729_v29, %v727_v36 }
  0x4c   : > { %v755_v36 = vmul.f32 %v475_v9, %v3486_v46  ;;  %v757_v29 = vmul.f32 %v475_v9, %v3488_v47 }
  0x4d   : > { %5399 = vst [vmem:[#allocation15_spill] sm:$0xff] %v3685_v55  ;;  %v961_v2 = vpack.c.bf16 %v693_v11, %v691_v59  ;;  %v5401_v11 = vrot.slane %v3647_v22, 3  ;;  %v725_v59 = vmul.f32 %v469_v56, %v3486_v46 }
  0x4e   : > { %3300 = vmatpush.bf16.msra.mxu2 %v901_v62  ;;  %1619 = vmatpush.bf16.msra.mxu0 %v901_v62  ;;  %v655_v62 = vmul.f32 %v3627_v12, %v3486_v46 }
  0x4f   : > { %3308 = vmatpush.bf16.msra.mxu3 %v917_v24  ;;  %1667 = vmatpush.bf16.msra.mxu1 %v917_v24  ;;  %v461_v24 = vperm.slane %v5401_v11, 0  ;;  %v3276_v11 = vld [vmem:[#allocation2 + $0x1e0] sm:$0xf0] }
  0x50   : > { %v943_v38 = vpack.c.bf16 %v657_v32, %v655_v62  ;;  %v651_v62 = vmul.f32 %v3627_v12, %v3484_v45  ;;  %v653_v32 = vmul.f32 %v3627_v12, %v3516_v57  ;;  %v3232_v12 = vld [vmem:[#allocation2 + $0x80] sm:$0xf0] }
  0x51   : > { %1640 = vmatmul.bf16.vlgmr.msra.gmra.mxu2 %v3622_v8  ;;  %1620 = vmatmul.bf16.vlgmr.msra.gmra.mxu0 %v3679_v63  ;;  %v687_v1 = vmul.f32 %v461_v24, %v3488_v47  ;;  %v689_v4 = vmul.f32 %v461_v24, %v3490_v48  ;;  %v685_v27 = vmul.f32 %v461_v24, %v3486_v46  ;;  %v3271_v8 = vld [vmem:[#allocation2 + $0x1bc] sm:$0xf] }
  0x52   : > { %1708 = vmatpush.bf16.msrb.mxu2 %v947_v23  ;;  %v761_v23 = vmul.f32 %v3691_v37, %v3484_v45  ;;  %1688 = vmatmul.bf16.vlgmr.msra.gmra.mxu3 %v3649_v25  ;;  %v3112_v25 = vld [vmem:[#allocation2 + $0x1e4] sm:$0xf0]  ;;  %v721_v63 = vmul.f32 %v469_v56, %v3484_v45 }
  0x53   : > { %1756 = vmatpush.bf16.msrb.mxu3 %v963_v54  ;;  %v723_v54 = vmul.f32 %v469_v56, %v3516_v57  ;;  %1668 = vmatmul.bf16.vlgmr.msra.gmra.mxu1 %v3685_v55  ;;  %v959_v34 = vpack.c.bf16 %v689_v4, %v687_v1  ;;  %v3724_v1 = vor.u32 %v3276_v11, %v3110_v31  ;;  %v2934_v4 = vld [vmem:[#allocation2 + $0x58] sm:$0xf] }
  0x54   : > { %1804 = vmatpush.bf16.msrb.mxu0 %v979_v35  ;;  %v995_v5 = vpack.c.bf16 %v761_v23, %v759_v39  ;;  %v993_v39 = vpack.c.bf16 %v757_v29, %v755_v36  ;;  %v683_v23 = vmul.f32 %v461_v24, %v3516_v57  ;;  %v3227_v36 = vld [vmem:[#allocation2 + $0x5c] sm:$0xf]  ;;  %v2936_v29 = vld [vmem:[#allocation2 + $0x84] sm:$0xf0]  ;;  %v3732_v31 = vsel %vm390_vm7, %v3482_v44, %v3480_v42 }
  0x55   : > { %v977_v35 = vpack.c.bf16 %v725_v59, %v723_v54  ;;  %5403 = vst [vmem:[#allocation17_spill] sm:$0xff] %v3724_v1  ;;  %v941_v54 = vpack.c.bf16 %v653_v32, %v651_v62  ;;  %v753_v59 = vmul.f32 %v475_v9, %v3516_v57  ;;  %v5271_v32 = vrot.slane %v3732_v31, 7 }
  0x56   : > { %1709 = vmatpush.bf16.msrb.mxu2 %v945_v53  ;;  %1852 = vmatpush.bf16.msrb.mxu1 %v995_v5  ;;  %v3721_v53 = vsel %vm387_vm2, %v3595_v33, %v3597_v40  ;;  %v957_v22 = vpack.c.bf16 %v685_v27, %v683_v23  ;;  %v3742_v27 = vor.u32 %v3271_v8, %v3112_v25 }
  0x57   : > { %1757 = vmatpush.bf16.msrb.mxu3 %v961_v2  ;;  %5402 = vst [vmem:[#allocation16_spill] sm:$0xff] %v3721_v53  ;;  %v751_v2 = vmul.f32 %v475_v9, %v3484_v45  ;;  %v5270_v5 = vrot.slane %v3721_v53, 6  ;;  %v3740_v9 = vsel %vm375_vm0, %v3595_v33, %v3597_v40  ;;  %v3744_v56 = vor.u32 %v3232_v12, %v2934_v4 }
  0x58   : > { %1805 = vmatpush.bf16.msrb.mxu0 %v977_v35  ;;  %5404 = vst [vmem:[#allocation18_spill] sm:$0xff] %v3740_v9  ;;  %v3750_v42 = vsel %vm372_vm4, %v3599_v41, %v3620_v60  ;;  %v3752_v44 = vor.u32 %v3227_v36, %v2936_v29  ;;  %v453_v35 = vperm.slane %v5271_v32, 0 }
  0x59   : > { %v467_v11 = vperm.slane %v5270_v5, 0  ;;  %v991_v62 = vpack.c.bf16 %v753_v59, %v751_v2  ;;  %5405 = vst [vmem:[#allocation19_spill] sm:$0xff] %v3742_v27  ;;  %v5274_v2 = vrot.slane %v3750_v42, 1 }
  0x5a   : > { %1710 = vmatpush.bf16.msrb.mxu2 %v943_v38  ;;  %1853 = vmatpush.bf16.msrb.mxu1 %v993_v39  ;;  %5406 = vst [vmem:[#allocation20_spill] sm:$0xff] %v3744_v56  ;;  %v681_v39 = vmul.f32 %v461_v24, %v3484_v45  ;;  %v647_v12 = vmul.f32 %v453_v35, %v3488_v47 }
  0x5b   : > { %1758 = vmatpush.bf16.msrb.mxu3 %v959_v34  ;;  %v5269_v34 = vrot.slane %v3740_v9, 2  ;;  %5407 = vst [vmem:[#allocation21_spill] sm:$0xff] %v3750_v42  ;;  %v719_v38 = vmul.f32 %v467_v11, %v3490_v48  ;;  %v715_v25 = vmul.f32 %v467_v11, %v3486_v46  ;;  %v717_v23 = vmul.f32 %v467_v11, %v3488_v47 }
  0x5c   : > { %5408 = vst [vmem:[#allocation22_spill] sm:$0xff] %v3752_v44  ;;  %v649_v59 = vmul.f32 %v453_v35, %v3490_v48  ;;  %v711_v36 = vmul.f32 %v467_v11, %v3484_v45  ;;  %v713_v29 = vmul.f32 %v467_v11, %v3516_v57 }
  0x5d   : > { %v459_v8 = vperm.slane %v5269_v34, 0  ;;  %v975_v4 = vpack.c.bf16 %v721_v63, %v719_v38  ;;  %v645_v63 = vmul.f32 %v453_v35, %v3486_v46  ;;  %v973_v32 = vpack.c.bf16 %v717_v23, %v715_v25 }
  0x5e   : > { %1711 = vmatpush.bf16.msrb.mxu2 %v941_v54  ;;  %1854 = vmatpush.bf16.msrb.mxu1 %v991_v62  ;;  %v643_v54 = vmul.f32 %v453_v35, %v3516_v57  ;;  %v939_v34 = vpack.c.bf16 %v649_v59, %v647_v12  ;;  %v641_v25 = vmul.f32 %v453_v35, %v3484_v45 }
  0x5f   : > { %1759 = vmatpush.bf16.msrb.mxu3 %v957_v22  ;;  %v679_v24 = vmul.f32 %v459_v8, %v3490_v48  ;;  %v473_v22 = vperm.slane %v5274_v2, 0  ;;  %1806 = vmatpush.bf16.msrb.mxu0 %v975_v4  ;;  %v675_v62 = vmul.f32 %v459_v8, %v3486_v46  ;;  %v677_v38 = vmul.f32 %v459_v8, %v3488_v47 }
  0x60   : > { %v937_v23 = vpack.c.bf16 %v645_v63, %v643_v54  ;;  %v635_v35 = vmul.f32 %v3531_v61, %v3486_v46  ;;  %v3154_v63 = vld [vmem:[#allocation2 + $0x210] sm:$0xf] }
  0x61   : > { %v955_v5 = vpack.c.bf16 %v681_v39, %v679_v24  ;;  %v747_v9 = vmul.f32 %v473_v22, %v3488_v47  ;;  %v749_v53 = vmul.f32 %v473_v22, %v3490_v48  ;;  %1645 = vmatmul.bf16.gmra.mxu2 %v3724_v1  ;;  %1625 = vmatmul.bf16.gmra.mxu0 %v3744_v56 }
  0x62   : > { %v743_v11 = vmul.f32 %v473_v22, %v3516_v57  ;;  %v745_v4 = vmul.f32 %v473_v22, %v3486_v46  ;;  %1693 = vmatmul.bf16.gmra.mxu3 %v3742_v27  ;;  %v639_v39 = vmul.f32 %v3531_v61, %v3490_v48  ;;  %1712 = vmatpush.bf16.msrb.mxu2 %v939_v34 }
  0x63   : > { %1673 = vmatmul.bf16.gmra.mxu1 %v3752_v44  ;;  %v989_v12 = vpack.c.bf16 %v749_v53, %v747_v9  ;;  %1760 = vmatpush.bf16.msrb.mxu3 %v955_v5  ;;  %v953_v59 = vpack.c.bf16 %v677_v38, %v675_v62  ;;  %v971_v24 = vpack.c.bf16 %v713_v29, %v711_v36  ;;  %v2978_v62 = vld [vmem:[#allocation2 + $0xb0] sm:$0xf]  ;;  %v3243_v38 = vld [vmem:[#allocation2 + $0xd8] sm:$0xf0] }
  0x64   : > { %1807 = vmatpush.bf16.msrb.mxu0 %v973_v32  ;;  %v987_v2 = vpack.c.bf16 %v745_v4, %v743_v11  ;;  %v671_v1 = vmul.f32 %v459_v8, %v3484_v45  ;;  %v935_v42 = vpack.c.bf16 %v641_v25, %v639_v39  ;;  %v673_v27 = vmul.f32 %v459_v8, %v3516_v57  ;;  %v3156_v39 = vld [vmem:[#allocation2 + $0x23c] sm:$0xf0]  ;;  %v3238_v25 = vld [vmem:[#allocation2 + $0xb4] sm:$0xf] }
  0x65   : > { %1855 = vmatpush.bf16.msrb.mxu1 %v989_v12  ;;  %v3790_v53 = vsel %vm384_vm3, %v3595_v33, %v3597_v40  ;;  %v3795_v5 = vsel %vm370_vm6, %v3599_v41, %v3620_v60  ;;  %v741_v34 = vmul.f32 %v473_v22, %v3484_v45  ;;  %v637_v33 = vmul.f32 %v3531_v61, %v3488_v47  ;;  %v3282_v61 = vld [vmem:[#allocation2 + $0x214] sm:$0xf] }
  0x66   : > { %5409 = vst [vmem:[#allocation23_spill] sm:$0xff] %v3790_v53  ;;  %v5278_v32 = vrot.slane %v3790_v53, 5  ;;  %v471_v9 = vperm.slane %v3795_v5, 0  ;;  %1713 = vmatpush.bf16.msrb.mxu2 %v937_v23  ;;  %v951_v8 = vpack.c.bf16 %v673_v27, %v671_v1  ;;  %v667_v40 = vmul.f32 %v3653_v26, %v3488_v47  ;;  %v3287_v1 = vld [vmem:[#allocation2 + $0x238] sm:$0xf0] }
  0x67   : > { %5410 = vst [vmem:[#allocation24_spill] sm:$0xff] %v3795_v5  ;;  %1761 = vmatpush.bf16.msrb.mxu3 %v953_v59  ;;  %v669_v22 = vmul.f32 %v3653_v26, %v3490_v48  ;;  %v933_v12 = vpack.c.bf16 %v637_v33, %v635_v35  ;;  %v2980_v23 = vld [vmem:[#allocation2 + $0xdc] sm:$0xf0]  ;;  %v3817_v53 = vor.u32 %v3287_v1, %v3154_v63 }
  0x68   : > { %1808 = vmatpush.bf16.msrb.mxu0 %v971_v24  ;;  %v465_v36 = vperm.slane %v5278_v32, 0  ;;  %v739_v54 = vmul.f32 %v471_v9, %v3490_v48  ;;  %v735_v29 = vmul.f32 %v471_v9, %v3486_v46  ;;  %v737_v27 = vmul.f32 %v471_v9, %v3488_v47 }
  0x69   : > { %1856 = vmatpush.bf16.msrb.mxu1 %v987_v2  ;;  %v949_v26 = vpack.c.bf16 %v669_v22, %v667_v40  ;;  %5411 = vst [vmem:[#allocation25_spill] sm:$0xff] %v3817_v53  ;;  %v3819_v56 = vor.u32 %v3243_v38, %v2978_v62  ;;  %v3821_v44 = vor.u32 %v3282_v61, %v3156_v39 }
  0x6a   : > { %v707_v11 = vmul.f32 %v465_v36, %v3488_v47  ;;  %v709_v2 = vmul.f32 %v465_v36, %v3490_v48  ;;  %v985_v4 = vpack.c.bf16 %v741_v34, %v739_v54  ;;  %1714 = vmatpush.bf16.msrb.mxu2 %v935_v42  ;;  %v703_v59 = vmul.f32 %v465_v36, %v3516_v57 }
  0x6b   : > { %1762 = vmatpush.bf16.msrb.mxu3 %v951_v8  ;;  %v705_v24 = vmul.f32 %v465_v36, %v3486_v46  ;;  %v983_v5 = vpack.c.bf16 %v737_v27, %v735_v29  ;;  %5412 = vst [vmem:[#allocation26_spill] sm:$0xff] %v3819_v56  ;;  %v3823_v34 = vor.u32 %v3238_v25, %v2980_v23  ;;  %v1151_v29 = vld [vmem:[#allocation2 + $0x268] sm:$0xff]  ;;  %v3254_v23 = vld [vmem:[#allocation2 + $0x130] sm:$0xf0] }
  0x6c   : > { %v969_v32 = vpack.c.bf16 %v709_v2, %v707_v11  ;;  %5413 = vst [vmem:[#allocation27_spill] sm:$0xff] %v3821_v44  ;;  %v699_v42 = vmul.f32 %v3657_v30, %v3490_v48  ;;  %v701_v35 = vmul.f32 %v465_v36, %v3484_v45  ;;  %v731_v33 = vmul.f32 %v471_v9, %v3484_v45  ;;  %v3022_v25 = vld [vmem:[#allocation2 + $0x108] sm:$0xf] }
  0x6d   : > { %1857 = vmatpush.bf16.msrb.mxu1 %v985_v4  ;;  %5414 = vst [vmem:[#allocation28_spill] sm:$0xff] %v3823_v34  ;;  %v967_v8 = vpack.c.bf16 %v705_v24, %v703_v59  ;;  %v733_v40 = vmul.f32 %v471_v9, %v3516_v57  ;;  %v3837_v30 = vsel %vm387_vm2, %v3599_v41, %v3620_v60  ;;  %v1401_v11 = vunpack.c.l.b16 %v1151_v29  ;;  %v3024_v59 = vld [vmem:[#allocation2 + $0x134] sm:$0xf0] }
  0x6e   : > { %1809 = vmatpush.bf16.msrb.mxu0 %v969_v32  ;;  %1715 = vmatpush.bf16.msrb.mxu2 %v933_v12  ;;  %v229_v32 = vsub.f32 %v3461_v15, %v3463_v16  ;;  %v965_v9 = vpack.c.bf16 %v701_v35, %v699_v42  ;;  %v230_v36 = vsub.f32 %v3461_v15, %v3465_v17  ;;  %v1402_v2 = vunpack.c.h.b16 %v1151_v29 }
  0x6f   : > { %1763 = vmatpush.bf16.msrb.mxu3 %v949_v26  ;;  %v981_v54 = vpack.c.bf16 %v733_v40, %v731_v33  ;;  %v3249_v26 = vld [vmem:[#allocation2 + $0x10c] sm:$0xf]  ;;  %v3856_v42 = vpack.c.b16 %v1401_v11, %v1401_v11 }
  0x70   : > { %v239_v22 = vand.u32 2147483647, %v229_v32  ;;  %v240_v1 = vand.u32 2147483647, %v230_v36  ;;  %v3858_v35 = vpack.c.b16 %v1402_v2, %v1402_v2  ;;  %v3877_v32 = vor.u32 %v3249_v26, %v3024_v59 }
  0x71   : > { %1858 = vmatpush.bf16.msrb.mxu1 %v983_v5  ;;  %1650 = vmatmul.bf16.gmra.mxu2 %v3817_v53  ;;  %v5286_v5 = vrot.slane %v3837_v30, 6  ;;  %5415 = vst [vmem:[#allocation29_spill] sm:$0xff] %v3856_v42  ;;  %v2900_v53 = vld [vmem:[#allocation2 + $0x34] sm:$0xf0] }
  0x72   : > { %1630 = vmatmul.bf16.gmra.mxu0 %v3819_v56  ;;  %1698 = vmatmul.bf16.gmra.mxu3 %v3821_v44  ;;  %v249_v27 = vsub.f32 1.0, %v239_v22  ;;  %v250_v38 = vsub.f32 1.0, %v240_v1  ;;  %5416 = vst [vmem:[#allocation30_spill] sm:$0xff] %v3858_v35  ;;  %v3218_v44 = vld [vmem:[#allocation2 + $0x14] sm:$0xf] }
  0x73   : > { %1678 = vmatmul.bf16.gmra.mxu1 %v3823_v34  ;;  %1810 = vmatpush.bf16.msrb.mxu0 %v967_v8  ;;  %v3846_v63 = vperm.slane %v5286_v5, 0  ;;  %v3860_v8 = vor.u32 %v3254_v23, %v3022_v25  ;;  %5421 = vst [vmem:[#allocation35_spill] sm:$0xff] %v3877_v32  ;;  %v2996_v34 = vld [vmem:[#allocation2 + $0xec] sm:$0xf0] }
  0x74   : > { %v3852_v12 = vmax.f32 %v249_v27, 0.0  ;;  %v260_v39 = vmax.f32 %v250_v38, 0.0 }
  0x75   : > { %1859 = vmatpush.bf16.msrb.mxu1 %v981_v54  ;;  %v791_v61 = vmul.f32 %v3846_v63, %v3484_v45  ;;  %v793_v62 = vmul.f32 %v3846_v63, %v3516_v57  ;;  %5417 = vst [vmem:[#allocation31_spill] sm:$0xff] %v3860_v8 }
  0x76   : > { %v3854_v24 = vrot.slane %v260_v39, 7  ;;  %v3913_v39 = vsel %vm384_vm3, %v3599_v41, %v3620_v60 }
  0x77   : > { %1811 = vmatpush.bf16.msrb.mxu0 %v965_v9  ;;  %v1011_v4 = vpack.c.bf16 %v793_v62, %v791_v61  ;;  %5422 = vst [vmem:[#allocation36_spill] sm:$0xff] %v3913_v39  ;;  %v5287_v23 = vrot.slane %v3913_v39, 5 }
  0x78   : > { %v3865_v33 = vsel %vm372_vm4, %v3852_v12, %v3854_v24  ;;  %v3870_v40 = vsel %vm381_vm5, %v3852_v12, %v3854_v24  ;;  %v3875_v54 = vsel %vm390_vm7, %v3854_v24, %v3852_v12  ;;  %v3919_v26 = vsel %vm370_vm6, %v3852_v12, %v3854_v24 }
  0x79   : > { %1900 = vmatpush.bf16.msra.mxu2 %v1011_v4  ;;  %5418 = vst [vmem:[#allocation32_spill] sm:$0xff] %v3865_v33  ;;  %v5285_v9 = vrot.slane %v3865_v33, 1  ;;  %v5284_v36 = vrot.slane %v3870_v40, 4  ;;  %v5283_v22 = vrot.slane %v3875_v54, 7  ;;  %v3928_v5 = vperm.slane %v5287_v23, 0 }
  0x7a   : > { %5419 = vst [vmem:[#allocation33_spill] sm:$0xff] %v3870_v40  ;;  %v3223_v40 = vld [vmem:[#allocation2 + $0x38] sm:$0xf0] }
  0x7b   : > { %5420 = vst [vmem:[#allocation34_spill] sm:$0xff] %v3875_v54  ;;  %v3884_v29 = vperm.slane %v5285_v9, 0  ;;  %v3888_v1 = vperm.slane %v5284_v36, 0  ;;  %v3892_v27 = vperm.slane %v5283_v22, 0  ;;  %v3922_v36 = vperm.slane %v3919_v26, 0 }
  0x7c   : > { %5423 = vst [vmem:[#allocation37_spill] sm:$0xff] %v3919_v26  ;;  %v2898_v26 = vld [vmem:[#allocation2 + $0x8] sm:$0xf]  ;;  %v2906_v54 = vld [vmem:[#allocation2 + $0x10] sm:$0xf] }
  0x7d   : > { %v823_v61 = vmul.f32 %v3884_v29, %v3516_v57  ;;  %v825_v62 = vmul.f32 %v3884_v29, %v3486_v46  ;;  %v855_v38 = vmul.f32 %v3888_v1, %v3486_v46  ;;  %v857_v11 = vmul.f32 %v3888_v1, %v3488_v47 }
  0x7e   : > { %v887_v2 = vmul.f32 %v3892_v27, %v3488_v47  ;;  %v889_v4 = vmul.f32 %v3892_v27, %v3490_v48  ;;  %v821_v9 = vmul.f32 %v3884_v29, %v3484_v45  ;;  %v3946_v56 = vor.u32 %v3223_v40, %v2906_v54 }
  0x7f   : > { %v1027_v25 = vpack.c.bf16 %v825_v62, %v823_v61  ;;  %v1043_v59 = vpack.c.bf16 %v857_v11, %v855_v38  ;;  %v851_v61 = vmul.f32 %v3888_v1, %v3484_v45  ;;  %v853_v62 = vmul.f32 %v3888_v1, %v3516_v57 }
  0x80   : > { %v1059_v22 = vpack.c.bf16 %v889_v4, %v887_v2  ;;  %v819_v38 = vmul.f32 %v3922_v36, %v3490_v48  ;;  %v883_v11 = vmul.f32 %v3892_v27, %v3516_v57  ;;  %v885_v2 = vmul.f32 %v3892_v27, %v3486_v46  ;;  %5425 = vst [vmem:[#allocation39_spill] sm:$0xff] %v3946_v56 }
  0x81   : > { %1655 = vmatmul.bf16.gmra.mxu2 %v3856_v42  ;;  %1948 = vmatpush.bf16.msra.mxu3 %v1027_v25  ;;  %v787_v4 = vmul.f32 %v3928_v5, %v3488_v47  ;;  %v789_v25 = vmul.f32 %v3928_v5, %v3490_v48  ;;  %v1041_v23 = vpack.c.bf16 %v853_v62, %v851_v61  ;;  %v3222_v42 = vld [vmem:[#allocation2 + $0x30] sm:$0xf0] }
  0x82   : > { %1635 = vmatmul.bf16.gmra.mxu0 %v3860_v8  ;;  %1703 = vmatmul.bf16.gmra.mxu3 %v3858_v35  ;;  %v3217_v35 = vld [vmem:[#allocation2 + $0xc] sm:$0xf]  ;;  %v2908_v8 = vld [vmem:[#allocation2 + $0x3c] sm:$0xf0]  ;;  %v3973_v54 = vsel %vm387_vm2, %v3852_v12, %v3854_v24 }
  0x83   : > { %1683 = vmatmul.bf16.gmra.mxu1 %v3877_v32  ;;  %1996 = vmatpush.bf16.msra.mxu0 %v1043_v59  ;;  %v1025_v59 = vpack.c.bf16 %v821_v9, %v819_v38  ;;  %v1009_v33 = vpack.c.bf16 %v789_v25, %v787_v4  ;;  %v3944_v32 = vor.u32 %v3222_v42, %v2898_v26  ;;  %v2942_v25 = vld [vmem:[#allocation2 + $0x60] sm:$0xf] }
  0x84   : > { %2044 = vmatpush.bf16.msra.mxu1 %v1059_v22  ;;  %v1057_v22 = vpack.c.bf16 %v885_v2, %v883_v11  ;;  %v3948_v61 = vor.u32 %v3217_v35, %v2900_v53  ;;  %v3950_v62 = vor.u32 %v3218_v44, %v2908_v8  ;;  %v785_v42 = vmul.f32 %v3928_v5, %v3486_v46 }
  0x85   : > { %1949 = vmatpush.bf16.msra.mxu3 %v1025_v59  ;;  %1901 = vmatpush.bf16.msra.mxu2 %v1009_v33  ;;  %5424 = vst [vmem:[#allocation38_spill] sm:$0xff] %v3944_v32  ;;  %v783_v33 = vmul.f32 %v3928_v5, %v3516_v57  ;;  %v815_v53 = vmul.f32 %v3922_v36, %v3486_v46  ;;  %v3233_v59 = vld [vmem:[#allocation2 + $0x88] sm:$0xf0] }
  0x86   : > { %5426 = vst [vmem:[#allocation40_spill] sm:$0xff] %v3948_v61  ;;  %v817_v44 = vmul.f32 %v3922_v36, %v3488_v47  ;;  %v3967_v35 = vsel %vm378_vm1, %v3852_v12, %v3854_v24  ;;  %v881_v11 = vmul.f32 %v3892_v27, %v3484_v45  ;;  %v3992_v27 = vor.u32 %v3233_v59, %v2942_v25 }
  0x87   : > { %1997 = vmatpush.bf16.msra.mxu0 %v1041_v23  ;;  %5427 = vst [vmem:[#allocation41_spill] sm:$0xff] %v3950_v62  ;;  %v1007_v8 = vpack.c.bf16 %v785_v42, %v783_v33  ;;  %v5300_v40 = vrot.slane %v3967_v35, 3  ;;  %v5299_v23 = vrot.slane %v3973_v54, 6  ;;  %v3228_v33 = vld [vmem:[#allocation2 + $0x64] sm:$0xf] }
  0x88   : > { %2045 = vmatpush.bf16.msra.mxu1 %v1057_v22  ;;  %5428 = vst [vmem:[#allocation42_spill] sm:$0xff] %v3967_v35  ;;  %v1023_v9 = vpack.c.bf16 %v817_v44, %v815_v53  ;;  %v2950_v42 = vld [vmem:[#allocation2 + $0x68] sm:$0xf]  ;;  %v3234_v53 = vld [vmem:[#allocation2 + $0x90] sm:$0xf0] }
  0x89   : > { %5429 = vst [vmem:[#allocation43_spill] sm:$0xff] %v3973_v54  ;;  %1902 = vmatpush.bf16.msra.mxu2 %v1007_v8  ;;  %v3978_v26 = vperm.slane %v5300_v40, 0  ;;  %v3982_v38 = vperm.slane %v5299_v23, 0  ;;  %v2944_v8 = vld [vmem:[#allocation2 + $0x8c] sm:$0xf0]  ;;  %v3994_v54 = vor.u32 %v3234_v53, %v2950_v42  ;;  %v781_v42 = vmul.f32 %v3928_v5, %v3484_v45 }
  0x8a   : > { %1950 = vmatpush.bf16.msra.mxu3 %v1023_v9  ;;  %v3229_v9 = vld [vmem:[#allocation2 + $0x6c] sm:$0xf]  ;;  %v2952_v23 = vld [vmem:[#allocation2 + $0x94] sm:$0xf0]  ;;  %5430 = vst [vmem:[#allocation44_spill] sm:$0xff] %v3992_v27  ;;  %v3996_v35 = vor.u32 %v3228_v33, %v2944_v8 }
  0x8b   : > { %v847_v2 = vmul.f32 %v3978_v26, %v3488_v47  ;;  %v849_v4 = vmul.f32 %v3978_v26, %v3490_v48  ;;  %v879_v22 = vmul.f32 %v3982_v38, %v3490_v48  ;;  %5431 = vst [vmem:[#allocation45_spill] sm:$0xff] %v3994_v54  ;;  %v845_v25 = vmul.f32 %v3978_v26, %v3486_v46 }
  0x8c   : > { %5432 = vst [vmem:[#allocation46_spill] sm:$0xff] %v3996_v35  ;;  %v875_v59 = vmul.f32 %v3982_v38, %v3486_v46 }
  0x8d   : > { %v1039_v44 = vpack.c.bf16 %v849_v4, %v847_v2  ;;  %v1055_v40 = vpack.c.bf16 %v881_v11, %v879_v22  ;;  %v4007_v11 = vsel %vm381_vm5, %v3599_v41, %v3620_v60  ;;  %v843_v4 = vmul.f32 %v3978_v26, %v3516_v57 }
  0x8e   : > { %5434 = vst [vmem:[#allocation48_spill] sm:$0xff] %v4007_v11  ;;  %v5309_v2 = vrot.slane %v4007_v11, 4  ;;  %v877_v22 = vmul.f32 %v3982_v38, %v3488_v47  ;;  %v3240_v11 = vld [vmem:[#allocation2 + $0xc4] sm:$0xf] }
  0x8f   : > { %1998 = vmatpush.bf16.msra.mxu0 %v1039_v44  ;;  %2046 = vmatpush.bf16.msra.mxu1 %v1055_v40  ;;  %v811_v40 = vmul.f32 %v3922_v36, %v3484_v45  ;;  %v1037_v53 = vpack.c.bf16 %v845_v25, %v843_v4  ;;  %v4036_v4 = vor.u32 %v3240_v11, %v2996_v34 }
  0x90   : > { %v4024_v33 = vperm.slane %v5309_v2, 0  ;;  %v1053_v44 = vpack.c.bf16 %v877_v22, %v875_v59  ;;  %v2988_v2 = vld [vmem:[#allocation2 + $0xe4] sm:$0xf0]  ;;  %v3250_v59 = vld [vmem:[#allocation2 + $0x114] sm:$0xf] }
  0x91   : > { %1716 = vmatmul.bf16.vlgmr.msrb.gmra.mxu2 %v3944_v32  ;;  %5438 = vst [vmem:[#allocation52_spill] sm:$0xff] %v4036_v4 }
  0x92   : > { %1812 = vmatmul.bf16.vlgmr.msrb.gmra.mxu0 %v3946_v56  ;;  %1764 = vmatmul.bf16.vlgmr.msrb.gmra.mxu3 %v3948_v61  ;;  %v3998_v56 = vor.u32 %v3229_v9, %v2952_v23  ;;  %v813_v23 = vmul.f32 %v3922_v36, %v3516_v57  ;;  %v779_v8 = vmul.f32 %v4024_v33, %v3490_v48  ;;  %v2986_v9 = vld [vmem:[#allocation2 + $0xb8] sm:$0xf]  ;;  %v3245_v61 = vld [vmem:[#allocation2 + $0xe8] sm:$0xf0] }
  0x93   : > { %1860 = vmatmul.bf16.vlgmr.msrb.gmra.mxu1 %v3950_v62  ;;  %1999 = vmatpush.bf16.msra.mxu0 %v1037_v53  ;;  %v2994_v62 = vld [vmem:[#allocation2 + $0xc0] sm:$0xf]  ;;  %v775_v25 = vmul.f32 %v4024_v33, %v3486_v46  ;;  %v3256_v53 = vld [vmem:[#allocation2 + $0x140] sm:$0xf0] }
  0x94   : > { %5433 = vst [vmem:[#allocation47_spill] sm:$0xff] %v3998_v56  ;;  %v1021_v36 = vpack.c.bf16 %v813_v23, %v811_v40  ;;  %2047 = vmatpush.bf16.msra.mxu1 %v1053_v44  ;;  %v4032_v40 = vor.u32 %v3245_v61, %v2994_v62  ;;  %v4049_v61 = vsel %vm390_vm7, %v3620_v60, %v3599_v41  ;;  %v3255_v60 = vld [vmem:[#allocation2 + $0x138] sm:$0xf0] }
  0x95   : > { %5439 = vst [vmem:[#allocation53_spill] sm:$0xff] %v4049_v61  ;;  %v5312_v62 = vrot.slane %v4049_v61, 7  ;;  %v4063_v41 = vsel %vm375_vm0, %v3852_v12, %v3854_v24 }
  0x96   : > { %1951 = vmatpush.bf16.msra.mxu3 %v1021_v36  ;;  %5436 = vst [vmem:[#allocation50_spill] sm:$0xff] %v4032_v40  ;;  %v5315_v22 = vrot.slane %v4063_v41, 2  ;;  %v3038_v36 = vld [vmem:[#allocation2 + $0x118] sm:$0xf] }
  0x97   : > { %5440 = vst [vmem:[#allocation54_spill] sm:$0xff] %v4063_v41 }
  0xa1   : > { %1721 = vmatmul.bf16.gmra.mxu2 %v3992_v27 }
  0xa2   : > { %1817 = vmatmul.bf16.gmra.mxu0 %v3994_v54  ;;  %1769 = vmatmul.bf16.gmra.mxu3 %v3996_v35  ;;  %v3244_v54 = vld [vmem:[#allocation2 + $0xe0] sm:$0xf0]  ;;  %v3239_v35 = vld [vmem:[#allocation2 + $0xbc] sm:$0xf] }
  0xa3   : > { %1865 = vmatmul.bf16.gmra.mxu1 %v3998_v56  ;;  %v1005_v56 = vpack.c.bf16 %v781_v42, %v779_v8  ;;  %v4030_v5 = vor.u32 %v3244_v54, %v2986_v9  ;;  %v4034_v23 = vor.u32 %v3239_v35, %v2988_v2  ;;  %v4054_v35 = vperm.slane %v5312_v62, 0  ;;  %v3030_v54 = vld [vmem:[#allocation2 + $0x110] sm:$0xf]  ;;  %v3032_v42 = vld [vmem:[#allocation2 + $0x13c] sm:$0xf0] }
  0xa4   : > { %v3251_v8 = vld [vmem:[#allocation2 + $0x11c] sm:$0xf]  ;;  %v3040_v9 = vld [vmem:[#allocation2 + $0x144] sm:$0xf0]  ;;  %v4074_v62 = vor.u32 %v3256_v53, %v3038_v36 }
  0xa5   : > { %1903 = vmatpush.bf16.msra.mxu2 %v1005_v56  ;;  %5435 = vst [vmem:[#allocation49_spill] sm:$0xff] %v4030_v5  ;;  %v777_v56 = vmul.f32 %v4024_v33, %v3488_v47  ;;  %v807_v11 = vmul.f32 %v4054_v35, %v3488_v47  ;;  %v809_v2 = vmul.f32 %v4054_v35, %v3490_v48  ;;  %v3074_v53 = vld [vmem:[#allocation2 + $0x168] sm:$0xf] }
  0xa6   : > { %5437 = vst [vmem:[#allocation51_spill] sm:$0xff] %v4034_v23 }
  0xa7   : > { %v1003_v34 = vpack.c.bf16 %v777_v56, %v775_v25  ;;  %v1019_v44 = vpack.c.bf16 %v809_v2, %v807_v11  ;;  %v4068_v25 = vperm.slane %v5315_v22, 0  ;;  %v841_v56 = vmul.f32 %v3978_v26, %v3484_v45  ;;  %5442 = vst [vmem:[#allocation56_spill] sm:$0xff] %v4074_v62 }
  0xa8   : > { %v4080_v11 = vor.u32 %v3251_v8, %v3040_v9  ;;  %v871_v2 = vmul.f32 %v3982_v38, %v3484_v45  ;;  %v873_v22 = vmul.f32 %v3982_v38, %v3516_v57  ;;  %v803_v38 = vmul.f32 %v4054_v35, %v3516_v57  ;;  %v3267_v8 = vld [vmem:[#allocation2 + $0x198] sm:$0xf0] }
  0xa9   : > { %1904 = vmatpush.bf16.msra.mxu2 %v1003_v34  ;;  %1952 = vmatpush.bf16.msra.mxu3 %v1019_v44  ;;  %v4072_v34 = vor.u32 %v3255_v60, %v3030_v54  ;;  %v839_v61 = vmul.f32 %v4068_v25, %v3490_v48  ;;  %v771_v54 = vmul.f32 %v4024_v33, %v3484_v45  ;;  %v3082_v44 = vld [vmem:[#allocation2 + $0x170] sm:$0xf] }
  0xaa   : > { %5444 = vst [vmem:[#allocation58_spill] sm:$0xff] %v4080_v11  ;;  %v1051_v26 = vpack.c.bf16 %v873_v22, %v871_v2  ;;  %v773_v60 = vmul.f32 %v4024_v33, %v3516_v57  ;;  %v837_v36 = vmul.f32 %v4068_v25, %v3488_v47  ;;  %v3266_v33 = vld [vmem:[#allocation2 + $0x190] sm:$0xf0] }
  0xab   : > { %5441 = vst [vmem:[#allocation55_spill] sm:$0xff] %v4072_v34  ;;  %v1035_v41 = vpack.c.bf16 %v841_v56, %v839_v61  ;;  %v805_v61 = vmul.f32 %v4054_v35, %v3486_v46  ;;  %v3076_v56 = vld [vmem:[#allocation2 + $0x194] sm:$0xf0]  ;;  %v3262_v2 = vld [vmem:[#allocation2 + $0x174] sm:$0xf] }
  0xac   : > { %2048 = vmatpush.bf16.msra.mxu1 %v1051_v26  ;;  %v3084_v26 = vld [vmem:[#allocation2 + $0x19c] sm:$0xf0] }
  0xad   : > { %2000 = vmatpush.bf16.msra.mxu0 %v1035_v41  ;;  %v1017_v22 = vpack.c.bf16 %v805_v61, %v803_v38  ;;  %v3261_v41 = vld [vmem:[#allocation2 + $0x16c] sm:$0xf] }
  0xae   : > { %v4106_v61 = vor.u32 %v3261_v41, %v3076_v56  ;;  %v799_v41 = vmul.f32 %v3846_v63, %v3490_v48 }
  0xaf   : > { %1953 = vmatpush.bf16.msra.mxu3 %v1017_v22  ;;  %v4113_v22 = vsel %vm384_vm3, %v3852_v12, %v3854_v24  ;;  %v767_v12 = vmul.f32 %v3691_v37, %v3488_v47  ;;  %v769_v24 = vmul.f32 %v3691_v37, %v3490_v48 }
  0xb0   : > { %5447 = vst [vmem:[#allocation61_spill] sm:$0xff] %v4106_v61 }
  0xb1   : > { %1726 = vmatmul.bf16.gmra.mxu2 %v4030_v5  ;;  %5449 = vst [vmem:[#allocation63_spill] sm:$0xff] %v4113_v22 }
  0xb2   : > { %1822 = vmatmul.bf16.gmra.mxu0 %v4032_v40  ;;  %1774 = vmatmul.bf16.gmra.mxu3 %v4034_v23  ;;  %v4078_v40 = vor.u32 %v3250_v59, %v3032_v42  ;;  %v1001_v59 = vpack.c.bf16 %v773_v60, %v771_v54  ;;  %v835_v42 = vmul.f32 %v4068_v25, %v3486_v46 }
  0xb3   : > { %1870 = vmatmul.bf16.gmra.mxu1 %v4036_v4  ;;  %v4102_v54 = vor.u32 %v3266_v33, %v3074_v53  ;;  %v4104_v60 = vor.u32 %v3267_v8, %v3082_v44  ;;  %v801_v44 = vmul.f32 %v4054_v35, %v3484_v45  ;;  %v833_v35 = vmul.f32 %v4068_v25, %v3516_v57 }
  0xb4   : > { %5443 = vst [vmem:[#allocation57_spill] sm:$0xff] %v4078_v40  ;;  %1905 = vmatpush.bf16.msra.mxu2 %v1001_v59  ;;  %v1033_v9 = vpack.c.bf16 %v837_v36, %v835_v42  ;;  %v4108_v59 = vor.u32 %v3262_v2, %v3084_v26  ;;  %v5318_v42 = vrot.slane %v4113_v22, 5  ;;  %v831_v22 = vmul.f32 %v4068_v25, %v3484_v45 }
  0xb5   : > { %5445 = vst [vmem:[#allocation59_spill] sm:$0xff] %v4102_v54  ;;  %v1015_v26 = vpack.c.bf16 %v801_v44, %v799_v41  ;;  %v3126_v41 = vld [vmem:[#allocation2 + $0x1c8] sm:$0xf]  ;;  %v3278_v44 = vld [vmem:[#allocation2 + $0x1f0] sm:$0xf0] }
  0xb6   : > { %2001 = vmatpush.bf16.msra.mxu0 %v1033_v9  ;;  %5446 = vst [vmem:[#allocation60_spill] sm:$0xff] %v4104_v60  ;;  %v4122_v53 = vperm.slane %v5318_v42, 0  ;;  %v999_v9 = vpack.c.bf16 %v769_v24, %v767_v12  ;;  %v3118_v12 = vld [vmem:[#allocation2 + $0x1c0] sm:$0xf]  ;;  %v3277_v24 = vld [vmem:[#allocation2 + $0x1e8] sm:$0xf0] }
  0xb7   : > { %5448 = vst [vmem:[#allocation62_spill] sm:$0xff] %v4108_v59  ;;  %1954 = vmatpush.bf16.msra.mxu3 %v1015_v26 }
  0xb8   : > { %v869_v33 = vmul.f32 %v4122_v53, %v3490_v48  ;;  %1906 = vmatpush.bf16.msra.mxu2 %v999_v9  ;;  %v3273_v9 = vld [vmem:[#allocation2 + $0x1cc] sm:$0xf] }
  0xc1   : > { %1731 = vmatmul.bf16.gmra.mxu2 %v4072_v34 }
  0xc2   : > { %1827 = vmatmul.bf16.gmra.mxu0 %v4074_v62  ;;  %1779 = vmatmul.bf16.gmra.mxu3 %v4078_v40  ;;  %v4153_v40 = vor.u32 %v3278_v44, %v3126_v41  ;;  %v795_v41 = vmul.f32 %v3846_v63, %v3486_v46  ;;  %v797_v44 = vmul.f32 %v3846_v63, %v3488_v47 }
  0xc3   : > { %1875 = vmatmul.bf16.gmra.mxu1 %v4080_v11  ;;  %v827_v63 = vmul.f32 %v3884_v29, %v3488_v47 }
  0xc4   : > { %5452 = vst [vmem:[#allocation66_spill] sm:$0xff] %v4153_v40 }
  0xce   : > { %v1621_v38 = vpop.f32.mrf.mxu0 }
  0xd0   : > { %v1669_v62 = vpop.f32.mrf.mxu1 }
  0xd1   : > { %v4116_v36 = vadd.f32 %v1669_v62, %v1621_v38  ;;  %1736 = vmatmul.bf16.gmra.mxu2 %v4102_v54  ;;  %v867_v62 = vmul.f32 %v4122_v53, %v3488_v47 }
  0xd2   : > { %1832 = vmatmul.bf16.gmra.mxu0 %v4104_v60  ;;  %1784 = vmatmul.bf16.gmra.mxu3 %v4106_v61 }
  0xd3   : > { %1880 = vmatmul.bf16.gmra.mxu1 %v4108_v59  ;;  %v1049_v2 = vpack.c.bf16 %v869_v33, %v867_v62  ;;  %v264_v59 = vperm.slane %v3452_v6, 5  ;;  %v3272_v62 = vld [vmem:[#allocation2 + $0x1c4] sm:$0xf]  ;;  %v3120_v33 = vld [vmem:[#allocation2 + $0x1ec] sm:$0xf0] }
  0xd4   : > { %v1641_v8 = vpop.f32.mrf.mxu2  ;;  %v4151_v11 = vor.u32 %v3272_v62, %v3120_v33  ;;  %v763_v33 = vmul.f32 %v3691_v37, %v3516_v57 }
  0xd5   : > { %v1689_v56 = vpop.f32.mrf.mxu3  ;;  %2049 = vmatpush.bf16.msra.mxu1 %v1049_v2  ;;  %v4147_v26 = vperm.slane %v264_v59, 1 }
  0xd6   : > { %v4138_v38 = vadd.f32 %v1689_v56, %v1641_v8  ;;  %v1623_v42 = vpop.f32.mrf.mxu0  ;;  %v1031_v8 = vpack.c.bf16 %v833_v35, %v831_v22  ;;  %v3128_v56 = vld [vmem:[#allocation2 + $0x1f4] sm:$0xf0]  ;;  %5451 = vst [vmem:[#allocation65_spill] sm:$0xff] %v4151_v11  ;;  %v863_v22 = vmul.f32 %v4122_v53, %v3516_v57  ;;  %v865_v35 = vmul.f32 %v4122_v53, %v3486_v46 }
  0xd7   : > { %v4157_v23 = vor.u32 %v3273_v9, %v3128_v56  ;;  %v278_v62 = vsub.f32 %v3467_v19, %v4147_v26 }
  0xd8   : > { %v1671_v60 = vpop.f32.mrf.mxu1  ;;  %2002 = vmatpush.bf16.msra.mxu0 %v1031_v8 }
  0xd9   : > { %v4141_v61 = vadd.f32 %v1671_v60, %v1623_v42  ;;  %v4149_v42 = vor.u32 %v3277_v24, %v3118_v12  ;;  %5453 = vst [vmem:[#allocation67_spill] sm:$0xff] %v4157_v23  ;;  %v1047_v12 = vpack.c.bf16 %v865_v35, %v863_v22  ;;  %v270_v24 = vsub.f32 %v3454_v10, %v4147_v26  ;;  %v3172_v10 = vld [vmem:[#allocation2 + $0x24c] sm:$0xf0] }
  0xda   : > { %v1013_v35 = vpack.c.bf16 %v797_v44, %v795_v41  ;;  %v3288_v41 = vld [vmem:[#allocation2 + $0x240] sm:$0xf0]  ;;  %v3283_v44 = vld [vmem:[#allocation2 + $0x21c] sm:$0xf] }
  0xdb   : > { %5450 = vst [vmem:[#allocation64_spill] sm:$0xff] %v4149_v42  ;;  %2050 = vmatpush.bf16.msra.mxu1 %v1047_v12 }
  0xdc   : > { %v1643_v2 = vpop.f32.mrf.mxu2  ;;  %1955 = vmatpush.bf16.msra.mxu3 %v1013_v35  ;;  %v3164_v35 = vld [vmem:[#allocation2 + $0x244] sm:$0xf0] }
  0xdd   : > { %v1691_v60 = vpop.f32.mrf.mxu3  ;;  %v4203_v54 = vor.u32 %v3283_v44, %v3164_v35 }
  0xde   : > { %v4155_v25 = vadd.f32 %v1691_v60, %v1643_v2  ;;  %v1626_v4 = vpop.f32.mrf.mxu0  ;;  %v280_v2 = vand.u32 2147483647, %v270_v24  ;;  %v288_v60 = vand.u32 2147483647, %v278_v62  ;;  %v829_v24 = vmul.f32 %v3884_v29, %v3490_v48 }
  0xdf   : > { %v859_v29 = vmul.f32 %v3888_v1, %v3490_v48  ;;  %5456 = vst [vmem:[#allocation70_spill] sm:$0xff] %v4203_v54  ;;  %v5459_v1 = vrot.slane %v3500_v50, 3  ;;  %v276_v50 = vsub.f32 %v3461_v15, %v4147_v26 }
  0xe0   : > { %v1674_v59 = vpop.f32.mrf.mxu1  ;;  %v290_v62 = vsub.f32 1.0, %v280_v2  ;;  %v861_v2 = vmul.f32 %v4122_v53, %v3484_v45 }
  0xe1   : > { %v4163_v8 = vadd.f32 %v1674_v59, %v1626_v4  ;;  %1741 = vmatmul.bf16.gmra.mxu2 %v4149_v42  ;;  %v765_v4 = vmul.f32 %v3691_v37, %v3486_v46  ;;  %v272_v37 = vsub.f32 %v3469_v20, %v4147_v26 }
  0xe2   : > { %1837 = vmatmul.bf16.gmra.mxu0 %v4153_v40  ;;  %1789 = vmatmul.bf16.gmra.mxu3 %v4151_v11  ;;  %v3284_v11 = vld [vmem:[#allocation2 + $0x224] sm:$0xf] }
  0xe3   : > { %1885 = vmatmul.bf16.gmra.mxu1 %v4157_v23  ;;  %v997_v56 = vpack.c.bf16 %v765_v4, %v763_v33  ;;  %v298_v33 = vsub.f32 1.0, %v288_v60  ;;  %v3162_v4 = vld [vmem:[#allocation2 + $0x218] sm:$0xf]  ;;  %v282_v20 = vand.u32 2147483647, %v272_v37  ;;  %v4199_v60 = vmax.f32 %v290_v62, 0.0 }
  0xe4   : > { %v1646_v9 = vpop.f32.mrf.mxu2  ;;  %v4191_v6 = vor.u32 %v3288_v41, %v3162_v4  ;;  %v4205_v37 = vor.u32 %v3284_v11, %v3172_v10  ;;  %v5458_v4 = vrot.slane %v3495_v49, 2  ;;  %v1045_v62 = vpack.c.bf16 %v861_v2, %v859_v29 }
  0xe5   : > { %v1694_v22 = vpop.f32.mrf.mxu3  ;;  %1907 = vmatpush.bf16.msra.mxu2 %v997_v56  ;;  %v3289_v56 = vld [vmem:[#allocation2 + $0x248] sm:$0xf0]  ;;  %v292_v44 = vsub.f32 1.0, %v282_v20  ;;  %v231_v10 = vsub.f32 %v3467_v19, %v3463_v16  ;;  %v232_v49 = vsub.f32 %v3467_v19, %v3465_v17  ;;  %v5460_v16 = vrot.slane %v3505_v51, 6 }
  0xe6   : > { %v4181_v59 = vadd.f32 %v1694_v22, %v1646_v9  ;;  %v1628_v40 = vpop.f32.mrf.mxu0  ;;  %v3170_v9 = vld [vmem:[#allocation2 + $0x220] sm:$0xf]  ;;  %v1029_v22 = vpack.c.bf16 %v829_v24, %v827_v63  ;;  %5454 = vst [vmem:[#allocation68_spill] sm:$0xff] %v4191_v6  ;;  %v4211_v41 = vperm.slane %v5458_v4, 1  ;;  %2051 = vmatpush.bf16.msra.mxu1 %v1045_v62  ;;  %v1153_v62 = vld [vmem:[#allocation2 + $0x278] sm:$0xff] }
  0xe7   : > { %v4193_v42 = vor.u32 %v3289_v56, %v3170_v9  ;;  %5457 = vst [vmem:[#allocation71_spill] sm:$0xff] %v4205_v37  ;;  %v4215_v9 = vperm.slane %v5459_v1, 1  ;;  %v274_v56 = vsub.f32 %v3459_v14, %v4147_v26  ;;  %v242_v29 = vand.u32 2147483647, %v232_v49 }
  0xe8   : > { %v1676_v23 = vpop.f32.mrf.mxu1  ;;  %2003 = vmatpush.bf16.msra.mxu0 %v1029_v22  ;;  %v4207_v22 = vmax.f32 %v298_v33, 0.0  ;;  %v4235_v2 = vmax.f32 %v292_v44, 0.0 }
  0xe9   : > { %v4185_v12 = vadd.f32 %v1676_v23, %v1628_v40  ;;  %5455 = vst [vmem:[#allocation69_spill] sm:$0xff] %v4193_v42  ;;  %v602_v11 = vmul.f32 %v4215_v9, %v4199_v60  ;;  %v284_v33 = vand.u32 2147483647, %v274_v56 }
  0xea   : > { %v600_v20 = vmul.f32 %v4211_v41, %v4207_v22 }
  0xec   : > { %v1648_v40 = vpop.f32.mrf.mxu2  ;;  %v916_v4 = vpack.c.bf16 %v602_v11, %v600_v20 }
  0xed   : > { %v1696_v23 = vpop.f32.mrf.mxu3 }
  0xee   : > { %v4201_v63 = vadd.f32 %v1696_v23, %v1648_v40  ;;  %v241_v23 = vand.u32 2147483647, %v231_v10  ;;  %2140 = vmatpush.bf16.msrb.mxu3 %v916_v4  ;;  %v294_v10 = vsub.f32 1.0, %v284_v33 }
  0xef   : > { %v1631_v24 = vpop.f32.mrf.mxu0 }
  0xf0   : > { %v1679_v53 = vpop.f32.mrf.mxu1  ;;  %v4249_v15 = vmax.f32 %v294_v10, 0.0 }
  0xf1   : > { %v4219_v40 = vadd.f32 %v1679_v53, %v1631_v24  ;;  %1746 = vmatmul.bf16.gmra.mxu2 %v4191_v6  ;;  %v4239_v24 = vperm.slane %v5460_v16, 1  ;;  %v1152_v53 = vld [vmem:[#allocation2 + $0x270] sm:$0xff]  ;;  %v1405_v16 = vunpack.c.l.b16 %v1153_v62 }
  0xf2   : > { %1842 = vmatmul.bf16.gmra.mxu0 %v4193_v42  ;;  %1794 = vmatmul.bf16.gmra.mxu3 %v4203_v54  ;;  %v251_v42 = vsub.f32 1.0, %v241_v23  ;;  %v286_v54 = vand.u32 2147483647, %v276_v50  ;;  %v1403_v51 = vunpack.c.l.b16 %v1152_v53 }
  0xf3   : > { %1890 = vmatmul.bf16.gmra.mxu1 %v4205_v37  ;;  %v252_v37 = vsub.f32 1.0, %v242_v29  ;;  %v632_v20 = vmul.f32 %v4239_v24, %v4199_v60  ;;  %v634_v11 = vmul.f32 %v4239_v24, %v4235_v2  ;;  %v4260_v14 = vpack.c.b16 %v1405_v16, %v1405_v16 }
  0xf4   : > { %v1651_v35 = vpop.f32.mrf.mxu2  ;;  %v261_v44 = vmax.f32 %v251_v42, 0.0  ;;  %v296_v29 = vsub.f32 1.0, %v286_v54  ;;  %v5462_v42 = vrot.slane %v3608_v3, 1 }
  0xf5   : > { %v1699_v17 = vpop.f32.mrf.mxu3  ;;  %v262_v19 = vmax.f32 %v252_v37, 0.0  ;;  %v932_v50 = vpack.c.bf16 %v634_v11, %v632_v20  ;;  %5465 = vst [vmem:[#allocation75_spill] sm:$0xff] %v4260_v14 }
  0xf6   : > { %v4241_v26 = vadd.f32 %v1699_v17, %v1651_v35  ;;  %v1404_v35 = vunpack.c.h.b16 %v1152_v53  ;;  %v1406_v17 = vunpack.c.h.b16 %v1153_v62  ;;  %v4256_v37 = vperm.slane %v5462_v42, 1 }
  0xf7   : > { %v1633_v1 = vpop.f32.mrf.mxu0  ;;  %v369_v23 = vrot.slane %v262_v19, 7  ;;  %2188 = vmatpush.bf16.msrb.mxu0 %v932_v50 }
  0xf8   : > { %v1681_v56 = vpop.f32.mrf.mxu1  ;;  %5463 = vst [vmem:[#allocation73_spill] sm:$0xff] %v4256_v37  ;;  %v4267_v62 = vpack.c.b16 %v1404_v35, %v1404_v35  ;;  %v4269_v10 = vpack.c.b16 %v1406_v17, %v1406_v17  ;;  %v664_v11 = vmul.f32 %v4256_v37, %v4235_v2  ;;  %v666_v35 = vmul.f32 %v4256_v37, %v4249_v15 }
  0xf9   : > { %v4243_v49 = vadd.f32 %v1681_v56, %v1633_v1  ;;  %v4252_v4 = vsel %vm370_vm6, %v261_v44, %v369_v23  ;;  %v4258_v56 = vpack.c.b16 %v1403_v51, %v1403_v51  ;;  %v4271_v44 = vmax.f32 %v296_v29, 0.0 }
  0xfa   : > { %5461 = vst [vmem:[#allocation72_spill] sm:$0xff] %v4252_v4  ;;  %v4263_v53 = vperm.slane %v4252_v4, 0  ;;  %v948_v23 = vpack.c.bf16 %v666_v35, %v664_v11  ;;  %v3219_v35 = vld [vmem:[#allocation2 + $0x1c] sm:$0xf]  ;;  %v3220_v4 = vld [vmem:[#allocation2 + $0x24] sm:$0xf] }
  0xfb   : > { %5464 = vst [vmem:[#allocation74_spill] sm:$0xff] %v4258_v56  ;;  %v598_v29 = vmul.f32 %v4211_v41, %v4271_v44 }
  0xfc   : > { %v1653_v33 = vpop.f32.mrf.mxu2  ;;  %5466 = vst [vmem:[#allocation76_spill] sm:$0xff] %v4267_v62  ;;  %v899_v51 = vmul.f32 %v4263_v53, %v3490_v48  ;;  %v596_v48 = vmul.f32 %v4211_v41, %v4249_v15  ;;  %2236 = vmatpush.bf16.msrb.mxu1 %v948_v23  ;;  %v2924_v23 = vld [vmem:[#allocation2 + $0x4c] sm:$0xf0] }
  0xfd   : > { %v1701_v1 = vpop.f32.mrf.mxu3  ;;  %5467 = vst [vmem:[#allocation77_spill] sm:$0xff] %v4269_v10  ;;  %v4311_v34 = vor.u32 %v3220_v4, %v2924_v23  ;;  %v592_v4 = vmul.f32 %v4211_v41, %v4199_v60 }
  0xfe   : > { %v4265_v19 = vadd.f32 %v1701_v1, %v1653_v33  ;;  %v1065_v16 = vpack.c.bf16 %v899_v51, %v899_v51  ;;  %v914_v42 = vpack.c.bf16 %v598_v29, %v596_v48 }
  0xff   : > { %v1636_v54 = vpop.f32.mrf.mxu0  ;;  %5472 = vst [vmem:[#allocation81_spill] sm:$0xff] %v4311_v34 }
 0x100   : > { %v1684_v3 = vpop.f32.mrf.mxu1  ;;  %v1607_v17 = vsel %vm1605_vm8, %v1065_v16, 0  ;;  %2141 = vmatpush.bf16.msrb.mxu3 %v914_v42  ;;  %v5468_v16 = vrot.slane %v3510_v52, 5 }
 0x101   : > { %v4275_v20 = vadd.f32 %v1684_v3, %v1636_v54  ;;  %1751 = vmatmul.bf16.gmra.mxu2 %v4258_v56  ;;  %v3225_v56 = vld [vmem:[#allocation2 + $0x48] sm:$0xf0] }
 0x102   : > { %1847 = vmatmul.bf16.gmra.mxu0 %v4260_v14  ;;  %1799 = vmatmul.bf16.gmra.mxu3 %v4267_v62  ;;  %v2914_v14 = vld [vmem:[#allocation2 + $0x18] sm:$0xf]  ;;  %v4296_v11 = vperm.slane %v5468_v16, 1  ;;  %v2922_v62 = vld [vmem:[#allocation2 + $0x20] sm:$0xf] }
 0x103   : > { %1895 = vmatmul.bf16.gmra.mxu1 %v4269_v10  ;;  %2097 = vmatpush.bf16.msrb.mxu2 %v1607_v17  ;;  %v3224_v10 = vld [vmem:[#allocation2 + $0x40] sm:$0xf0]  ;;  %v2916_v17 = vld [vmem:[#allocation2 + $0x44] sm:$0xf0] }
 0x104   : > { %v1656_v50 = vpop.f32.mrf.mxu2  ;;  %v628_v48 = vmul.f32 %v4296_v11, %v4271_v44  ;;  %v630_v29 = vmul.f32 %v4296_v11, %v4207_v22  ;;  %v4305_v52 = vor.u32 %v3224_v10, %v2914_v14  ;;  %v4309_v6 = vor.u32 %v3219_v35, %v2916_v17 }
 0x105   : > { %v1704_v33 = vpop.f32.mrf.mxu3  ;;  %v662_v14 = vmul.f32 %v4256_v37, %v4199_v60 }
 0x106   : > { %v4290_v1 = vadd.f32 %v1704_v33, %v1656_v50  ;;  %v4303_v33 = vperm.slane %v3618_v7, 1  ;;  %5469 = vst [vmem:[#allocation78_spill] sm:$0xff] %v4305_v52 }
 0x107   : > { %v1638_v54 = vpop.f32.mrf.mxu0  ;;  %5471 = vst [vmem:[#allocation80_spill] sm:$0xff] %v4309_v6 }
 0x108   : > { %v1686_v3 = vpop.f32.mrf.mxu1  ;;  %v660_v7 = vmul.f32 %v4303_v33, %v4207_v22 }
 0x109   : > { %v4292_v51 = vadd.f32 %v1686_v3, %v1638_v54  ;;  %v4307_v54 = vor.u32 %v3225_v56, %v2922_v62  ;;  %v930_v3 = vpack.c.bf16 %v630_v29, %v628_v48  ;;  %v594_v56 = vmul.f32 %v4211_v41, %v4235_v2 }
 0x10a   : > { %v946_v62 = vpack.c.bf16 %v662_v14, %v660_v7  ;;  %v626_v41 = vmul.f32 %v4296_v11, %v4249_v15  ;;  %v3230_v7 = vld [vmem:[#allocation2 + $0x74] sm:$0xf]  ;;  %v2966_v14 = vld [vmem:[#allocation2 + $0x78] sm:$0xf] }
 0x10b   : > { %5470 = vst [vmem:[#allocation79_spill] sm:$0xff] %v4307_v54  ;;  %2189 = vmatpush.bf16.msrb.mxu0 %v930_v3  ;;  %v912_v35 = vpack.c.bf16 %v594_v56, %v592_v4  ;;  %v2958_v3 = vld [vmem:[#allocation2 + $0x70] sm:$0xf]  ;;  %v3236_v4 = vld [vmem:[#allocation2 + $0xa0] sm:$0xf0] }
 0x10c   : > { %v1658_v50 = vpop.f32.mrf.mxu2  ;;  %2237 = vmatpush.bf16.msrb.mxu1 %v946_v62  ;;  %v2960_v56 = vld [vmem:[#allocation2 + $0x9c] sm:$0xf0] }
 0x10d   : > { %v1706_v42 = vpop.f32.mrf.mxu3  ;;  %2142 = vmatpush.bf16.msrb.mxu3 %v912_v35  ;;  %v4337_v37 = vor.u32 %v3230_v7, %v2960_v56 }
 0x10f   : > { %v1813_v16 = vpop.f32.mrf.mxu0 }
 0x110   : > { %v1861_v5 = vpop.f32.mrf.mxu1 }
 0x111   : > { %1908 = vmatmul.bf16.vlgmr.msra.gmra.mxu2 %v4305_v52 }
 0x112   : > { %2004 = vmatmul.bf16.vlgmr.msra.gmra.mxu0 %v4307_v54  ;;  %1956 = vmatmul.bf16.vlgmr.msra.gmra.mxu3 %v4309_v6  ;;  %v3235_v54 = vld [vmem:[#allocation2 + $0x98] sm:$0xf0] }
 0x113   : > { %2052 = vmatmul.bf16.vlgmr.msra.gmra.mxu1 %v4311_v34  ;;  %v624_v34 = vmul.f32 %v4296_v11, %v4235_v2 }
 0x114   : > { %v1717_v10 = vpop.f32.mrf.mxu2 }
 0x115   : > { %v1718_v17 = vadd.f32 %v1717_v10, %v4116_v36  ;;  %v1765_v23 = vpop.f32.mrf.mxu3  ;;  %v3231_v36 = vld [vmem:[#allocation2 + $0x7c] sm:$0xf]  ;;  %v2968_v10 = vld [vmem:[#allocation2 + $0xa4] sm:$0xf0]  ;;  %v928_v62 = vpack.c.bf16 %v626_v41, %v624_v34  ;;  %v897_v34 = vmul.f32 %v4263_v53, %v3488_v47 }
 0x116   : > { %v4339_v27 = vor.u32 %v3231_v36, %v2968_v10 }
 0x117   : > { %v1815_v48 = vpop.f32.mrf.mxu0  ;;  %v1766_v29 = vadd.f32 %v1765_v23, %v1718_v17  ;;  %v4333_v23 = vor.u32 %v3235_v54, %v2958_v3  ;;  %2190 = vmatpush.bf16.msrb.mxu0 %v928_v62  ;;  %v5474_v54 = vrot.slane %v3521_v58, 1  ;;  %v3246_v62 = vld [vmem:[#allocation2 + $0xf0] sm:$0xf0] }
 0x118   : > { %v1863_v50 = vpop.f32.mrf.mxu1 }
 0x119   : > { %v1814_v42 = vadd.f32 %v1813_v16, %v1766_v29  ;;  %v4335_v29 = vor.u32 %v3236_v4, %v2966_v14 }
 0x11b   : > { %v4330_v6 = vadd.f32 %v1861_v5, %v1814_v42  ;;  %5473 = vst [vmem:[#allocation82_spill] sm:$0xff] %v4335_v29  ;;  %v895_v5 = vmul.f32 %v4263_v53, %v3486_v46 }
 0x11c   : > { %v1719_v35 = vpop.f32.mrf.mxu2 }
 0x11d   : > { %v1720_v16 = vadd.f32 %v1719_v35, %v4141_v61  ;;  %v1767_v17 = vpop.f32.mrf.mxu3  ;;  %v656_v61 = vmul.f32 %v4303_v33, %v4249_v15  ;;  %v1063_v42 = vpack.c.bf16 %v897_v34, %v895_v5  ;;  %v5475_v35 = vrot.slane %v3539_v0, 4  ;;  %v3241_v5 = vld [vmem:[#allocation2 + $0xcc] sm:$0xf]  ;;  %v3247_v34 = vld [vmem:[#allocation2 + $0xf8] sm:$0xf0] }
 0x11f   : > { %v1818_v52 = vpop.f32.mrf.mxu0  ;;  %v1768_v32 = vadd.f32 %v1767_v17, %v1720_v16  ;;  %2098 = vmatpush.bf16.msrb.mxu2 %v1063_v42  ;;  %v4366_v16 = vperm.slane %v5475_v35, 1  ;;  %v622_v17 = vmul.f32 %v4296_v11, %v4199_v60 }
 0x120   : > { %v1866_v39 = vpop.f32.mrf.mxu1 }
 0x121   : > { %v1816_v55 = vadd.f32 %v1815_v48, %v1768_v32  ;;  %1913 = vmatmul.bf16.gmra.mxu2 %v4333_v23  ;;  %v658_v32 = vmul.f32 %v4303_v33, %v4271_v44  ;;  %v4355_v48 = vperm.slane %v5474_v54, 1  ;;  %v3012_v54 = vld [vmem:[#allocation2 + $0xfc] sm:$0xf0]  ;;  %v620_v42 = vmul.f32 %v4366_v16, %v4207_v22 }
 0x122   : > { %2009 = vmatmul.bf16.gmra.mxu0 %v4335_v29  ;;  %1961 = vmatmul.bf16.gmra.mxu3 %v4337_v37 }
 0x123   : > { %2057 = vmatmul.bf16.gmra.mxu1 %v4339_v27  ;;  %v4357_v3 = vadd.f32 %v1863_v50, %v1816_v55  ;;  %v944_v41 = vpack.c.bf16 %v658_v32, %v656_v61  ;;  %v588_v47 = vmul.f32 %v4355_v48, %v4271_v44  ;;  %v590_v7 = vmul.f32 %v4355_v48, %v4207_v22  ;;  %v3002_v50 = vld [vmem:[#allocation2 + $0xc8] sm:$0xf]  ;;  %v3004_v61 = vld [vmem:[#allocation2 + $0xf4] sm:$0xf0]  ;;  %v3242_v32 = vld [vmem:[#allocation2 + $0xd4] sm:$0xf] }
 0x124   : > { %v1722_v46 = vpop.f32.mrf.mxu2  ;;  %v926_v11 = vpack.c.bf16 %v622_v17, %v620_v42  ;;  %v3046_v42 = vld [vmem:[#allocation2 + $0x120] sm:$0xf] }
 0x125   : > { %v1723_v14 = vadd.f32 %v1722_v46, %v4163_v8  ;;  %v1770_v4 = vpop.f32.mrf.mxu3  ;;  %2238 = vmatpush.bf16.msrb.mxu1 %v944_v41  ;;  %v910_v58 = vpack.c.bf16 %v590_v7, %v588_v47  ;;  %v3010_v8 = vld [vmem:[#allocation2 + $0xd0] sm:$0xf]  ;;  %v4375_v47 = vor.u32 %v3246_v62, %v3002_v50 }
 0x126   : > { %v4377_v7 = vor.u32 %v3247_v34, %v3010_v8  ;;  %2191 = vmatpush.bf16.msrb.mxu0 %v926_v11  ;;  %v3258_v11 = vld [vmem:[#allocation2 + $0x150] sm:$0xf0] }
 0x127   : > { %v1820_v56 = vpop.f32.mrf.mxu0  ;;  %v1771_v36 = vadd.f32 %v1770_v4, %v1723_v14  ;;  %2143 = vmatpush.bf16.msrb.mxu3 %v910_v58  ;;  %v4379_v4 = vor.u32 %v3241_v5, %v3004_v61  ;;  %v4381_v58 = vor.u32 %v3242_v32, %v3012_v54 }
 0x128   : > { %v1868_v10 = vpop.f32.mrf.mxu1  ;;  %5476 = vst [vmem:[#allocation83_spill] sm:$0xff] %v4377_v7 }
 0x129   : > { %v1819_v55 = vadd.f32 %v1818_v52, %v1771_v36  ;;  %5477 = vst [vmem:[#allocation84_spill] sm:$0xff] %v4381_v58 }
 0x12b   : > { %v4372_v46 = vadd.f32 %v1866_v39, %v1819_v55  ;;  %v652_v39 = vmul.f32 %v4303_v33, %v4199_v60  ;;  %v584_v55 = vmul.f32 %v4355_v48, %v4235_v2 }
 0x12c   : > { %v1724_v52 = vpop.f32.mrf.mxu2 }
 0x12d   : > { %v1725_v41 = vadd.f32 %v1724_v52, %v4185_v12  ;;  %v1772_v0 = vpop.f32.mrf.mxu3  ;;  %v654_v12 = vmul.f32 %v4303_v33, %v4235_v2  ;;  %v3257_v52 = vld [vmem:[#allocation2 + $0x148] sm:$0xf0] }
 0x12f   : > { %v1823_v14 = vpop.f32.mrf.mxu0  ;;  %v1773_v36 = vadd.f32 %v1772_v0, %v1725_v41  ;;  %v942_v50 = vpack.c.bf16 %v654_v12, %v652_v39  ;;  %v616_v41 = vmul.f32 %v4366_v16, %v4249_v15  ;;  %v3054_v0 = vld [vmem:[#allocation2 + $0x128] sm:$0xf]  ;;  %v3056_v39 = vld [vmem:[#allocation2 + $0x154] sm:$0xf0] }
 0x130   : > { %v1871_v35 = vpop.f32.mrf.mxu1 }
 0x131   : > { %v1821_v29 = vadd.f32 %v1820_v56, %v1773_v36  ;;  %1918 = vmatmul.bf16.gmra.mxu2 %v4375_v47  ;;  %v586_v56 = vmul.f32 %v4355_v48, %v4249_v15  ;;  %2239 = vmatpush.bf16.msrb.mxu1 %v942_v50  ;;  %v3253_v36 = vld [vmem:[#allocation2 + $0x12c] sm:$0xf] }
 0x132   : > { %2014 = vmatmul.bf16.gmra.mxu0 %v4377_v7  ;;  %1966 = vmatmul.bf16.gmra.mxu3 %v4379_v4  ;;  %v4414_v7 = vor.u32 %v3253_v36, %v3056_v39 }
 0x133   : > { %2062 = vmatmul.bf16.gmra.mxu1 %v4381_v58  ;;  %v4395_v62 = vadd.f32 %v1868_v10, %v1821_v29  ;;  %v908_v34 = vpack.c.bf16 %v586_v56, %v584_v55  ;;  %v618_v29 = vmul.f32 %v4366_v16, %v4271_v44  ;;  %v3252_v10 = vld [vmem:[#allocation2 + $0x124] sm:$0xf] }
 0x134   : > { %v1727_v17 = vpop.f32.mrf.mxu2  ;;  %5480 = vst [vmem:[#allocation87_spill] sm:$0xff] %v4414_v7  ;;  %v5570_v58 = vld [vmem:[#allocation51_spill] sm:$0xff] }
 0x135   : > { %v1728_v5 = vadd.f32 %v1727_v17, %v4219_v40  ;;  %v1775_v8 = vpop.f32.mrf.mxu3  ;;  %2144 = vmatpush.bf16.msrb.mxu3 %v908_v34  ;;  %v3048_v40 = vld [vmem:[#allocation2 + $0x14c] sm:$0xf0]  ;;  %v924_v12 = vpack.c.bf16 %v618_v29, %v616_v41  ;;  %v4405_v17 = vor.u32 %v3257_v52, %v3046_v42  ;;  %v582_v52 = vmul.f32 %v4355_v48, %v4199_v60 }
 0x137   : > { %v1825_v33 = vpop.f32.mrf.mxu0  ;;  %v1776_v61 = vadd.f32 %v1775_v8, %v1728_v5  ;;  %v4407_v5 = vor.u32 %v3258_v11, %v3054_v0  ;;  %2192 = vmatpush.bf16.msrb.mxu0 %v924_v12  ;;  %v4410_v8 = vperm.slane %v3564_v28, 1 }
 0x138   : > { %v1873_v32 = vpop.f32.mrf.mxu1 }
 0x139   : > { %v1824_v54 = vadd.f32 %v1823_v14, %v1776_v61  ;;  %5478 = vst [vmem:[#allocation85_spill] sm:$0xff] %v4407_v5  ;;  %v4412_v61 = vor.u32 %v3252_v10, %v3048_v40  ;;  %v580_v28 = vmul.f32 %v4410_v8, %v4207_v22 }
 0x13b   : > { %v4402_v55 = vadd.f32 %v1871_v35, %v1824_v54  ;;  %5479 = vst [vmem:[#allocation86_spill] sm:$0xff] %v4412_v61  ;;  %v906_v0 = vpack.c.bf16 %v582_v52, %v580_v28  ;;  %v3269_v28 = vld [vmem:[#allocation2 + $0x1a8] sm:$0xf0]  ;;  %v614_v52 = vmul.f32 %v4366_v16, %v4235_v2 }
 0x13c   : > { %v1729_v50 = vpop.f32.mrf.mxu2 }
 0x13d   : > { %v1730_v14 = vadd.f32 %v1729_v50, %v4243_v49  ;;  %v1777_v56 = vpop.f32.mrf.mxu3  ;;  %v5481_v49 = vrot.slane %v3732_v31, 7  ;;  %2145 = vmatpush.bf16.msrb.mxu3 %v906_v0 }
 0x13f   : > { %v1828_v34 = vpop.f32.mrf.mxu0  ;;  %v1778_v41 = vadd.f32 %v1777_v56, %v1730_v14  ;;  %v4420_v42 = vperm.slane %v5481_v49, 1  ;;  %v3090_v14 = vld [vmem:[#allocation2 + $0x178] sm:$0xf]  ;;  %v3268_v56 = vld [vmem:[#allocation2 + $0x1a0] sm:$0xf0] }
 0x140   : > { %v1876_v35 = vpop.f32.mrf.mxu1  ;;  %v3098_v49 = vld [vmem:[#allocation2 + $0x180] sm:$0xf] }
 0x141   : > { %v1826_v54 = vadd.f32 %v1825_v33, %v1778_v41  ;;  %1923 = vmatmul.bf16.gmra.mxu2 %v4405_v17  ;;  %v648_v33 = vmul.f32 %v4420_v42, %v4271_v44  ;;  %v650_v29 = vmul.f32 %v4420_v42, %v4207_v22  ;;  %v891_v41 = vmul.f32 %v4263_v53, %v3484_v45 }
 0x142   : > { %2019 = vmatmul.bf16.gmra.mxu0 %v4407_v5  ;;  %1971 = vmatmul.bf16.gmra.mxu3 %v4412_v61 }
 0x143   : > { %2067 = vmatmul.bf16.gmra.mxu1 %v4414_v7  ;;  %v4432_v10 = vadd.f32 %v1873_v32, %v1826_v54  ;;  %v940_v36 = vpack.c.bf16 %v650_v29, %v648_v33  ;;  %v893_v32 = vmul.f32 %v4263_v53, %v3516_v57  ;;  %v612_v54 = vmul.f32 %v4366_v16, %v4199_v60  ;;  %v3092_v33 = vld [vmem:[#allocation2 + $0x1a4] sm:$0xf0]  ;;  %v3264_v29 = vld [vmem:[#allocation2 + $0x184] sm:$0xf] }
 0x144   : > { %v1732_v31 = vpop.f32.mrf.mxu2  ;;  %v4446_v53 = vor.u32 %v3268_v56, %v3090_v14  ;;  %v576_v14 = vmul.f32 %v4410_v8, %v4249_v15 }
 0x145   : > { %v1733_v11 = vadd.f32 %v1732_v31, %v4275_v20  ;;  %v1780_v40 = vpop.f32.mrf.mxu3  ;;  %2240 = vmatpush.bf16.msrb.mxu1 %v940_v36  ;;  %v3263_v20 = vld [vmem:[#allocation2 + $0x17c] sm:$0xf]  ;;  %v1061_v31 = vpack.c.bf16 %v893_v32, %v891_v41  ;;  %v922_v45 = vpack.c.bf16 %v614_v52, %v612_v54  ;;  %v4448_v36 = vor.u32 %v3269_v28, %v3098_v49 }
 0x146   : > { %v4450_v5 = vor.u32 %v3263_v20, %v3092_v33 }
 0x147   : > { %v1830_v39 = vpop.f32.mrf.mxu0  ;;  %v1781_v12 = vadd.f32 %v1780_v40, %v1733_v11  ;;  %5482 = vst [vmem:[#allocation88_spill] sm:$0xff] %v4448_v36  ;;  %2099 = vmatpush.bf16.msrb.mxu2 %v1061_v31  ;;  %2193 = vmatpush.bf16.msrb.mxu0 %v922_v45  ;;  %v3279_v31 = vld [vmem:[#allocation2 + $0x1f8] sm:$0xf0]  ;;  %v3274_v45 = vld [vmem:[#allocation2 + $0x1d4] sm:$0xf] }
 0x148   : > { %v1878_v50 = vpop.f32.mrf.mxu1  ;;  %5483 = vst [vmem:[#allocation89_spill] sm:$0xff] %v4450_v5 }
 0x149   : > { %v1829_v48 = vadd.f32 %v1828_v34, %v1781_v12  ;;  %v3100_v34 = vld [vmem:[#allocation2 + $0x1ac] sm:$0xf0] }
 0x14a   : > { %v4452_v16 = vor.u32 %v3264_v29, %v3100_v34  ;;  %v3134_v34 = vld [vmem:[#allocation2 + $0x1d0] sm:$0xf] }
 0x14b   : > { %v4443_v0 = vadd.f32 %v1876_v35, %v1829_v48  ;;  %v646_v48 = vmul.f32 %v4420_v42, %v4249_v15 }
 0x14c   : > { %v1734_v11 = vpop.f32.mrf.mxu2  ;;  %5484 = vst [vmem:[#allocation90_spill] sm:$0xff] %v4452_v16 }
 0x14d   : > { %v1735_v40 = vadd.f32 %v1734_v11, %v4292_v51  ;;  %v1782_v57 = vpop.f32.mrf.mxu3  ;;  %v644_v51 = vmul.f32 %v4420_v42, %v4235_v2  ;;  %v608_v11 = vmul.f32 %v4215_v9, %v4271_v44 }
 0x14f   : > { %v1833_v12 = vpop.f32.mrf.mxu0  ;;  %v1783_v7 = vadd.f32 %v1782_v57, %v1735_v40  ;;  %v938_v56 = vpack.c.bf16 %v646_v48, %v644_v51  ;;  %v3142_v40 = vld [vmem:[#allocation2 + $0x1d8] sm:$0xf]  ;;  %v3280_v57 = vld [vmem:[#allocation2 + $0x200] sm:$0xf0]  ;;  %v3144_v51 = vld [vmem:[#allocation2 + $0x204] sm:$0xf0] }
 0x150   : > { %v1881_v41 = vpop.f32.mrf.mxu1 }
 0x151   : > { %v1831_v35 = vadd.f32 %v1830_v39, %v1783_v7  ;;  %1928 = vmatmul.bf16.gmra.mxu2 %v4446_v53  ;;  %v578_v7 = vmul.f32 %v4410_v8, %v4271_v44  ;;  %2241 = vmatpush.bf16.msrb.mxu1 %v938_v56 }
 0x152   : > { %2024 = vmatmul.bf16.gmra.mxu0 %v4448_v36  ;;  %1976 = vmatmul.bf16.gmra.mxu3 %v4450_v5 }
 0x153   : > { %2072 = vmatmul.bf16.gmra.mxu1 %v4452_v16  ;;  %v4466_v39 = vadd.f32 %v1878_v50, %v1831_v35  ;;  %v904_v49 = vpack.c.bf16 %v578_v7, %v576_v14  ;;  %v610_v50 = vmul.f32 %v4215_v9, %v4207_v22  ;;  %v3275_v35 = vld [vmem:[#allocation2 + $0x1dc] sm:$0xf] }
 0x154   : > { %v1737_v32 = vpop.f32.mrf.mxu2 }
 0x155   : > { %v1738_v54 = vadd.f32 %v1737_v32, %v4138_v38  ;;  %v1785_v20 = vpop.f32.mrf.mxu3  ;;  %2146 = vmatpush.bf16.msrb.mxu3 %v904_v49  ;;  %v3136_v38 = vld [vmem:[#allocation2 + $0x1fc] sm:$0xf0]  ;;  %v920_v48 = vpack.c.bf16 %v610_v50, %v608_v11  ;;  %v4476_v32 = vor.u32 %v3279_v31, %v3134_v34 }
 0x156   : > { %v4480_v49 = vor.u32 %v3274_v45, %v3136_v38 }
 0x157   : > { %v1835_v28 = vpop.f32.mrf.mxu0  ;;  %v1786_v52 = vadd.f32 %v1785_v20, %v1738_v54  ;;  %v4478_v54 = vor.u32 %v3280_v57, %v3142_v40  ;;  %2194 = vmatpush.bf16.msrb.mxu0 %v920_v48  ;;  %v604_v48 = vmul.f32 %v4215_v9, %v4235_v2 }
 0x158   : > { %v1883_v33 = vpop.f32.mrf.mxu1  ;;  %5486 = vst [vmem:[#allocation92_spill] sm:$0xff] %v4480_v49 }
 0x159   : > { %v1834_v29 = vadd.f32 %v1833_v12, %v1786_v52  ;;  %5485 = vst [vmem:[#allocation91_spill] sm:$0xff] %v4478_v54  ;;  %v4482_v52 = vor.u32 %v3275_v35, %v3144_v51  ;;  %v3178_v35 = vld [vmem:[#allocation2 + $0x228] sm:$0xf]  ;;  %v3290_v51 = vld [vmem:[#allocation2 + $0x250] sm:$0xf0] }
 0x15b   : > { %v4473_v14 = vadd.f32 %v1881_v41, %v1834_v29  ;;  %5487 = vst [vmem:[#allocation93_spill] sm:$0xff] %v4482_v52  ;;  %v642_v41 = vmul.f32 %v4420_v42, %v4199_v60  ;;  %v572_v29 = vmul.f32 %v4410_v8, %v4199_v60 }
 0x15c   : > { %v1739_v56 = vpop.f32.mrf.mxu2 }
 0x15d   : > { %v1740_v12 = vadd.f32 %v1739_v56, %v4155_v25  ;;  %v1787_v7 = vpop.f32.mrf.mxu3  ;;  %v640_v25 = vmul.f32 %v4239_v24, %v4207_v22  ;;  %v3291_v56 = vld [vmem:[#allocation2 + $0x258] sm:$0xf0] }
 0x15f   : > { %v1838_v20 = vpop.f32.mrf.mxu0  ;;  %v1788_v36 = vadd.f32 %v1787_v7, %v1740_v12  ;;  %v3180_v12 = vld [vmem:[#allocation2 + $0x254] sm:$0xf0]  ;;  %v3188_v7 = vld [vmem:[#allocation2 + $0x25c] sm:$0xf0] }
 0x160   : > { %v1886_v16 = vpop.f32.mrf.mxu1 }
 0x161   : > { %v1836_v5 = vadd.f32 %v1835_v28, %v1788_v36  ;;  %1933 = vmatmul.bf16.gmra.mxu2 %v4476_v32  ;;  %v574_v36 = vmul.f32 %v4410_v8, %v4235_v2  ;;  %v936_v28 = vpack.c.bf16 %v642_v41, %v640_v25  ;;  %v3285_v8 = vld [vmem:[#allocation2 + $0x22c] sm:$0xf] }
 0x162   : > { %2029 = vmatmul.bf16.gmra.mxu0 %v4478_v54  ;;  %1981 = vmatmul.bf16.gmra.mxu3 %v4480_v49  ;;  %v3237_v54 = vld [vmem:[#allocation2 + $0xa8] sm:$0xf0] }
 0x163   : > { %2077 = vmatmul.bf16.gmra.mxu1 %v4482_v52  ;;  %v4496_v34 = vadd.f32 %v1883_v33, %v1836_v5  ;;  %v902_v11 = vpack.c.bf16 %v574_v36, %v572_v29  ;;  %v606_v5 = vmul.f32 %v4215_v9, %v4249_v15  ;;  %v3186_v33 = vld [vmem:[#allocation2 + $0x230] sm:$0xf]  ;;  %v4505_v36 = vor.u32 %v3290_v51, %v3178_v35 }
 0x164   : > { %v1742_v31 = vpop.f32.mrf.mxu2  ;;  %2242 = vmatpush.bf16.msrb.mxu1 %v936_v28  ;;  %v636_v9 = vmul.f32 %v4239_v24, %v4249_v15 }
 0x165   : > { %v1743_v50 = vadd.f32 %v1742_v31, %v4181_v59  ;;  %v1790_v45 = vpop.f32.mrf.mxu3  ;;  %2147 = vmatpush.bf16.msrb.mxu3 %v902_v11  ;;  %v3286_v59 = vld [vmem:[#allocation2 + $0x234] sm:$0xf]  ;;  %v918_v25 = vpack.c.bf16 %v606_v5, %v604_v48  ;;  %v4508_v31 = vor.u32 %v3291_v56, %v3186_v33  ;;  %v638_v11 = vmul.f32 %v4239_v24, %v4271_v44 }
 0x166   : > { %v4524_v35 = vor.u32 %v3286_v59, %v3188_v7  ;;  %v5493_v59 = vrot.slane %v3637_v18, 2 }
 0x167   : > { %v1840_v42 = vpop.f32.mrf.mxu0  ;;  %v1791_v40 = vadd.f32 %v1790_v45, %v1743_v50  ;;  %5488 = vst [vmem:[#allocation94_spill] sm:$0xff] %v4508_v31  ;;  %2195 = vmatpush.bf16.msrb.mxu0 %v918_v25  ;;  %v5489_v50 = vrot.slane %v3613_v43, 4  ;;  %v934_v5 = vpack.c.bf16 %v638_v11, %v636_v9  ;;  %v5494_v25 = vrot.slane %v3642_v21, 3  ;;  %v1154_v9 = vld [vmem:[#allocation2 + $0x280] sm:$0xff] }
 0x168   : > { %v1888_v57 = vpop.f32.mrf.mxu1  ;;  %5492 = vst [vmem:[#allocation96_spill] sm:$0xff] %v4524_v35  ;;  %v4542_v7 = vperm.slane %v5493_v59, 1 }
 0x169   : > { %v1839_v38 = vadd.f32 %v1838_v20, %v1791_v40  ;;  %v4516_v45 = vperm.slane %v5489_v50, 1  ;;  %2243 = vmatpush.bf16.msrb.mxu1 %v934_v5  ;;  %v1407_v5 = vunpack.c.l.b16 %v1154_v9 }
 0x16b   : > { %v4503_v41 = vadd.f32 %v1886_v16, %v1839_v38  ;;  %v5490_v16 = vrot.slane %v3632_v13, 7  ;;  %v696_v43 = vmul.f32 %v4516_v45, %v4249_v15  ;;  %v698_v13 = vmul.f32 %v4516_v45, %v4271_v44 }
 0x16c   : > { %v1744_v29 = vpop.f32.mrf.mxu2 }
 0x16d   : > { %v1745_v20 = vadd.f32 %v1744_v29, %v4201_v63  ;;  %v1792_v28 = vpop.f32.mrf.mxu3  ;;  %v4520_v40 = vperm.slane %v5490_v16, 1  ;;  %v4522_v63 = vor.u32 %v3285_v8, %v3180_v12  ;;  %v964_v12 = vpack.c.bf16 %v698_v13, %v696_v43  ;;  %v1155_v16 = vld [vmem:[#allocation2 + $0x288] sm:$0xff] }
 0x16e   : > { %v4546_v29 = vperm.slane %v5494_v25, 1  ;;  %v1409_v18 = vunpack.c.l.b16 %v1155_v16  ;;  %v760_v43 = vmul.f32 %v4542_v7, %v4207_v22  ;;  %v1408_v13 = vunpack.c.h.b16 %v1154_v9 }
 0x16f   : > { %v1843_v38 = vpop.f32.mrf.mxu0  ;;  %5491 = vst [vmem:[#allocation95_spill] sm:$0xff] %v4522_v63  ;;  %v1793_v51 = vadd.f32 %v1792_v28, %v1745_v20  ;;  %v728_v24 = vmul.f32 %v4520_v40, %v4271_v44  ;;  %2284 = vmatpush.bf16.msra.mxu2 %v964_v12  ;;  %v4556_v25 = vpack.c.b16 %v1407_v5, %v1407_v5 }
 0x170   : > { %v1891_v48 = vpop.f32.mrf.mxu1  ;;  %v762_v21 = vmul.f32 %v4546_v29, %v4199_v60  ;;  %v692_v5 = vmul.f32 %v4516_v45, %v4199_v60 }
 0x171   : > { %v1841_v33 = vadd.f32 %v1840_v42, %v1793_v51  ;;  %1938 = vmatmul.bf16.gmra.mxu2 %v4505_v36  ;;  %v730_v42 = vmul.f32 %v4520_v40, %v4207_v22 }
 0x172   : > { %2034 = vmatmul.bf16.gmra.mxu0 %v4508_v31  ;;  %1986 = vmatmul.bf16.gmra.mxu3 %v4522_v63  ;;  %v752_v31 = vmul.f32 %v4542_v7, %v4199_v60  ;;  %v2974_v63 = vld [vmem:[#allocation2 + $0x80] sm:$0xf] }
 0x173   : > { %2082 = vmatmul.bf16.gmra.mxu1 %v4524_v35  ;;  %v4538_v8 = vadd.f32 %v1888_v57, %v1841_v33  ;;  %v980_v11 = vpack.c.bf16 %v730_v42, %v728_v24  ;;  %v754_v35 = vmul.f32 %v4542_v7, %v4235_v2 }
 0x174   : > { %v1747_v56 = vpop.f32.mrf.mxu2 }
 0x175   : > { %v1748_v20 = vadd.f32 %v1747_v56, %v4241_v26  ;;  %v1795_v28 = vpop.f32.mrf.mxu3  ;;  %2332 = vmatpush.bf16.msra.mxu3 %v980_v11  ;;  %v1410_v26 = vunpack.c.h.b16 %v1155_v16  ;;  %v996_v56 = vpack.c.bf16 %v762_v21, %v760_v43  ;;  %v726_v43 = vmul.f32 %v4520_v40, %v4249_v15 }
 0x177   : > { %v1845_v50 = vpop.f32.mrf.mxu0  ;;  %v1796_v57 = vadd.f32 %v1795_v28, %v1748_v20  ;;  %v4558_v20 = vpack.c.b16 %v1409_v18, %v1409_v18  ;;  %2380 = vmatpush.bf16.msra.mxu0 %v996_v56  ;;  %v4560_v28 = vpack.c.b16 %v1408_v13, %v1408_v13  ;;  %v4562_v11 = vpack.c.b16 %v1410_v26, %v1410_v26 }
 0x178   : > { %v1893_v51 = vpop.f32.mrf.mxu1 }
 0x179   : > { %v1844_v33 = vadd.f32 %v1843_v38, %v1796_v57  ;;  %5495 = vst [vmem:[#allocation97_spill] sm:$0xff] %v4558_v20 }
 0x17a   : > { %5496 = vst [vmem:[#allocation98_spill] sm:$0xff] %v4560_v28 }
 0x17b   : > { %v4553_v59 = vadd.f32 %v1891_v48, %v1844_v33  ;;  %5497 = vst [vmem:[#allocation99_spill] sm:$0xff] %v4562_v11  ;;  %v694_v33 = vmul.f32 %v4516_v45, %v4235_v2 }
 0x17c   : > { %v1749_v24 = vpop.f32.mrf.mxu2 }
 0x17d   : > { %v1750_v42 = vadd.f32 %v1749_v24, %v4265_v19  ;;  %v1797_v12 = vpop.f32.mrf.mxu3  ;;  %v5498_v19 = vrot.slane %v3837_v30, 6  ;;  %v962_v26 = vpack.c.bf16 %v694_v33, %v692_v5  ;;  %v3226_v5 = vld [vmem:[#allocation2 + $0x50] sm:$0xf0] }
 0x17f   : > { %v1848_v38 = vpop.f32.mrf.mxu0  ;;  %v1798_v57 = vadd.f32 %v1797_v12, %v1750_v42  ;;  %v4568_v48 = vperm.slane %v5498_v19, 1  ;;  %2285 = vmatpush.bf16.msra.mxu2 %v962_v26 }
 0x180   : > { %v1896_v9 = vpop.f32.mrf.mxu1 }
 0x181   : > { %v1846_v16 = vadd.f32 %v1845_v50, %v1798_v57  ;;  %1943 = vmatmul.bf16.gmra.mxu2 %v4556_v25  ;;  %v724_v50 = vmul.f32 %v4520_v40, %v4235_v2  ;;  %v792_v18 = vmul.f32 %v4568_v48, %v4199_v60  ;;  %v794_v30 = vmul.f32 %v4568_v48, %v4235_v2 }
 0x182   : > { %2039 = vmatmul.bf16.gmra.mxu0 %v4558_v20  ;;  %1991 = vmatmul.bf16.gmra.mxu3 %v4560_v28  ;;  %v756_v28 = vmul.f32 %v4542_v7, %v4249_v15 }
 0x183   : > { %2087 = vmatmul.bf16.gmra.mxu1 %v4562_v11  ;;  %v4584_v21 = vadd.f32 %v1893_v51, %v1846_v16  ;;  %v1012_v42 = vpack.c.bf16 %v794_v30, %v792_v18  ;;  %v978_v12 = vpack.c.bf16 %v726_v43, %v724_v50  ;;  %v758_v51 = vmul.f32 %v4542_v7, %v4271_v44  ;;  %v2930_v16 = vld [vmem:[#allocation2 + $0x28] sm:$0xf]  ;;  %v5508_v7 = vld [vmem:[#allocation22_spill] sm:$0xff] }
 0x184   : > { %v1752_v13 = vpop.f32.mrf.mxu2  ;;  %v4593_v30 = vor.u32 %v3226_v5, %v2930_v16 }
 0x185   : > { %v1753_v56 = vadd.f32 %v1752_v13, %v4290_v1  ;;  %v1800_v24 = vpop.f32.mrf.mxu3  ;;  %2428 = vmatpush.bf16.msra.mxu1 %v1012_v42  ;;  %2333 = vmatpush.bf16.msra.mxu3 %v978_v12  ;;  %v994_v33 = vpack.c.bf16 %v758_v51, %v756_v28  ;;  %v5500_v13 = vld [vmem:[#allocation36_spill] sm:$0xff]  ;;  %v5502_v28 = vld [vmem:[#allocation14_spill] sm:$0xff]  ;;  %v722_v51 = vmul.f32 %v4520_v40, %v4199_v60 }
 0x186   : > { %v5501_v26 = vrot.slane %v5500_v13, 5  ;;  %v5506_v12 = vld [vmem:[#allocation16_spill] sm:$0xff] }
 0x187   : > { %v1850_v57 = vpop.f32.mrf.mxu0  ;;  %v1801_v19 = vadd.f32 %v1800_v24, %v1753_v56  ;;  %2381 = vmatpush.bf16.msra.mxu0 %v994_v33 }
 0x188   : > { %v1898_v20 = vpop.f32.mrf.mxu1  ;;  %v4600_v56 = vperm.slane %v5501_v26, 1  ;;  %v5507_v57 = vrot.slane %v5506_v12, 6 }
 0x189   : > { %v1849_v11 = vadd.f32 %v1848_v38, %v1801_v19  ;;  %v5499_v38 = vld [vmem:[#allocation15_spill] sm:$0xff] }
 0x18a   : > { %v4610_v19 = vperm.slane %v5507_v57, 1  ;;  %v788_v16 = vmul.f32 %v4600_v56, %v4271_v44  ;;  %v790_v5 = vmul.f32 %v4600_v56, %v4207_v22 }
 0x18b   : > { %v4591_v1 = vadd.f32 %v1896_v9, %v1849_v11  ;;  %v5503_v11 = vld [vmem:[#allocation38_spill] sm:$0xff]  ;;  %v5504_v9 = vld [vmem:[#allocation12_spill] sm:$0xff] }
 0x18c   : > { %v1754_v18 = vpop.f32.mrf.mxu2  ;;  %v5505_v24 = vrot.slane %v5504_v9, 3  ;;  %v1010_v40 = vpack.c.bf16 %v790_v5, %v788_v16 }
 0x18d   : > { %v1802_v50 = vpop.f32.mrf.mxu3 }
 0x18e   : > { %v4606_v42 = vperm.slane %v5505_v24, 1  ;;  %2429 = vmatpush.bf16.msra.mxu1 %v1010_v40 }
 0x18f   : > { %v2005_v20 = vpop.f32.mrf.mxu0 }
 0x190   : > { %v2053_v43 = vpop.f32.mrf.mxu1  ;;  %v688_v18 = vmul.f32 %v4606_v42, %v4271_v44  ;;  %v690_v50 = vmul.f32 %v4606_v42, %v4207_v22 }
 0x191   : > { %3196 = vmatmul.msk.bf16.vlgmr.msrb.gmra.mxu2 %vm1580_vm9, %v4593_v30 }
 0x192   : > { %2196 = vmatmul.bf16.vlgmr.msrb.gmra.mxu0 %v5499_v38  ;;  %2148 = vmatmul.bf16.vlgmr.msrb.gmra.mxu3 %v5502_v28  ;;  %v720_v38 = vmul.f32 %v4610_v19, %v4207_v22 }
 0x193   : > { %2244 = vmatmul.bf16.vlgmr.msrb.gmra.mxu1 %v5503_v11  ;;  %v960_v11 = vpack.c.bf16 %v690_v50, %v688_v18  ;;  %v4632_v18 = vor.u32 %v3237_v54, %v2974_v63  ;;  %v5510_v54 = vld [vmem:[#allocation44_spill] sm:$0xff]  ;;  %v684_v63 = vmul.f32 %v4606_v42, %v4235_v2 }
 0x194   : > { %v1909_v33 = vpop.f32.mrf.mxu2  ;;  %v976_v9 = vpack.c.bf16 %v722_v51, %v720_v38 }
 0x195   : > { %v1910_v13 = vadd.f32 %v1909_v33, %v4330_v6  ;;  %v1957_v26 = vpop.f32.mrf.mxu3  ;;  %2286 = vmatpush.bf16.msra.mxu2 %v960_v11  ;;  %v992_v6 = vpack.c.bf16 %v754_v35, %v752_v31  ;;  %v784_v31 = vmul.f32 %v4600_v56, %v4235_v2  ;;  %v786_v35 = vmul.f32 %v4600_v56, %v4249_v15 }
 0x196   : > { %2334 = vmatpush.bf16.msra.mxu3 %v976_v9 }
 0x197   : > { %v2007_v28 = vpop.f32.mrf.mxu0  ;;  %v1958_v24 = vadd.f32 %v1957_v26, %v1910_v13  ;;  %2382 = vmatpush.bf16.msra.mxu0 %v992_v6  ;;  %v716_v26 = vmul.f32 %v4610_v19, %v4249_v15  ;;  %v1008_v40 = vpack.c.bf16 %v786_v35, %v784_v31 }
 0x198   : > { %v2055_v12 = vpop.f32.mrf.mxu1 }
 0x199   : > { %v2006_v57 = vadd.f32 %v2005_v20, %v1958_v24  ;;  %2430 = vmatpush.bf16.msra.mxu1 %v1008_v40 }
 0x19b   : > { %v4629_v33 = vadd.f32 %v2053_v43, %v2006_v57  ;;  %v686_v43 = vmul.f32 %v4606_v42, %v4249_v15 }
 0x19c   : > { %v1911_v16 = vpop.f32.mrf.mxu2 }
 0x19d   : > { %v1912_v51 = vadd.f32 %v1911_v16, %v4357_v3  ;;  %v1959_v5 = vpop.f32.mrf.mxu3  ;;  %v5509_v3 = vld [vmem:[#allocation20_spill] sm:$0xff]  ;;  %v958_v24 = vpack.c.bf16 %v686_v43, %v684_v63 }
 0x19f   : > { %v2010_v50 = vpop.f32.mrf.mxu0  ;;  %v1960_v20 = vadd.f32 %v1959_v5, %v1912_v51  ;;  %2287 = vmatpush.bf16.msra.mxu2 %v958_v24 }
 0x1a0   : > { %v2058_v38 = vpop.f32.mrf.mxu1 }
 0x1a1   : > { %v2008_v13 = vadd.f32 %v2007_v28, %v1960_v20  ;;  %3197 = vmatmul.msk.bf16.gmra.mxu2 %vm1580_vm9, %v4632_v18  ;;  %v718_v28 = vmul.f32 %v4610_v19, %v4271_v44 }
 0x1a2   : > { %2201 = vmatmul.bf16.gmra.mxu0 %v5508_v7  ;;  %2153 = vmatmul.bf16.gmra.mxu3 %v5509_v3  ;;  %v5511_v3 = vld [vmem:[#allocation21_spill] sm:$0xff] }
 0x1a3   : > { %2249 = vmatmul.bf16.gmra.mxu1 %v5510_v54  ;;  %v4651_v11 = vadd.f32 %v2055_v12, %v2008_v13  ;;  %v974_v16 = vpack.c.bf16 %v718_v28, %v716_v26  ;;  %v5512_v31 = vrot.slane %v5511_v3, 1  ;;  %v3018_v54 = vld [vmem:[#allocation2 + $0xd8] sm:$0xf]  ;;  %v3248_v12 = vld [vmem:[#allocation2 + $0x100] sm:$0xf0]  ;;  %v5517_v3 = vld [vmem:[#allocation26_spill] sm:$0xff] }
 0x1a4   : > { %v1914_v9 = vpop.f32.mrf.mxu2  ;;  %v4665_v28 = vor.u32 %v3248_v12, %v3018_v54  ;;  %v5519_v54 = vld [vmem:[#allocation18_spill] sm:$0xff] }
 0x1a5   : > { %v1915_v57 = vadd.f32 %v1914_v9, %v4372_v46  ;;  %v1962_v6 = vpop.f32.mrf.mxu3  ;;  %2335 = vmatpush.bf16.msra.mxu3 %v974_v16  ;;  %v4656_v35 = vperm.slane %v5512_v31, 1  ;;  %v5514_v16 = vld [vmem:[#allocation28_spill] sm:$0xff]  ;;  %v5518_v31 = vld [vmem:[#allocation49_spill] sm:$0xff]  ;;  %v5520_v12 = vrot.slane %v5519_v54, 2 }
 0x1a6   : > { %5513 = vst [vmem:[#allocation15_spill] sm:$0xff] %v4665_v28 }
 0x1a7   : > { %v2012_v51 = vpop.f32.mrf.mxu0  ;;  %v1963_v5 = vadd.f32 %v1962_v6, %v1915_v57  ;;  %v748_v13 = vmul.f32 %v4656_v35, %v4271_v44  ;;  %v750_v46 = vmul.f32 %v4656_v35, %v4207_v22 }
 0x1a8   : > { %v2060_v20 = vpop.f32.mrf.mxu1 }
 0x1a9   : > { %v2011_v7 = vadd.f32 %v2010_v50, %v1963_v5  ;;  %v990_v50 = vpack.c.bf16 %v750_v46, %v748_v13  ;;  %v5515_v5 = vld [vmem:[#allocation48_spill] sm:$0xff]  ;;  %v4680_v13 = vperm.slane %v5520_v12, 1  ;;  %v712_v46 = vmul.f32 %v4610_v19, %v4199_v60 }
 0x1aa   : > { %v3062_v12 = vld [vmem:[#allocation2 + $0x130] sm:$0xf] }
 0x1ab   : > { %v4662_v63 = vadd.f32 %v2058_v38, %v2011_v7  ;;  %2383 = vmatpush.bf16.msra.mxu0 %v990_v50  ;;  %v5516_v38 = vrot.slane %v5515_v5, 4  ;;  %v680_v50 = vmul.f32 %v4680_v13, %v4207_v22 }
 0x1ac   : > { %v1916_v43 = vpop.f32.mrf.mxu2 }
 0x1ad   : > { %v1917_v26 = vadd.f32 %v1916_v43, %v4395_v62  ;;  %v1964_v40 = vpop.f32.mrf.mxu3  ;;  %v4672_v7 = vperm.slane %v5516_v38, 1  ;;  %v782_v62 = vmul.f32 %v4600_v56, %v4199_v60  ;;  %v714_v43 = vmul.f32 %v4610_v19, %v4235_v2 }
 0x1af   : > { %v2015_v9 = vpop.f32.mrf.mxu0  ;;  %v1965_v24 = vadd.f32 %v1964_v40, %v1917_v26  ;;  %v780_v56 = vmul.f32 %v4672_v7, %v4207_v22 }
 0x1b0   : > { %v2063_v57 = vpop.f32.mrf.mxu1 }
 0x1b1   : > { %v2013_v6 = vadd.f32 %v2012_v51, %v1965_v24  ;;  %3198 = vmatmul.msk.bf16.gmra.mxu2 %vm1580_vm9, %v4665_v28  ;;  %v682_v51 = vmul.f32 %v4606_v42, %v4199_v60  ;;  %v972_v24 = vpack.c.bf16 %v714_v43, %v712_v46  ;;  %v1006_v42 = vpack.c.bf16 %v782_v62, %v780_v56  ;;  %v3259_v46 = vld [vmem:[#allocation2 + $0x158] sm:$0xf0] }
 0x1b2   : > { %2206 = vmatmul.bf16.gmra.mxu0 %v5514_v16  ;;  %2158 = vmatmul.bf16.gmra.mxu3 %v5517_v3 }
 0x1b3   : > { %2254 = vmatmul.bf16.gmra.mxu1 %v5518_v31  ;;  %v4690_v26 = vadd.f32 %v2060_v20, %v2013_v6  ;;  %v956_v3 = vpack.c.bf16 %v682_v51, %v680_v50  ;;  %2336 = vmatpush.bf16.msra.mxu3 %v972_v24  ;;  %v744_v20 = vmul.f32 %v4656_v35, %v4235_v2 }
 0x1b4   : > { %v1919_v40 = vpop.f32.mrf.mxu2  ;;  %2431 = vmatpush.bf16.msra.mxu1 %v1006_v42  ;;  %v746_v6 = vmul.f32 %v4656_v35, %v4249_v15  ;;  %v778_v42 = vmul.f32 %v4672_v7, %v4271_v44 }
 0x1b5   : > { %v1920_v16 = vadd.f32 %v1919_v40, %v4402_v55  ;;  %v1967_v5 = vpop.f32.mrf.mxu3  ;;  %2288 = vmatpush.bf16.msra.mxu2 %v956_v3  ;;  %v4702_v40 = vor.u32 %v3259_v46, %v3062_v12  ;;  %v5524_v3 = vld [vmem:[#allocation55_spill] sm:$0xff] }
 0x1b6   : > { %v988_v43 = vpack.c.bf16 %v746_v6, %v744_v20 }
 0x1b7   : > { %v2017_v38 = vpop.f32.mrf.mxu0  ;;  %v1968_v31 = vadd.f32 %v1967_v5, %v1920_v16  ;;  %5521 = vst [vmem:[#allocation36_spill] sm:$0xff] %v4702_v40  ;;  %v5522_v5 = vld [vmem:[#allocation35_spill] sm:$0xff] }
 0x1b8   : > { %v2065_v54 = vpop.f32.mrf.mxu1  ;;  %2384 = vmatpush.bf16.msra.mxu0 %v988_v43 }
 0x1b9   : > { %v2016_v19 = vadd.f32 %v2015_v9, %v1968_v31  ;;  %v676_v31 = vmul.f32 %v4680_v13, %v4249_v15 }
 0x1bb   : > { %v4699_v55 = vadd.f32 %v2063_v57, %v2016_v19  ;;  %v776_v57 = vmul.f32 %v4672_v7, %v4249_v15  ;;  %v5525_v19 = vld [vmem:[#allocation23_spill] sm:$0xff] }
 0x1bc   : > { %v1921_v62 = vpop.f32.mrf.mxu2  ;;  %v5526_v20 = vrot.slane %v5525_v19, 5 }
 0x1bd   : > { %v1922_v51 = vadd.f32 %v1921_v62, %v4432_v10  ;;  %v1969_v56 = vpop.f32.mrf.mxu3  ;;  %v5523_v10 = vld [vmem:[#allocation31_spill] sm:$0xff]  ;;  %v1004_v12 = vpack.c.bf16 %v778_v42, %v776_v57 }
 0x1be   : > { %v4719_v6 = vperm.slane %v5526_v20, 1  ;;  %v3106_v20 = vld [vmem:[#allocation2 + $0x188] sm:$0xf] }
 0x1bf   : > { %v2020_v50 = vpop.f32.mrf.mxu0  ;;  %v1970_v9 = vadd.f32 %v1969_v56, %v1922_v51  ;;  %2432 = vmatpush.bf16.msra.mxu1 %v1004_v12 }
 0x1c0   : > { %v2068_v24 = vpop.f32.mrf.mxu1  ;;  %v708_v51 = vmul.f32 %v4719_v6, %v4271_v44  ;;  %v710_v56 = vmul.f32 %v4719_v6, %v4207_v22 }
 0x1c1   : > { %v2018_v16 = vadd.f32 %v2017_v38, %v1970_v9  ;;  %3199 = vmatmul.msk.bf16.gmra.mxu2 %vm1580_vm9, %v4702_v40  ;;  %v678_v38 = vmul.f32 %v4680_v13, %v4271_v44  ;;  %v5527_v9 = vld [vmem:[#allocation24_spill] sm:$0xff] }
 0x1c2   : > { %2211 = vmatmul.bf16.gmra.mxu0 %v5522_v5  ;;  %2163 = vmatmul.bf16.gmra.mxu3 %v5523_v10  ;;  %v4728_v5 = vperm.slane %v5527_v9, 1  ;;  %v970_v57 = vpack.c.bf16 %v710_v56, %v708_v51  ;;  %v3270_v9 = vld [vmem:[#allocation2 + $0x1b0] sm:$0xf0] }
 0x1c3   : > { %2259 = vmatmul.bf16.gmra.mxu1 %v5524_v3  ;;  %v4721_v46 = vadd.f32 %v2065_v54, %v2018_v16  ;;  %v954_v62 = vpack.c.bf16 %v678_v38, %v676_v31  ;;  %v742_v38 = vmul.f32 %v4656_v35, %v4199_v60  ;;  %v5529_v35 = vld [vmem:[#allocation13_spill] sm:$0xff] }
 0x1c4   : > { %v1924_v43 = vpop.f32.mrf.mxu2  ;;  %2337 = vmatpush.bf16.msra.mxu3 %v970_v57  ;;  %v740_v31 = vmul.f32 %v4728_v5, %v4207_v22  ;;  %v5531_v57 = vld [vmem:[#allocation59_spill] sm:$0xff] }
 0x1c5   : > { %v1925_v10 = vadd.f32 %v1924_v43, %v4443_v0  ;;  %v1972_v3 = vpop.f32.mrf.mxu3  ;;  %2289 = vmatpush.bf16.msra.mxu2 %v954_v62  ;;  %v4738_v62 = vor.u32 %v3270_v9, %v3106_v20 }
 0x1c6   : > { %v986_v52 = vpack.c.bf16 %v742_v38, %v740_v31  ;;  %v706_v31 = vmul.f32 %v4719_v6, %v4249_v15 }
 0x1c7   : > { %v2022_v19 = vpop.f32.mrf.mxu0  ;;  %v1973_v54 = vadd.f32 %v1972_v3, %v1925_v10  ;;  %5528 = vst [vmem:[#allocation14_spill] sm:$0xff] %v4738_v62  ;;  %v774_v3 = vmul.f32 %v4672_v7, %v4235_v2 }
 0x1c8   : > { %v2070_v16 = vpop.f32.mrf.mxu1  ;;  %2385 = vmatpush.bf16.msra.mxu0 %v986_v52  ;;  %v672_v52 = vmul.f32 %v4680_v13, %v4199_v60 }
 0x1c9   : > { %v2021_v42 = vadd.f32 %v2020_v50, %v1973_v54  ;;  %v704_v54 = vmul.f32 %v4719_v6, %v4235_v2 }
 0x1cb   : > { %v4735_v49 = vadd.f32 %v2068_v24, %v2021_v42  ;;  %v772_v24 = vmul.f32 %v4672_v7, %v4199_v60 }
 0x1cc   : > { %v1926_v0 = vpop.f32.mrf.mxu2 }
 0x1cd   : > { %v1927_v12 = vadd.f32 %v1926_v0, %v4466_v39  ;;  %v1974_v43 = vpop.f32.mrf.mxu3  ;;  %v5530_v39 = vld [vmem:[#allocation11_spill] sm:$0xff]  ;;  %v1002_v42 = vpack.c.bf16 %v774_v3, %v772_v24  ;;  %v736_v24 = vmul.f32 %v4728_v5, %v4249_v15  ;;  %v3281_v3 = vld [vmem:[#allocation2 + $0x208] sm:$0xf0] }
 0x1cf   : > { %v2025_v51 = vpop.f32.mrf.mxu0  ;;  %v1975_v50 = vadd.f32 %v1974_v43, %v1927_v12  ;;  %2433 = vmatpush.bf16.msra.mxu1 %v1002_v42  ;;  %v968_v12 = vpack.c.bf16 %v706_v31, %v704_v54 }
 0x1d0   : > { %v2073_v56 = vpop.f32.mrf.mxu1 }
 0x1d1   : > { %v2023_v10 = vadd.f32 %v2022_v19, %v1975_v50  ;;  %3200 = vmatmul.msk.bf16.gmra.mxu2 %vm1580_vm9, %v4738_v62  ;;  %v674_v19 = vmul.f32 %v4680_v13, %v4235_v2  ;;  %2338 = vmatpush.bf16.msra.mxu3 %v968_v12  ;;  %v5536_v12 = vld [vmem:[#allocation73_spill] sm:$0xff] }
 0x1d2   : > { %2216 = vmatmul.bf16.gmra.mxu0 %v5529_v35  ;;  %2168 = vmatmul.bf16.gmra.mxu3 %v5530_v39 }
 0x1d3   : > { %2264 = vmatmul.bf16.gmra.mxu1 %v5531_v57  ;;  %v4757_v38 = vadd.f32 %v2070_v16, %v2023_v10  ;;  %v952_v20 = vpack.c.bf16 %v674_v19, %v672_v52  ;;  %v738_v16 = vmul.f32 %v4728_v5, %v4271_v44  ;;  %v3150_v10 = vld [vmem:[#allocation2 + $0x1e0] sm:$0xf] }
 0x1d4   : > { %v1929_v7 = vpop.f32.mrf.mxu2  ;;  %v4767_v54 = vor.u32 %v3281_v3, %v3150_v10 }
 0x1d5   : > { %v1930_v9 = vadd.f32 %v1929_v7, %v4473_v14  ;;  %v1977_v0 = vpop.f32.mrf.mxu3  ;;  %2290 = vmatpush.bf16.msra.mxu2 %v952_v20  ;;  %v984_v39 = vpack.c.bf16 %v738_v16, %v736_v24  ;;  %v5533_v20 = vld [vmem:[#allocation19_spill] sm:$0xff]  ;;  %v702_v16 = vmul.f32 %v4719_v6, %v4199_v60  ;;  %v734_v6 = vmul.f32 %v4728_v5, %v4235_v2 }
 0x1d6   : > { %5532 = vst [vmem:[#allocation38_spill] sm:$0xff] %v4767_v54 }
 0x1d7   : > { %v2027_v43 = vpop.f32.mrf.mxu0  ;;  %v1978_v50 = vadd.f32 %v1977_v0, %v1930_v9  ;;  %2386 = vmatpush.bf16.msra.mxu0 %v984_v39  ;;  %v770_v9 = vmul.f32 %v4546_v29, %v4207_v22  ;;  %v5535_v0 = vld [vmem:[#allocation64_spill] sm:$0xff] }
 0x1d8   : > { %v2075_v13 = vpop.f32.mrf.mxu1 }
 0x1d9   : > { %v2026_v35 = vadd.f32 %v2025_v51, %v1978_v50  ;;  %v668_v50 = vmul.f32 %v5536_v12, %v4271_v44 }
 0x1db   : > { %v4764_v57 = vadd.f32 %v2073_v56, %v2026_v35  ;;  %v768_v56 = vmul.f32 %v4546_v29, %v4271_v44  ;;  %v700_v35 = vmul.f32 %v4516_v45, %v4207_v22  ;;  %v732_v45 = vmul.f32 %v4728_v5, %v4199_v60 }
 0x1dc   : > { %v1931_v14 = vpop.f32.mrf.mxu2 }
 0x1dd   : > { %v1932_v52 = vadd.f32 %v1931_v14, %v4496_v34  ;;  %v1979_v19 = vpop.f32.mrf.mxu3  ;;  %v5534_v34 = vld [vmem:[#allocation17_spill] sm:$0xff]  ;;  %v1000_v24 = vpack.c.bf16 %v770_v9, %v768_v56  ;;  %v982_v56 = vpack.c.bf16 %v734_v6, %v732_v45 }
 0x1df   : > { %v2030_v42 = vpop.f32.mrf.mxu0  ;;  %v1980_v51 = vadd.f32 %v1979_v19, %v1932_v52  ;;  %2434 = vmatpush.bf16.msra.mxu1 %v1000_v24  ;;  %v966_v19 = vpack.c.bf16 %v702_v16, %v700_v35  ;;  %2387 = vmatpush.bf16.msra.mxu0 %v982_v56  ;;  %v766_v35 = vmul.f32 %v4546_v29, %v4249_v15 }
 0x1e0   : > { %v2078_v31 = vpop.f32.mrf.mxu1 }
 0x1e1   : > { %v2028_v7 = vadd.f32 %v2027_v43, %v1980_v51  ;;  %3201 = vmatmul.msk.bf16.gmra.mxu2 %vm1580_vm9, %v4767_v54  ;;  %v670_v43 = vmul.f32 %v5536_v12, %v4207_v22  ;;  %2339 = vmatpush.bf16.msra.mxu3 %v966_v19 }
 0x1e2   : > { %2221 = vmatmul.bf16.gmra.mxu0 %v5533_v20  ;;  %2173 = vmatmul.bf16.gmra.mxu3 %v5534_v34 }
 0x1e3   : > { %2269 = vmatmul.bf16.gmra.mxu1 %v5535_v0  ;;  %v4786_v10 = vadd.f32 %v2075_v13, %v2028_v7  ;;  %v950_v39 = vpack.c.bf16 %v670_v43, %v668_v50  ;;  %v3194_v13 = vld [vmem:[#allocation2 + $0x238] sm:$0xf]  ;;  %v3292_v7 = vld [vmem:[#allocation2 + $0x260] sm:$0xf0] }
 0x1e4   : > { %v1934_v3 = vpop.f32.mrf.mxu2  ;;  %v4796_v43 = vor.u32 %v3292_v7, %v3194_v13 }
 0x1e5   : > { %v1935_v14 = vadd.f32 %v1934_v3, %v4503_v41  ;;  %v1982_v52 = vpop.f32.mrf.mxu3  ;;  %2291 = vmatpush.bf16.msra.mxu2 %v950_v39 }
 0x1e6   : > { %5537 = vst [vmem:[#allocation12_spill] sm:$0xff] %v4796_v43 }
 0x1e7   : > { %v2032_v51 = vpop.f32.mrf.mxu0  ;;  %v1983_v20 = vadd.f32 %v1982_v52, %v1935_v14  ;;  %v5540_v14 = vld [vmem:[#allocation68_spill] sm:$0xff] }
 0x1e8   : > { %v2080_v34 = vpop.f32.mrf.mxu1  ;;  %v5541_v52 = vld [vmem:[#allocation32_spill] sm:$0xff] }
 0x1e9   : > { %v2031_v0 = vadd.f32 %v2030_v42, %v1983_v20  ;;  %v764_v42 = vmul.f32 %v4546_v29, %v4235_v2  ;;  %v5542_v19 = vrot.slane %v5541_v52, 1 }
 0x1eb   : > { %v4793_v9 = vadd.f32 %v2078_v31, %v2031_v0  ;;  %v998_v3 = vpack.c.bf16 %v766_v35, %v764_v42  ;;  %v5538_v31 = vld [vmem:[#allocation27_spill] sm:$0xff]  ;;  %v4809_v20 = vperm.slane %v5542_v19, 1  ;;  %v5543_v0 = vld [vmem:[#allocation33_spill] sm:$0xff]  ;;  %v1156_v35 = vld [vmem:[#allocation2 + $0x290] sm:$0xf] }
 0x1ec   : > { %v1936_v41 = vpop.f32.mrf.mxu2  ;;  %v5544_v29 = vrot.slane %v5543_v0, 4  ;;  %v1411_v19 = vunpack.c.l.b16 %v1156_v35 }
 0x1ed   : > { %v1937_v12 = vadd.f32 %v1936_v41, %v4538_v8  ;;  %v1984_v50 = vpop.f32.mrf.mxu3  ;;  %v5539_v8 = vld [vmem:[#allocation25_spill] sm:$0xff]  ;;  %2435 = vmatpush.bf16.msra.mxu1 %v998_v3  ;;  %v824_v13 = vmul.f32 %v4809_v20, %v4235_v2  ;;  %v826_v7 = vmul.f32 %v4809_v20, %v4249_v15 }
 0x1ee   : > { %v4813_v45 = vperm.slane %v5544_v29, 1 }
 0x1ef   : > { %v2035_v24 = vpop.f32.mrf.mxu0  ;;  %v1985_v5 = vadd.f32 %v1984_v50, %v1937_v12 }
 0x1f0   : > { %v2083_v16 = vpop.f32.mrf.mxu1  ;;  %v856_v56 = vmul.f32 %v4813_v45, %v4249_v15  ;;  %v858_v41 = vmul.f32 %v4813_v45, %v4271_v44 }
 0x1f1   : > { %v2033_v39 = vadd.f32 %v2032_v51, %v1985_v5  ;;  %3202 = vmatmul.msk.bf16.gmra.mxu2 %vm1580_vm9, %v4796_v43 }
 0x1f2   : > { %2226 = vmatmul.bf16.gmra.mxu0 %v5538_v31  ;;  %2178 = vmatmul.bf16.gmra.mxu3 %v5539_v8  ;;  %v1044_v5 = vpack.c.bf16 %v858_v41, %v856_v56  ;;  %v5545_v31 = vld [vmem:[#allocation34_spill] sm:$0xff]  ;;  %v4837_v41 = vpack.c.b16 %v1411_v19, %v1411_v19  ;;  %v854_v19 = vmul.f32 %v4813_v45, %v4235_v2 }
 0x1f3   : > { %2274 = vmatmul.bf16.gmra.mxu1 %v5540_v14  ;;  %v4815_v6 = vadd.f32 %v2080_v34, %v2033_v39  ;;  %v1028_v34 = vpack.c.bf16 %v826_v7, %v824_v13  ;;  %v5546_v8 = vrot.slane %v5545_v31, 7  ;;  %v5551_v31 = vld [vmem:[#allocation74_spill] sm:$0xff] }
 0x1f4   : > { %v1939_v51 = vpop.f32.mrf.mxu2  ;;  %2524 = vmatpush.bf16.msrb.mxu3 %v1044_v5  ;;  %5547 = vst [vmem:[#allocation16_spill] sm:$0xff] %v4837_v41  ;;  %v5549_v5 = vld [vmem:[#allocation72_spill] sm:$0xff] }
 0x1f5   : > { %v1940_v12 = vadd.f32 %v1939_v51, %v4553_v59  ;;  %v1987_v50 = vpop.f32.mrf.mxu3  ;;  %v4828_v14 = vperm.slane %v5546_v8, 1  ;;  %2476 = vmatpush.bf16.msrb.mxu2 %v1028_v34  ;;  %v5548_v34 = vld [vmem:[#allocation30_spill] sm:$0xff] }
 0x1f7   : > { %v2037_v42 = vpop.f32.mrf.mxu0  ;;  %v1988_v3 = vadd.f32 %v1987_v50, %v1940_v12  ;;  %v888_v0 = vmul.f32 %v4828_v14, %v4271_v44  ;;  %v890_v59 = vmul.f32 %v4828_v14, %v4207_v22 }
 0x1f8   : > { %v2085_v39 = vpop.f32.mrf.mxu1 }
 0x1f9   : > { %v2036_v52 = vadd.f32 %v2035_v24, %v1988_v3  ;;  %v1060_v29 = vpack.c.bf16 %v890_v59, %v888_v0  ;;  %v4843_v3 = vperm.slane %v5549_v5, 1 }
 0x1fb   : > { %v4834_v51 = vadd.f32 %v2083_v16, %v2036_v52  ;;  %2572 = vmatpush.bf16.msrb.mxu0 %v1060_v29  ;;  %v5550_v16 = vld [vmem:[#allocation29_spill] sm:$0xff]  ;;  %v822_v52 = vmul.f32 %v4809_v20, %v4199_v60  ;;  %v900_v0 = vmul.f32 %v4843_v3, %v4207_v22  ;;  %v896_v28 = vmul.f32 %v4843_v3, %v4249_v15 }
 0x1fc   : > { %v1941_v13 = vpop.f32.mrf.mxu2 }
 0x1fd   : > { %v1942_v7 = vadd.f32 %v1941_v13, %v4584_v21  ;;  %v1989_v56 = vpop.f32.mrf.mxu3  ;;  %v5552_v21 = vld [vmem:[#allocation37_spill] sm:$0xff] }
 0x1fe   : > { %v4848_v8 = vperm.slane %v5552_v21, 1 }
 0x1ff   : > { %v2040_v12 = vpop.f32.mrf.mxu0  ;;  %v1990_v50 = vadd.f32 %v1989_v56, %v1942_v7 }
 0x200   : > { %v2088_v24 = vpop.f32.mrf.mxu1  ;;  %v820_v13 = vmul.f32 %v4848_v8, %v4207_v22 }
 0x201   : > { %v2038_v35 = vadd.f32 %v2037_v42, %v1990_v50  ;;  %3203 = vmatmul.msk.bf16.gmra.mxu2 %vm1580_vm9, %v4837_v41  ;;  %v852_v42 = vmul.f32 %v4813_v45, %v4199_v60  ;;  %v5553_v41 = vld [vmem:[#allocation5_spill] sm:$0xff] }
 0x202   : > { %2231 = vmatmul.bf16.gmra.mxu0 %v5548_v34  ;;  %2183 = vmatmul.bf16.gmra.mxu3 %v5550_v16  ;;  %v1066_v34 = vpack.c.bf16 %v900_v0, %v900_v0  ;;  %v1026_v16 = vpack.c.bf16 %v822_v52, %v820_v13  ;;  %v309_v43 = vperm.slane %v5553_v41, 0 }
 0x203   : > { %2279 = vmatmul.bf16.gmra.mxu1 %v5551_v31  ;;  %v4858_v59 = vadd.f32 %v2085_v39, %v2038_v35  ;;  %v1042_v7 = vpack.c.bf16 %v854_v19, %v852_v42  ;;  %v884_v35 = vmul.f32 %v4828_v14, %v4235_v2 }
 0x204   : > { %v1944_v29 = vpop.f32.mrf.mxu2  ;;  %v1610_v54 = vsel %vm1605_vm8, %v1066_v34, 0  ;;  %2477 = vmatpush.bf16.msrb.mxu2 %v1026_v16  ;;  %v4869_v42 = vperm.slane %v309_v43, 0  ;;  %v5556_v34 = vld [vmem:[#allocation40_spill] sm:$0xff]  ;;  %v5558_v43 = vld [vmem:[#allocation39_spill] sm:$0xff]  ;;  %v5559_v16 = vld [vmem:[#allocation78_spill] sm:$0xff] }
 0x205   : > { %v1945_v56 = vadd.f32 %v1944_v29, %v4591_v1  ;;  %v1992_v50 = vpop.f32.mrf.mxu3  ;;  %2525 = vmatpush.bf16.msrb.mxu3 %v1042_v7  ;;  %2625 = vmatpush.bf16.msrb.mxu1 %v1610_v54  ;;  %v886_v1 = vmul.f32 %v4828_v14, %v4249_v15  ;;  %v5554_v54 = vld [vmem:[#allocation6_spill] sm:$0xff] }
 0x207   : > { %v2042_v5 = vpop.f32.mrf.mxu0  ;;  %v1993_v31 = vadd.f32 %v1992_v50, %v1945_v56  ;;  %v1058_v19 = vpack.c.bf16 %v886_v1, %v884_v35  ;;  %v315_v56 = vsub.f32 %v5554_v54, %v4869_v42 }
 0x208   : > { %v2090_v21 = vpop.f32.mrf.mxu1  ;;  %v5557_v5 = vld [vmem:[#allocation41_spill] sm:$0xff] }
 0x209   : > { %v2041_v39 = vadd.f32 %v2040_v12, %v1993_v31  ;;  %2573 = vmatpush.bf16.msrb.mxu0 %v1058_v19  ;;  %v5555_v12 = vld [vmem:[#allocation10_spill] sm:$0xff]  ;;  %v818_v31 = vmul.f32 %v4848_v8, %v4271_v44  ;;  %v325_v1 = vand.u32 2147483647, %v315_v56  ;;  %v5562_v56 = vld [vmem:[#allocation7_spill] sm:$0xff] }
 0x20a   : > { %v317_v50 = vsub.f32 %v5555_v12, %v4869_v42  ;;  %v5560_v21 = vld [vmem:[#allocation42_spill] sm:$0xff] }
 0x20b   : > { %v4871_v52 = vadd.f32 %v2088_v24, %v2041_v39  ;;  %v816_v24 = vmul.f32 %v4848_v8, %v4249_v15  ;;  %v5561_v39 = vrot.slane %v5560_v21, 3  ;;  %v335_v21 = vsub.f32 1.0, %v325_v1 }
 0x20c   : > { %v1946_v0 = vpop.f32.mrf.mxu2  ;;  %v327_v19 = vand.u32 2147483647, %v317_v50  ;;  %v319_v50 = vsub.f32 %v5562_v56, %v4869_v42 }
 0x20d   : > { %v1994_v29 = vpop.f32.mrf.mxu3  ;;  %v4887_v35 = vperm.slane %v5561_v39, 1 }
 0x20e   : > { %v1024_v29 = vpack.c.bf16 %v818_v31, %v816_v24  ;;  %v337_v62 = vsub.f32 1.0, %v327_v19  ;;  %v4898_v31 = vmax.f32 %v335_v21, 0.0  ;;  %v329_v61 = vand.u32 2147483647, %v319_v50  ;;  %v5564_v21 = vld [vmem:[#allocation46_spill] sm:$0xff]  ;;  %v5565_v50 = vld [vmem:[#allocation47_spill] sm:$0xff] }
 0x20f   : > { %v2197_v13 = vpop.f32.mrf.mxu0 }
 0x210   : > { %v2245_v7 = vpop.f32.mrf.mxu1  ;;  %2478 = vmatpush.bf16.msrb.mxu2 %v1024_v29  ;;  %v4900_v40 = vmax.f32 %v337_v62, 0.0 }
 0x211   : > { %2292 = vmatmul.bf16.vlgmr.msra.gmra.mxu2 %v5556_v34  ;;  %v848_v34 = vmul.f32 %v4887_v35, %v4271_v44 }
 0x212   : > { %2388 = vmatmul.bf16.vlgmr.msra.gmra.mxu0 %v5557_v5  ;;  %2340 = vmatmul.bf16.vlgmr.msra.gmra.mxu3 %v5558_v43  ;;  %v850_v5 = vmul.f32 %v4887_v35, %v4207_v22 }
 0x213   : > { %2436 = vmatmul.bf16.vlgmr.msra.gmra.mxu1 %v5559_v16 }
 0x214   : > { %v2101_v0 = vpop.f32.mrf.mxu2  ;;  %v1040_v41 = vpack.c.bf16 %v850_v5, %v848_v34 }
 0x215   : > { %v2102_v43 = vadd.f32 %v2101_v0, %v4629_v33  ;;  %v2149_v16 = vpop.f32.mrf.mxu3 }
 0x216   : > { %v2198_v12 = vadd.f32 %v2197_v13, %v2149_v16  ;;  %2526 = vmatpush.bf16.msrb.mxu3 %v1040_v41  ;;  %v339_v16 = vsub.f32 1.0, %v329_v61  ;;  %v5563_v41 = vld [vmem:[#allocation8_spill] sm:$0xff] }
 0x217   : > { %v2199_v54 = vpop.f32.mrf.mxu0  ;;  %v2668_v1 = vmul.f32 %v2102_v43, %v4898_v31 }
 0x218   : > { %v2247_v39 = vpop.f32.mrf.mxu1  ;;  %v4896_v24 = vadd.f32 %v2245_v7, %v2198_v12  ;;  %v321_v7 = vsub.f32 %v5563_v41, %v4869_v42 }
 0x21a   : > { %v331_v43 = vand.u32 2147483647, %v321_v7 }
 0x21c   : > { %v2103_v33 = vpop.f32.mrf.mxu2 }
 0x21d   : > { %v2104_v13 = vadd.f32 %v2103_v33, %v4651_v11  ;;  %v2151_v0 = vpop.f32.mrf.mxu3  ;;  %v5566_v11 = vld [vmem:[#allocation45_spill] sm:$0xff] }
 0x21e   : > { %v2200_v29 = vadd.f32 %v2199_v54, %v2151_v0  ;;  %v4913_v54 = vmax.f32 %v339_v16, 0.0  ;;  %v5567_v0 = vld [vmem:[#allocation43_spill] sm:$0xff]  ;;  %v844_v16 = vmul.f32 %v4887_v35, %v4235_v2 }
 0x21f   : > { %v2202_v34 = vpop.f32.mrf.mxu0  ;;  %v2670_v19 = vmul.f32 %v2104_v13, %v4900_v40  ;;  %v5568_v41 = vrot.slane %v5567_v0, 6 }
 0x220   : > { %v2250_v5 = vpop.f32.mrf.mxu1  ;;  %v4907_v12 = vadd.f32 %v2247_v39, %v2200_v29  ;;  %v882_v29 = vmul.f32 %v4828_v14, %v4199_v60  ;;  %v5569_v14 = vld [vmem:[#allocation9_spill] sm:$0xff] }
 0x221   : > { %v2698_v62 = vadd.f32 %v2670_v19, %v2668_v1  ;;  %2297 = vmatmul.bf16.gmra.mxu2 %v5564_v21  ;;  %v4918_v39 = vperm.slane %v5568_v41, 1  ;;  %v812_v1 = vmul.f32 %v4848_v8, %v4199_v60 }
 0x222   : > { %2393 = vmatmul.bf16.gmra.mxu0 %v5565_v50  ;;  %2345 = vmatmul.bf16.gmra.mxu3 %v5566_v11  ;;  %v341_v50 = vsub.f32 1.0, %v331_v43  ;;  %v323_v11 = vsub.f32 %v5569_v14, %v4869_v42 }
 0x223   : > { %2441 = vmatmul.bf16.gmra.mxu1 %v4333_v23  ;;  %v814_v23 = vmul.f32 %v4848_v8, %v4235_v2  ;;  %v876_v42 = vmul.f32 %v4918_v39, %v4249_v15  ;;  %v878_v43 = vmul.f32 %v4918_v39, %v4271_v44 }
 0x224   : > { %v2106_v33 = vpop.f32.mrf.mxu2 }
 0x225   : > { %v2107_v61 = vadd.f32 %v2106_v33, %v4662_v63  ;;  %v2154_v13 = vpop.f32.mrf.mxu3  ;;  %v846_v63 = vmul.f32 %v4887_v35, %v4249_v15  ;;  %v1022_v33 = vpack.c.bf16 %v814_v23, %v812_v1  ;;  %v4945_v1 = vmax.f32 %v341_v50, 0.0 }
 0x226   : > { %v2203_v19 = vadd.f32 %v2202_v34, %v2154_v13  ;;  %v880_v34 = vmul.f32 %v4918_v39, %v4207_v22 }
 0x227   : > { %v2204_v21 = vpop.f32.mrf.mxu0  ;;  %v2672_v41 = vmul.f32 %v2107_v61, %v4913_v54  ;;  %v1038_v13 = vpack.c.bf16 %v846_v63, %v844_v16  ;;  %v898_v61 = vmul.f32 %v4843_v3, %v4271_v44  ;;  %2479 = vmatpush.bf16.msrb.mxu2 %v1022_v33 }
 0x228   : > { %v2252_v7 = vpop.f32.mrf.mxu1  ;;  %v4935_v0 = vadd.f32 %v2250_v5, %v2203_v19  ;;  %v1056_v56 = vpack.c.bf16 %v882_v29, %v880_v34  ;;  %v333_v5 = vand.u32 2147483647, %v323_v11  ;;  %v1054_v19 = vpack.c.bf16 %v878_v43, %v876_v42 }
 0x229   : > { %v2699_v8 = vadd.f32 %v2698_v62, %v2672_v41  ;;  %2527 = vmatpush.bf16.msrb.mxu3 %v1038_v13  ;;  %v1064_v62 = vpack.c.bf16 %v898_v61, %v896_v28  ;;  %v5572_v28 = vld [vmem:[#allocation50_spill] sm:$0xff] }
 0x22a   : > { %2574 = vmatpush.bf16.msrb.mxu0 %v1056_v56  ;;  %v343_v13 = vsub.f32 1.0, %v333_v5  ;;  %v5571_v56 = vld [vmem:[#allocation52_spill] sm:$0xff]  ;;  %v5575_v61 = vld [vmem:[#allocation54_spill] sm:$0xff] }
 0x22b   : > { %2626 = vmatpush.bf16.msrb.mxu1 %v1064_v62  ;;  %v5576_v42 = vrot.slane %v5575_v61, 2 }
 0x22c   : > { %v2108_v29 = vpop.f32.mrf.mxu2 }
 0x22d   : > { %v2109_v23 = vadd.f32 %v2108_v29, %v4690_v26  ;;  %v2156_v16 = vpop.f32.mrf.mxu3  ;;  %v5573_v26 = vld [vmem:[#allocation53_spill] sm:$0xff]  ;;  %v4961_v43 = vperm.slane %v5576_v42, 1 }
 0x22e   : > { %v2205_v63 = vadd.f32 %v2204_v21, %v2156_v16  ;;  %2575 = vmatpush.bf16.msrb.mxu0 %v1054_v19  ;;  %v5574_v11 = vrot.slane %v5573_v26, 7  ;;  %v872_v26 = vmul.f32 %v4918_v39, %v4199_v60 }
 0x22f   : > { %v2207_v41 = vpop.f32.mrf.mxu0  ;;  %v2674_v34 = vmul.f32 %v2109_v23, %v4945_v1  ;;  %v840_v62 = vmul.f32 %v4961_v43, %v4207_v22 }
 0x230   : > { %v2255_v33 = vpop.f32.mrf.mxu1  ;;  %v4949_v14 = vadd.f32 %v2252_v7, %v2205_v63  ;;  %v4957_v21 = vperm.slane %v5574_v11, 1  ;;  %v842_v7 = vmul.f32 %v4887_v35, %v4199_v60 }
 0x231   : > { %v2700_v50 = vadd.f32 %v2699_v8, %v2674_v34  ;;  %2302 = vmatmul.bf16.gmra.mxu2 %v5570_v58  ;;  %v4965_v8 = vmax.f32 %v343_v13, 0.0 }
 0x232   : > { %2398 = vmatmul.bf16.gmra.mxu0 %v5571_v56  ;;  %2350 = vmatmul.bf16.gmra.mxu3 %v5572_v28  ;;  %v808_v5 = vmul.f32 %v4957_v21, %v4271_v44  ;;  %v1036_v34 = vpack.c.bf16 %v842_v7, %v840_v62  ;;  %v5579_v62 = vld [vmem:[#allocation56_spill] sm:$0xff] }
 0x233   : > { %2446 = vmatmul.bf16.gmra.mxu1 %v4375_v47  ;;  %v810_v47 = vmul.f32 %v4957_v21, %v4207_v22 }
 0x234   : > { %v2111_v58 = vpop.f32.mrf.mxu2  ;;  %2528 = vmatpush.bf16.msrb.mxu3 %v1036_v34 }
 0x235   : > { %v2112_v29 = vadd.f32 %v2111_v58, %v4699_v55  ;;  %v2159_v19 = vpop.f32.mrf.mxu3  ;;  %v1020_v63 = vpack.c.bf16 %v810_v47, %v808_v5  ;;  %v874_v55 = vmul.f32 %v4918_v39, %v4235_v2 }
 0x236   : > { %v2208_v23 = vadd.f32 %v2207_v41, %v2159_v19 }
 0x237   : > { %v2209_v16 = vpop.f32.mrf.mxu0  ;;  %v2676_v35 = vmul.f32 %v2112_v29, %v4965_v8  ;;  %2480 = vmatpush.bf16.msrb.mxu2 %v1020_v63  ;;  %v1052_v11 = vpack.c.bf16 %v874_v55, %v872_v26 }
 0x238   : > { %v2257_v13 = vpop.f32.mrf.mxu1  ;;  %v4975_v56 = vadd.f32 %v2255_v33, %v2208_v23  ;;  %v5577_v33 = vld [vmem:[#allocation57_spill] sm:$0xff] }
 0x239   : > { %v4977_v28 = vadd.f32 %v2700_v50, %v2676_v35  ;;  %2576 = vmatpush.bf16.msrb.mxu0 %v1052_v11  ;;  %v5578_v50 = vld [vmem:[#allocation58_spill] sm:$0xff] }
 0x23c   : > { %v2113_v41 = vpop.f32.mrf.mxu2 }
 0x23d   : > { %v2114_v61 = vadd.f32 %v2113_v41, %v4721_v46  ;;  %v2161_v42 = vpop.f32.mrf.mxu3  ;;  %v836_v41 = vmul.f32 %v4961_v43, %v4249_v15 }
 0x23e   : > { %v2210_v7 = vadd.f32 %v2209_v16, %v2161_v42 }
 0x23f   : > { %v2212_v58 = vpop.f32.mrf.mxu0  ;;  %v2678_v16 = vmul.f32 %v2114_v61, %v4898_v31 }
 0x240   : > { %v2260_v5 = vpop.f32.mrf.mxu1  ;;  %v4984_v47 = vadd.f32 %v2257_v13, %v2210_v7  ;;  %v838_v7 = vmul.f32 %v4961_v43, %v4271_v44 }
 0x241   : > { %2307 = vmatmul.bf16.gmra.mxu2 %v5577_v33 }
 0x242   : > { %2403 = vmatmul.bf16.gmra.mxu0 %v5578_v50  ;;  %2355 = vmatmul.bf16.gmra.mxu3 %v5579_v62 }
 0x243   : > { %2451 = vmatmul.bf16.gmra.mxu1 %v4405_v17  ;;  %v804_v17 = vmul.f32 %v4957_v21, %v4235_v2 }
 0x244   : > { %v2116_v39 = vpop.f32.mrf.mxu2 }
 0x245   : > { %v2117_v29 = vadd.f32 %v2116_v39, %v4735_v49  ;;  %v2164_v19 = vpop.f32.mrf.mxu3  ;;  %v806_v49 = vmul.f32 %v4957_v21, %v4249_v15  ;;  %v1034_v39 = vpack.c.bf16 %v838_v7, %v836_v41 }
 0x246   : > { %v2213_v46 = vadd.f32 %v2212_v58, %v2164_v19  ;;  %v5580_v58 = vld [vmem:[#allocation63_spill] sm:$0xff] }
 0x247   : > { %v2214_v23 = vpop.f32.mrf.mxu0  ;;  %v2680_v63 = vmul.f32 %v2117_v29, %v4900_v40  ;;  %v1018_v62 = vpack.c.bf16 %v806_v49, %v804_v17  ;;  %v802_v17 = vmul.f32 %v4957_v21, %v4199_v60  ;;  %2529 = vmatpush.bf16.msrb.mxu3 %v1034_v39  ;;  %v892_v49 = vmul.f32 %v4843_v3, %v4199_v60 }
 0x248   : > { %v2262_v34 = vpop.f32.mrf.mxu1  ;;  %v4993_v35 = vadd.f32 %v2260_v5, %v2213_v46  ;;  %v5581_v5 = vrot.slane %v5580_v58, 5 }
 0x249   : > { %v2718_v13 = vadd.f32 %v2680_v63, %v2678_v16  ;;  %v5582_v16 = vld [vmem:[#allocation61_spill] sm:$0xff]  ;;  %v5583_v63 = vld [vmem:[#allocation62_spill] sm:$0xff]  ;;  %2481 = vmatpush.bf16.msrb.mxu2 %v1018_v62 }
 0x24a   : > { %v5006_v33 = vperm.slane %v5581_v5, 1 }
 0x24c   : > { %v2118_v26 = vpop.f32.mrf.mxu2  ;;  %v868_v29 = vmul.f32 %v5006_v33, %v4271_v44  ;;  %v870_v19 = vmul.f32 %v5006_v33, %v4207_v22 }
 0x24d   : > { %v2119_v55 = vadd.f32 %v2118_v26, %v4757_v38  ;;  %v2166_v11 = vpop.f32.mrf.mxu3  ;;  %v5584_v26 = vld [vmem:[#allocation60_spill] sm:$0xff] }
 0x24e   : > { %v2215_v61 = vadd.f32 %v2214_v23, %v2166_v11  ;;  %v800_v11 = vmul.f32 %v4568_v48, %v4207_v22 }
 0x24f   : > { %v2217_v42 = vpop.f32.mrf.mxu0  ;;  %v2682_v38 = vmul.f32 %v2119_v55, %v4913_v54  ;;  %v1050_v55 = vpack.c.bf16 %v870_v19, %v868_v29 }
 0x250   : > { %v2265_v50 = vpop.f32.mrf.mxu1  ;;  %v5013_v46 = vadd.f32 %v2262_v34, %v2215_v61  ;;  %v832_v34 = vmul.f32 %v4961_v43, %v4199_v60  ;;  %v894_v61 = vmul.f32 %v4843_v3, %v4235_v2 }
 0x251   : > { %v2719_v23 = vadd.f32 %v2718_v13, %v2682_v38  ;;  %2312 = vmatmul.bf16.gmra.mxu2 %v5582_v16  ;;  %v834_v13 = vmul.f32 %v4961_v43, %v4235_v2  ;;  %2577 = vmatpush.bf16.msrb.mxu0 %v1050_v55  ;;  %v864_v16 = vmul.f32 %v5006_v33, %v4235_v2  ;;  %v5586_v2 = vld [vmem:[#allocation67_spill] sm:$0xff] }
 0x252   : > { %2408 = vmatmul.bf16.gmra.mxu0 %v5583_v63  ;;  %2360 = vmatmul.bf16.gmra.mxu3 %v5584_v26  ;;  %v1062_v62 = vpack.c.bf16 %v894_v61, %v892_v49  ;;  %v5587_v49 = vld [vmem:[#allocation66_spill] sm:$0xff]  ;;  %v830_v61 = vmul.f32 %v4809_v20, %v4207_v22 }
 0x253   : > { %2456 = vmatmul.bf16.gmra.mxu1 %v4446_v53  ;;  %v1016_v53 = vpack.c.bf16 %v802_v17, %v800_v11  ;;  %v1032_v58 = vpack.c.bf16 %v834_v13, %v832_v34  ;;  %v5585_v13 = vld [vmem:[#allocation65_spill] sm:$0xff] }
 0x254   : > { %v2121_v41 = vpop.f32.mrf.mxu2  ;;  %2627 = vmatpush.bf16.msrb.mxu1 %v1062_v62 }
 0x255   : > { %v2122_v7 = vadd.f32 %v2121_v41, %v4764_v57  ;;  %v2169_v21 = vpop.f32.mrf.mxu3  ;;  %2482 = vmatpush.bf16.msrb.mxu2 %v1016_v53  ;;  %2530 = vmatpush.bf16.msrb.mxu3 %v1032_v58  ;;  %v866_v57 = vmul.f32 %v5006_v33, %v4249_v15  ;;  %v798_v41 = vmul.f32 %v4568_v48, %v4271_v44 }
 0x256   : > { %v2218_v5 = vadd.f32 %v2217_v42, %v2169_v21  ;;  %v828_v53 = vmul.f32 %v4809_v20, %v4271_v44  ;;  %v860_v20 = vmul.f32 %v4813_v45, %v4207_v22 }
 0x257   : > { %v2219_v38 = vpop.f32.mrf.mxu0  ;;  %v2684_v39 = vmul.f32 %v2122_v7, %v4945_v1  ;;  %v1048_v3 = vpack.c.bf16 %v866_v57, %v864_v16 }
 0x258   : > { %v2267_v29 = vpop.f32.mrf.mxu1  ;;  %v5033_v43 = vadd.f32 %v2265_v50, %v2218_v5 }
 0x259   : > { %v2720_v19 = vadd.f32 %v2719_v23, %v2684_v39  ;;  %2578 = vmatpush.bf16.msrb.mxu0 %v1048_v3 }
 0x25c   : > { %v2123_v63 = vpop.f32.mrf.mxu2 }
 0x25d   : > { %v2124_v42 = vadd.f32 %v2123_v63, %v4786_v10  ;;  %v2171_v26 = vpop.f32.mrf.mxu3  ;;  %v796_v10 = vmul.f32 %v4568_v48, %v4249_v15 }
 0x25e   : > { %v2220_v55 = vadd.f32 %v2219_v38, %v2171_v26  ;;  %v1030_v38 = vpack.c.bf16 %v830_v61, %v828_v53 }
 0x25f   : > { %v2222_v11 = vpop.f32.mrf.mxu0  ;;  %v2686_v17 = vmul.f32 %v2124_v42, %v4965_v8  ;;  %v1014_v21 = vpack.c.bf16 %v798_v41, %v796_v10 }
 0x260   : > { %v2270_v34 = vpop.f32.mrf.mxu1  ;;  %v5041_v50 = vadd.f32 %v2267_v29, %v2220_v55  ;;  %2531 = vmatpush.bf16.msrb.mxu3 %v1030_v38 }
 0x261   : > { %v5043_v23 = vadd.f32 %v2720_v19, %v2686_v17  ;;  %2317 = vmatmul.bf16.gmra.mxu2 %v5585_v13  ;;  %v862_v19 = vmul.f32 %v5006_v33, %v4199_v60  ;;  %v5590_v17 = vld [vmem:[#allocation69_spill] sm:$0xff] }
 0x262   : > { %2413 = vmatmul.bf16.gmra.mxu0 %v5586_v2  ;;  %2365 = vmatmul.bf16.gmra.mxu3 %v5587_v49 }
 0x263   : > { %2461 = vmatmul.bf16.gmra.mxu1 %v4476_v32  ;;  %2483 = vmatpush.bf16.msrb.mxu2 %v1014_v21  ;;  %v1046_v42 = vpack.c.bf16 %v862_v19, %v860_v20 }
 0x264   : > { %v2126_v7 = vpop.f32.mrf.mxu2 }
 0x265   : > { %v2127_v58 = vadd.f32 %v2126_v7, %v4793_v9  ;;  %v2174_v5 = vpop.f32.mrf.mxu3  ;;  %2579 = vmatpush.bf16.msrb.mxu0 %v1046_v42 }
 0x266   : > { %v2223_v62 = vadd.f32 %v2222_v11, %v2174_v5  ;;  %v5588_v11 = vld [vmem:[#allocation70_spill] sm:$0xff]  ;;  %v5592_v5 = vld [vmem:[#allocation77_spill] sm:$0xff] }
 0x267   : > { %v2224_v32 = vpop.f32.mrf.mxu0  ;;  %v2688_v57 = vmul.f32 %v2127_v58, %v4898_v31  ;;  %v5591_v58 = vld [vmem:[#allocation76_spill] sm:$0xff] }
 0x268   : > { %v2272_v39 = vpop.f32.mrf.mxu1  ;;  %v5058_v15 = vadd.f32 %v2270_v34, %v2223_v62 }
 0x26c   : > { %v2128_v48 = vpop.f32.mrf.mxu2 }
 0x26d   : > { %v2129_v29 = vadd.f32 %v2128_v48, %v4815_v6  ;;  %v2176_v44 = vpop.f32.mrf.mxu3  ;;  %v5589_v6 = vld [vmem:[#allocation71_spill] sm:$0xff] }
 0x26e   : > { %v2225_v9 = vadd.f32 %v2224_v32, %v2176_v44 }
 0x26f   : > { %v2227_v16 = vpop.f32.mrf.mxu0  ;;  %v2690_v3 = vmul.f32 %v2129_v29, %v4900_v40 }
 0x270   : > { %v2275_v63 = vpop.f32.mrf.mxu1  ;;  %v5067_v26 = vadd.f32 %v2272_v39, %v2225_v9 }
 0x271   : > { %v2738_v55 = vadd.f32 %v2690_v3, %v2688_v57  ;;  %2322 = vmatmul.bf16.gmra.mxu2 %v5588_v11  ;;  %v5594_v57 = vld [vmem:[#allocation80_spill] sm:$0xff]  ;;  %v5596_v3 = vld [vmem:[#allocation79_spill] sm:$0xff] }
 0x272   : > { %2418 = vmatmul.bf16.gmra.mxu0 %v5589_v6  ;;  %2370 = vmatmul.bf16.gmra.mxu3 %v5590_v17 }
 0x273   : > { %2466 = vmatmul.bf16.gmra.mxu1 %v4505_v36 }
 0x274   : > { %v2131_v60 = vpop.f32.mrf.mxu2 }
 0x275   : > { %v2132_v22 = vadd.f32 %v2131_v60, %v4834_v51  ;;  %v2179_v45 = vpop.f32.mrf.mxu3 }
 0x276   : > { %v2228_v31 = vadd.f32 %v2227_v16, %v2179_v45 }
 0x277   : > { %v2229_v40 = vpop.f32.mrf.mxu0  ;;  %v2692_v33 = vmul.f32 %v2132_v22, %v4913_v54  ;;  %v5593_v54 = vld [vmem:[#allocation75_spill] sm:$0xff] }
 0x278   : > { %v2277_v34 = vpop.f32.mrf.mxu1  ;;  %v5075_v13 = vadd.f32 %v2275_v63, %v2228_v31 }
 0x279   : > { %v2739_v2 = vadd.f32 %v2738_v55, %v2692_v33 }
 0x27c   : > { %v2133_v49 = vpop.f32.mrf.mxu2 }
 0x27d   : > { %v2134_v10 = vadd.f32 %v2133_v49, %v4858_v59  ;;  %v2181_v41 = vpop.f32.mrf.mxu3 }
 0x27e   : > { %v2230_v53 = vadd.f32 %v2229_v40, %v2181_v41 }
 0x27f   : > { %v2232_v61 = vpop.f32.mrf.mxu0  ;;  %v2694_v36 = vmul.f32 %v2134_v10, %v4945_v1 }
 0x280   : > { %v2280_v7 = vpop.f32.mrf.mxu1  ;;  %v5079_v21 = vadd.f32 %v2277_v34, %v2230_v53 }
 0x281   : > { %v2740_v51 = vadd.f32 %v2739_v2, %v2694_v36  ;;  %2327 = vmatmul.bf16.gmra.mxu2 %v5591_v58 }
 0x282   : > { %2423 = vmatmul.bf16.gmra.mxu0 %v5592_v5  ;;  %2375 = vmatmul.bf16.gmra.mxu3 %v5593_v54  ;;  %v5598_v54 = vld [vmem:[#allocation84_spill] sm:$0xff] }
 0x283   : > { %2471 = vmatmul.bf16.gmra.mxu1 %v4556_v25  ;;  %v5595_v25 = vld [vmem:[#allocation81_spill] sm:$0xff] }
 0x284   : > { %v2136_v38 = vpop.f32.mrf.mxu2 }
 0x285   : > { %v2137_v59 = vadd.f32 %v2136_v38, %v4871_v52  ;;  %v2184_v62 = vpop.f32.mrf.mxu3  ;;  %v5600_v38 = vld [vmem:[#allocation15_spill] sm:$0xff] }
 0x286   : > { %v2233_v32 = vadd.f32 %v2232_v61, %v2184_v62 }
 0x287   : > { %v2234_v39 = vpop.f32.mrf.mxu0  ;;  %v2696_v1 = vmul.f32 %v2137_v59, %v4965_v8 }
 0x288   : > { %v2282_v48 = vpop.f32.mrf.mxu1  ;;  %v5087_v29 = vadd.f32 %v2280_v7, %v2233_v32 }
 0x289   : > { %v5089_v44 = vadd.f32 %v2740_v51, %v2696_v1 }
 0x28c   : > { %v2138_v20 = vpop.f32.mrf.mxu2 }
 0x28d   : > { %v2186_v19 = vpop.f32.mrf.mxu3 }
 0x28f   : > { %v2389_v9 = vpop.f32.mrf.mxu0 }
 0x290   : > { %v2437_v16 = vpop.f32.mrf.mxu1 }
 0x291   : > { %2484 = vmatmul.bf16.vlgmr.msrb.gmra.mxu2 %v5594_v57 }
 0x292   : > { %2580 = vmatmul.bf16.vlgmr.msrb.gmra.mxu0 %v5595_v25  ;;  %2532 = vmatmul.bf16.vlgmr.msrb.gmra.mxu3 %v5596_v3 }
 0x293   : > { %3204 = vmatmul.msk.bf16.vlgmr.msrb.gmra.mxu1 %vm1580_vm9, %v4593_v30  ;;  %v5597_v30 = vld [vmem:[#allocation82_spill] sm:$0xff] }
 0x294   : > { %v2293_v52 = vpop.f32.mrf.mxu2 }
 0x295   : > { %v2294_v8 = vadd.f32 %v2293_v52, %v4896_v24  ;;  %v2341_v63 = vpop.f32.mrf.mxu3 }
 0x297   : > { %v2391_v42 = vpop.f32.mrf.mxu0  ;;  %v2342_v55 = vadd.f32 %v2341_v63, %v2294_v8  ;;  %v5601_v8 = vld [vmem:[#allocation86_spill] sm:$0xff]  ;;  %v5602_v63 = vld [vmem:[#allocation87_spill] sm:$0xff] }
 0x298   : > { %v2439_v11 = vpop.f32.mrf.mxu1 }
 0x299   : > { %v2390_v6 = vadd.f32 %v2389_v9, %v2342_v55 }
 0x29b   : > { %v5097_v17 = vadd.f32 %v2437_v16, %v2390_v6 }
 0x29c   : > { %v2295_v60 = vpop.f32.mrf.mxu2 }
 0x29d   : > { %v2296_v22 = vadd.f32 %v2295_v60, %v4907_v12  ;;  %v2343_v45 = vpop.f32.mrf.mxu3 }
 0x29f   : > { %v2394_v31 = vpop.f32.mrf.mxu0  ;;  %v2344_v40 = vadd.f32 %v2343_v45, %v2296_v22 }
 0x2a0   : > { %v2442_v33 = vpop.f32.mrf.mxu1 }
 0x2a1   : > { %v2392_v34 = vadd.f32 %v2391_v42, %v2344_v40  ;;  %2489 = vmatmul.bf16.gmra.mxu2 %v4337_v37  ;;  %v5604_v42 = vld [vmem:[#allocation36_spill] sm:$0xff] }
 0x2a2   : > { %2585 = vmatmul.bf16.gmra.mxu0 %v4339_v27  ;;  %2537 = vmatmul.bf16.gmra.mxu3 %v5597_v30 }
 0x2a3   : > { %3205 = vmatmul.msk.bf16.gmra.mxu1 %vm1580_vm9, %v4632_v18  ;;  %v5105_v24 = vadd.f32 %v2439_v11, %v2392_v34 }
 0x2a4   : > { %v2298_v2 = vpop.f32.mrf.mxu2 }
 0x2a5   : > { %v2299_v49 = vadd.f32 %v2298_v2, %v4935_v0  ;;  %v2346_v12 = vpop.f32.mrf.mxu3  ;;  %v5599_v0 = vld [vmem:[#allocation83_spill] sm:$0xff] }
 0x2a7   : > { %v2396_v10 = vpop.f32.mrf.mxu0  ;;  %v2347_v41 = vadd.f32 %v2346_v12, %v2299_v49 }
 0x2a8   : > { %v2444_v53 = vpop.f32.mrf.mxu1 }
 0x2a9   : > { %v2395_v61 = vadd.f32 %v2394_v31, %v2347_v41  ;;  %v5605_v41 = vld [vmem:[#allocation89_spill] sm:$0xff] }
 0x2ab   : > { %v5108_v36 = vadd.f32 %v2442_v33, %v2395_v61  ;;  %v5608_v61 = vld [vmem:[#allocation14_spill] sm:$0xff] }
 0x2ac   : > { %v2300_v37 = vpop.f32.mrf.mxu2 }
 0x2ad   : > { %v2301_v27 = vadd.f32 %v2300_v37, %v4949_v14  ;;  %v2348_v7 = vpop.f32.mrf.mxu3 }
 0x2af   : > { %v2399_v51 = vpop.f32.mrf.mxu0  ;;  %v2349_v58 = vadd.f32 %v2348_v7, %v2301_v27 }
 0x2b0   : > { %v2447_v5 = vpop.f32.mrf.mxu1 }
 0x2b1   : > { %v2397_v18 = vadd.f32 %v2396_v10, %v2349_v58  ;;  %2494 = vmatmul.bf16.gmra.mxu2 %v4379_v4 }
 0x2b2   : > { %2590 = vmatmul.bf16.gmra.mxu0 %v5598_v54  ;;  %2542 = vmatmul.bf16.gmra.mxu3 %v5599_v0 }
 0x2b3   : > { %3206 = vmatmul.msk.bf16.gmra.mxu1 %vm1580_vm9, %v5600_v38  ;;  %v5116_v59 = vadd.f32 %v2444_v53, %v2397_v18  ;;  %v5606_v53 = vld [vmem:[#allocation90_spill] sm:$0xff] }
 0x2b4   : > { %v2303_v62 = vpop.f32.mrf.mxu2 }
 0x2b5   : > { %v2304_v32 = vadd.f32 %v2303_v62, %v4975_v56  ;;  %v2351_v14 = vpop.f32.mrf.mxu3  ;;  %v5603_v56 = vld [vmem:[#allocation85_spill] sm:$0xff] }
 0x2b7   : > { %v2401_v39 = vpop.f32.mrf.mxu0  ;;  %v2352_v1 = vadd.f32 %v2351_v14, %v2304_v32 }
 0x2b8   : > { %v2449_v48 = vpop.f32.mrf.mxu1 }
 0x2b9   : > { %v2400_v20 = vadd.f32 %v2399_v51, %v2352_v1 }
 0x2bb   : > { %v5119_v19 = vadd.f32 %v2447_v5, %v2400_v20  ;;  %v5610_v20 = vld [vmem:[#allocation93_spill] sm:$0xff] }
 0x2bc   : > { %v2305_v4 = vpop.f32.mrf.mxu2 }
 0x2bd   : > { %v2306_v9 = vadd.f32 %v2305_v4, %v4984_v47  ;;  %v2353_v16 = vpop.f32.mrf.mxu3  ;;  %v5612_v4 = vld [vmem:[#allocation38_spill] sm:$0xff] }
 0x2bf   : > { %v2404_v57 = vpop.f32.mrf.mxu0  ;;  %v2354_v25 = vadd.f32 %v2353_v16, %v2306_v9 }
 0x2c0   : > { %v2452_v3 = vpop.f32.mrf.mxu1 }
 0x2c1   : > { %v2402_v52 = vadd.f32 %v2401_v39, %v2354_v25  ;;  %2499 = vmatmul.bf16.gmra.mxu2 %v5601_v8 }
 0x2c2   : > { %2595 = vmatmul.bf16.gmra.mxu0 %v5602_v63  ;;  %2547 = vmatmul.bf16.gmra.mxu3 %v5603_v56 }
 0x2c3   : > { %3207 = vmatmul.msk.bf16.gmra.mxu1 %vm1580_vm9, %v5604_v42  ;;  %v5127_v55 = vadd.f32 %v2449_v48, %v2402_v52  ;;  %v5609_v48 = vld [vmem:[#allocation92_spill] sm:$0xff] }
 0x2c4   : > { %v2308_v11 = vpop.f32.mrf.mxu2 }
 0x2c5   : > { %v2309_v6 = vadd.f32 %v2308_v11, %v4993_v35  ;;  %v2356_v47 = vpop.f32.mrf.mxu3  ;;  %v5607_v35 = vld [vmem:[#allocation88_spill] sm:$0xff] }
 0x2c7   : > { %v2406_v60 = vpop.f32.mrf.mxu0  ;;  %v2357_v22 = vadd.f32 %v2356_v47, %v2309_v6 }
 0x2c8   : > { %v2454_v45 = vpop.f32.mrf.mxu1 }
 0x2c9   : > { %v2405_v31 = vadd.f32 %v2404_v57, %v2357_v22 }
 0x2cb   : > { %v5130_v40 = vadd.f32 %v2452_v3, %v2405_v31  ;;  %v5614_v31 = vld [vmem:[#allocation96_spill] sm:$0xff] }
 0x2cc   : > { %v2310_v33 = vpop.f32.mrf.mxu2 }
 0x2cd   : > { %v2311_v34 = vadd.f32 %v2310_v33, %v5013_v46  ;;  %v2358_v30 = vpop.f32.mrf.mxu3  ;;  %v5616_v33 = vld [vmem:[#allocation12_spill] sm:$0xff] }
 0x2cf   : > { %v2409_v2 = vpop.f32.mrf.mxu0  ;;  %v2359_v49 = vadd.f32 %v2358_v30, %v2311_v34 }
 0x2d0   : > { %v2457_v12 = vpop.f32.mrf.mxu1 }
 0x2d1   : > { %v2407_v10 = vadd.f32 %v2406_v60, %v2359_v49  ;;  %2504 = vmatmul.bf16.gmra.mxu2 %v5605_v41 }
 0x2d2   : > { %2600 = vmatmul.bf16.gmra.mxu0 %v5606_v53  ;;  %2552 = vmatmul.bf16.gmra.mxu3 %v5607_v35 }
 0x2d3   : > { %3208 = vmatmul.msk.bf16.gmra.mxu1 %vm1580_vm9, %v5608_v61  ;;  %v5138_v37 = vadd.f32 %v2454_v45, %v2407_v10  ;;  %v5613_v45 = vld [vmem:[#allocation95_spill] sm:$0xff] }
 0x2d4   : > { %v2313_v27 = vpop.f32.mrf.mxu2 }
 0x2d5   : > { %v2314_v7 = vadd.f32 %v2313_v27, %v5033_v43  ;;  %v2361_v46 = vpop.f32.mrf.mxu3  ;;  %v5611_v43 = vld [vmem:[#allocation91_spill] sm:$0xff] }
 0x2d7   : > { %v2411_v51 = vpop.f32.mrf.mxu0  ;;  %v2362_v58 = vadd.f32 %v2361_v46, %v2314_v7 }
 0x2d8   : > { %v2459_v5 = vpop.f32.mrf.mxu1 }
 0x2d9   : > { %v2410_v18 = vadd.f32 %v2409_v2, %v2362_v58 }
 0x2db   : > { %v5141_v54 = vadd.f32 %v2457_v12, %v2410_v18  ;;  %v5618_v18 = vld [vmem:[#allocation99_spill] sm:$0xff] }
 0x2dc   : > { %v2315_v0 = vpop.f32.mrf.mxu2 }
 0x2dd   : > { %v2316_v38 = vadd.f32 %v2315_v0, %v5041_v50  ;;  %v2363_v62 = vpop.f32.mrf.mxu3  ;;  %v5620_v0 = vld [vmem:[#allocation16_spill] sm:$0xff] }
 0x2df   : > { %v2414_v32 = vpop.f32.mrf.mxu0  ;;  %v2364_v14 = vadd.f32 %v2363_v62, %v2316_v38 }
 0x2e0   : > { %v2462_v39 = vpop.f32.mrf.mxu1 }
 0x2e1   : > { %v2412_v1 = vadd.f32 %v2411_v51, %v2364_v14  ;;  %2509 = vmatmul.bf16.gmra.mxu2 %v5609_v48 }
 0x2e2   : > { %2605 = vmatmul.bf16.gmra.mxu0 %v5610_v20  ;;  %2557 = vmatmul.bf16.gmra.mxu3 %v5611_v43 }
 0x2e3   : > { %3209 = vmatmul.msk.bf16.gmra.mxu1 %vm1580_vm9, %v5612_v4  ;;  %v5149_v9 = vadd.f32 %v2459_v5, %v2412_v1  ;;  %v5617_v5 = vld [vmem:[#allocation98_spill] sm:$0xff] }
 0x2e4   : > { %v2318_v16 = vpop.f32.mrf.mxu2 }
 0x2e5   : > { %v2319_v57 = vadd.f32 %v2318_v16, %v5058_v15  ;;  %v2366_v50 = vpop.f32.mrf.mxu3  ;;  %v5615_v15 = vld [vmem:[#allocation94_spill] sm:$0xff]  ;;  %v5621_v16 = vld [vmem:[#allocation5_spill] sm:$0xff] }
 0x2e7   : > { %v2416_v25 = vpop.f32.mrf.mxu0  ;;  %v2367_v3 = vadd.f32 %v2366_v50, %v2319_v57  ;;  %v310_v57 = vperm.slane %v5621_v16, 4 }
 0x2e8   : > { %v2464_v52 = vpop.f32.mrf.mxu1 }
 0x2e9   : > { %v2415_v8 = vadd.f32 %v2414_v32, %v2367_v3  ;;  %v314_v3 = vperm.slane %v310_v57, 0 }
 0x2eb   : > { %v5152_v63 = vadd.f32 %v2462_v39, %v2415_v8 }
 0x2ec   : > { %v2320_v56 = vpop.f32.mrf.mxu2 }
 0x2ed   : > { %v2321_v42 = vadd.f32 %v2320_v56, %v5067_v26  ;;  %v2368_v11 = vpop.f32.mrf.mxu3  ;;  %v5622_v56 = vld [vmem:[#allocation6_spill] sm:$0xff] }
 0x2ef   : > { %v2419_v6 = vpop.f32.mrf.mxu0  ;;  %v2369_v47 = vadd.f32 %v2368_v11, %v2321_v42  ;;  %v316_v42 = vsub.f32 %v5622_v56, %v314_v3  ;;  %v5623_v11 = vld [vmem:[#allocation10_spill] sm:$0xff] }
 0x2f0   : > { %v2467_v60 = vpop.f32.mrf.mxu1 }
 0x2f1   : > { %v2417_v22 = vadd.f32 %v2416_v25, %v2369_v47  ;;  %2514 = vmatmul.bf16.gmra.mxu2 %v5613_v45  ;;  %v326_v45 = vand.u32 2147483647, %v316_v42 }
 0x2f2   : > { %2610 = vmatmul.bf16.gmra.mxu0 %v5614_v31  ;;  %2562 = vmatmul.bf16.gmra.mxu3 %v5615_v15 }
 0x2f3   : > { %3210 = vmatmul.msk.bf16.gmra.mxu1 %vm1580_vm9, %v5616_v33  ;;  %v5160_v34 = vadd.f32 %v2464_v52, %v2417_v22 }
 0x2f4   : > { %v2323_v30 = vpop.f32.mrf.mxu2 }
 0x2f5   : > { %v2324_v2 = vadd.f32 %v2323_v30, %v5075_v13  ;;  %v2371_v26 = vpop.f32.mrf.mxu3  ;;  %v5619_v13 = vld [vmem:[#allocation97_spill] sm:$0xff] }
 0x2f7   : > { %v2421_v49 = vpop.f32.mrf.mxu0  ;;  %v2372_v12 = vadd.f32 %v2371_v26, %v2324_v2  ;;  %v5624_v2 = vld [vmem:[#allocation7_spill] sm:$0xff] }
 0x2f8   : > { %v2469_v10 = vpop.f32.mrf.mxu1  ;;  %v320_v26 = vsub.f32 %v5624_v2, %v314_v3 }
 0x2f9   : > { %v2420_v41 = vadd.f32 %v2419_v6, %v2372_v12  ;;  %v318_v6 = vsub.f32 %v5623_v11, %v314_v3 }
 0x2fb   : > { %v5163_v53 = vadd.f32 %v2467_v60, %v2420_v41  ;;  %v328_v15 = vand.u32 2147483647, %v318_v6 }
 0x2fc   : > { %v2325_v35 = vpop.f32.mrf.mxu2 }
 0x2fd   : > { %v2326_v61 = vadd.f32 %v2325_v35, %v5079_v21  ;;  %v2373_v27 = vpop.f32.mrf.mxu3 }
 0x2ff   : > { %v2424_v7 = vpop.f32.mrf.mxu0  ;;  %v2374_v46 = vadd.f32 %v2373_v27, %v2326_v61  ;;  %v330_v27 = vand.u32 2147483647, %v320_v26 }
 0x300   : > { %v2472_v51 = vpop.f32.mrf.mxu1 }
 0x301   : > { %v2422_v58 = vadd.f32 %v2421_v49, %v2374_v46  ;;  %2519 = vmatmul.bf16.gmra.mxu2 %v5617_v5  ;;  %v336_v49 = vsub.f32 1.0, %v326_v45 }
 0x302   : > { %2615 = vmatmul.bf16.gmra.mxu0 %v5618_v18  ;;  %2567 = vmatmul.bf16.gmra.mxu3 %v5619_v13  ;;  %v340_v18 = vsub.f32 1.0, %v330_v27 }
 0x303   : > { %3211 = vmatmul.msk.bf16.gmra.mxu1 %vm1580_vm9, %v5620_v0  ;;  %v5171_v38 = vadd.f32 %v2469_v10, %v2422_v58  ;;  %v338_v10 = vsub.f32 1.0, %v328_v15 }
 0x304   : > { %v2328_v62 = vpop.f32.mrf.mxu2 }
 0x305   : > { %v2329_v32 = vadd.f32 %v2328_v62, %v5087_v29  ;;  %v2376_v21 = vpop.f32.mrf.mxu3  ;;  %v5184_v46 = vmax.f32 %v338_v10, 0.0  ;;  %v2702_v10 = vrot.slane %v4977_v28, 4 }
 0x307   : > { %v2426_v14 = vpop.f32.mrf.mxu0  ;;  %v2377_v39 = vadd.f32 %v2376_v21, %v2329_v32  ;;  %v5625_v32 = vld [vmem:[#allocation8_spill] sm:$0xff] }
 0x308   : > { %v2474_v1 = vpop.f32.mrf.mxu1  ;;  %v322_v21 = vsub.f32 %v5625_v32, %v314_v3 }
 0x309   : > { %v2425_v48 = vadd.f32 %v2424_v7, %v2377_v39  ;;  %v5182_v7 = vmax.f32 %v336_v49, 0.0 }
 0x30a   : > { %v332_v16 = vand.u32 2147483647, %v322_v21 }
 0x30b   : > { %v5174_v20 = vadd.f32 %v2472_v51, %v2425_v48 }
 0x30c   : > { %v2330_v43 = vpop.f32.mrf.mxu2 }
 0x30d   : > { %v2378_v4 = vpop.f32.mrf.mxu3  ;;  %v5190_v43 = vmax.f32 %v340_v18, 0.0 }
 0x30f   : > { %v2581_v50 = vpop.f32.mrf.mxu0 }
 0x310   : > { %v2629_v25 = vpop.f32.mrf.mxu1 }
 0x314   : > { %v2485_v52 = vpop.f32.mrf.mxu2 }
 0x315   : > { %v2486_v8 = vadd.f32 %v2485_v52, %v5097_v17  ;;  %v2533_v29 = vpop.f32.mrf.mxu3 }
 0x317   : > { %v2583_v47 = vpop.f32.mrf.mxu0  ;;  %v2534_v60 = vadd.f32 %v2533_v29, %v2486_v8  ;;  %v342_v8 = vsub.f32 1.0, %v332_v16 }
 0x318   : > { %v2631_v22 = vpop.f32.mrf.mxu1 }
 0x319   : > { %v2582_v31 = vadd.f32 %v2581_v50, %v2534_v60  ;;  %v5195_v60 = vmax.f32 %v342_v8, 0.0 }
 0x31b   : > { %v2630_v33 = vadd.f32 %v2629_v25, %v2582_v31 }
 0x31c   : > { %v2487_v30 = vpop.f32.mrf.mxu2 }
 0x31d   : > { %v2488_v12 = vadd.f32 %v2487_v30, %v5105_v24  ;;  %v2535_v17 = vpop.f32.mrf.mxu3  ;;  %v2669_v13 = vmul.f32 %v2630_v33, %v5182_v7 }
 0x31f   : > { %v2586_v41 = vpop.f32.mrf.mxu0  ;;  %v2536_v35 = vadd.f32 %v2535_v17, %v2488_v12 }
 0x320   : > { %v2634_v61 = vpop.f32.mrf.mxu1 }
 0x321   : > { %v2584_v51 = vadd.f32 %v2583_v47, %v2536_v35 }
 0x323   : > { %v2632_v58 = vadd.f32 %v2631_v22, %v2584_v51 }
 0x324   : > { %v2490_v5 = vpop.f32.mrf.mxu2 }
 0x325   : > { %v2671_v0 = vmul.f32 %v2632_v58, %v5184_v46  ;;  %v2491_v24 = vadd.f32 %v2490_v5, %v5108_v36  ;;  %v2538_v62 = vpop.f32.mrf.mxu3  ;;  %v5626_v36 = vld [vmem:[#allocation9_spill] sm:$0xff] }
 0x326   : > { %v324_v42 = vsub.f32 %v5626_v36, %v314_v3 }
 0x327   : > { %v2588_v14 = vpop.f32.mrf.mxu0  ;;  %v2708_v39 = vadd.f32 %v2671_v0, %v2669_v13  ;;  %v2539_v1 = vadd.f32 %v2538_v62, %v2491_v24 }
 0x328   : > { %v2636_v48 = vpop.f32.mrf.mxu1  ;;  %v334_v45 = vand.u32 2147483647, %v324_v42 }
 0x329   : > { %v2587_v4 = vadd.f32 %v2586_v41, %v2539_v1 }
 0x32a   : > { %v344_v2 = vsub.f32 1.0, %v334_v45 }
 0x32b   : > { %v2635_v57 = vadd.f32 %v2634_v61, %v2587_v4  ;;  %v2703_v61 = vadd.f32 %v2702_v10, %v4977_v28 }
 0x32c   : > { %v2492_v50 = vpop.f32.mrf.mxu2  ;;  %v5200_v17 = vmax.f32 %v344_v2, 0.0 }
 0x32d   : > { %v2673_v25 = vmul.f32 %v2635_v57, %v5190_v43  ;;  %v2493_v52 = vadd.f32 %v2492_v50, %v5116_v59  ;;  %v2540_v56 = vpop.f32.mrf.mxu3  ;;  %v2704_v24 = vrot.slane %v2703_v61, 2 }
 0x32f   : > { %v2591_v29 = vpop.f32.mrf.mxu0  ;;  %v2709_v11 = vadd.f32 %v2708_v39, %v2673_v25  ;;  %v2541_v6 = vadd.f32 %v2540_v56, %v2493_v52  ;;  %v2705_v39 = vadd.f32 %v2704_v24, %v2703_v61 }
 0x330   : > { %v2639_v47 = vpop.f32.mrf.mxu1 }
 0x331   : > { %v2589_v22 = vadd.f32 %v2588_v14, %v2541_v6  ;;  %v2706_v25 = vrot.slane %v2705_v39, 1 }
 0x333   : > { %v2637_v31 = vadd.f32 %v2636_v48, %v2589_v22  ;;  %v2707_v42 = vadd.f32 %v2706_v25, %v2705_v39 }
 0x334   : > { %v2495_v15 = vpop.f32.mrf.mxu2 }
 0x335   : > { %v2675_v33 = vmul.f32 %v2637_v31, %v5195_v60  ;;  %v2496_v30 = vadd.f32 %v2495_v15, %v5119_v19  ;;  %v2543_v59 = vpop.f32.mrf.mxu3 }
 0x337   : > { %v2593_v26 = vpop.f32.mrf.mxu0  ;;  %v2710_v49 = vadd.f32 %v2709_v11, %v2675_v33  ;;  %v2544_v12 = vadd.f32 %v2543_v59, %v2496_v30 }
 0x338   : > { %v2641_v3 = vpop.f32.mrf.mxu1 }
 0x339   : > { %v2592_v41 = vadd.f32 %v2591_v29, %v2544_v12 }
 0x33b   : > { %v2640_v35 = vadd.f32 %v2639_v47, %v2592_v41 }
 0x33c   : > { %v2497_v27 = vpop.f32.mrf.mxu2 }
 0x33d   : > { %v2677_v51 = vmul.f32 %v2640_v35, %v5200_v17  ;;  %v2498_v58 = vadd.f32 %v2497_v27, %v5127_v55  ;;  %v2545_v19 = vpop.f32.mrf.mxu3 }
 0x33f   : > { %v2596_v5 = vpop.f32.mrf.mxu0  ;;  %v2711_v18 = vadd.f32 %v2710_v49, %v2677_v51  ;;  %v2546_v13 = vadd.f32 %v2545_v19, %v2498_v58 }
 0x340   : > { %v2644_v0 = vpop.f32.mrf.mxu1 }
 0x341   : > { %v2712_v62 = vrot.slane %v2711_v18, 4  ;;  %v2594_v32 = vadd.f32 %v2593_v26, %v2546_v13 }
 0x343   : > { %v2713_v21 = vadd.f32 %v2712_v62, %v2711_v18  ;;  %v2642_v14 = vadd.f32 %v2641_v3, %v2594_v32  ;;  %v2722_v62 = vrot.slane %v5043_v23, 4 }
 0x344   : > { %v2500_v1 = vpop.f32.mrf.mxu2 }
 0x345   : > { %v2714_v48 = vrot.slane %v2713_v21, 2  ;;  %v2501_v28 = vadd.f32 %v2500_v1, %v5130_v40  ;;  %v2548_v4 = vpop.f32.mrf.mxu3  ;;  %v2679_v6 = vmul.f32 %v2642_v14, %v5182_v7 }
 0x347   : > { %v2598_v16 = vpop.f32.mrf.mxu0  ;;  %v2715_v57 = vadd.f32 %v2714_v48, %v2713_v21  ;;  %v2549_v50 = vadd.f32 %v2548_v4, %v2501_v28  ;;  %v2723_v21 = vadd.f32 %v2722_v62, %v5043_v23 }
 0x348   : > { %v2646_v55 = vpop.f32.mrf.mxu1 }
 0x349   : > { %v2716_v52 = vrot.slane %v2715_v57, 1  ;;  %v2597_v8 = vadd.f32 %v2596_v5, %v2549_v50 }
 0x34b   : > { %v2717_v56 = vadd.f32 %v2716_v52, %v2715_v57  ;;  %v2645_v36 = vadd.f32 %v2644_v0, %v2597_v8 }
 0x34c   : > { %v2502_v29 = vpop.f32.mrf.mxu2 }
 0x34d   : > { %v2764_v11 = vrot.slane %v2717_v56, 4  ;;  %v2681_v47 = vmul.f32 %v2645_v36, %v5184_v46  ;;  %v2503_v22 = vadd.f32 %v2502_v29, %v5138_v37  ;;  %v2550_v40 = vpop.f32.mrf.mxu3 }
 0x34f   : > { %v2601_v45 = vpop.f32.mrf.mxu0  ;;  %v5210_v31 = vsel %vm1605_vm8, %v2707_v42, %v2764_v11  ;;  %v2728_v15 = vadd.f32 %v2681_v47, %v2679_v6  ;;  %v2551_v33 = vadd.f32 %v2550_v40, %v2503_v22 }
 0x350   : > { %v2649_v30 = vpop.f32.mrf.mxu1 }
 0x351   : > { %v2599_v2 = vadd.f32 %v2598_v16, %v2551_v33  ;;  %v2724_v16 = vrot.slane %v2723_v21, 2 }
 0x353   : > { %v2647_v59 = vadd.f32 %v2646_v55, %v2599_v2  ;;  %v2725_v25 = vadd.f32 %v2724_v16, %v2723_v21 }
 0x354   : > { %v2505_v26 = vpop.f32.mrf.mxu2 }
 0x355   : > { %v2683_v49 = vmul.f32 %v2647_v59, %v5190_v43  ;;  %v2506_v12 = vadd.f32 %v2505_v26, %v5141_v54  ;;  %v2553_v3 = vpop.f32.mrf.mxu3 }
 0x357   : > { %v2603_v10 = vpop.f32.mrf.mxu0  ;;  %v2729_v41 = vadd.f32 %v2728_v15, %v2683_v49  ;;  %v2554_v35 = vadd.f32 %v2553_v3, %v2506_v12 }
 0x358   : > { %v2651_v37 = vpop.f32.mrf.mxu1 }
 0x359   : > { %v2602_v61 = vadd.f32 %v2601_v45, %v2554_v35 }
 0x35b   : > { %v2650_v27 = vadd.f32 %v2649_v30, %v2602_v61 }
 0x35c   : > { %v2507_v51 = vpop.f32.mrf.mxu2 }
 0x35d   : > { %v2685_v58 = vmul.f32 %v2650_v27, %v5195_v60  ;;  %v2508_v19 = vadd.f32 %v2507_v51, %v5149_v9  ;;  %v2555_v5 = vpop.f32.mrf.mxu3 }
 0x35f   : > { %v2606_v18 = vpop.f32.mrf.mxu0  ;;  %v2730_v13 = vadd.f32 %v2729_v41, %v2685_v58  ;;  %v2556_v0 = vadd.f32 %v2555_v5, %v2508_v19 }
 0x360   : > { %v2654_v24 = vpop.f32.mrf.mxu1 }
 0x361   : > { %v2604_v54 = vadd.f32 %v2603_v10, %v2556_v0 }
 0x363   : > { %v2652_v32 = vadd.f32 %v2651_v37, %v2604_v54 }
 0x364   : > { %v2510_v14 = vpop.f32.mrf.mxu2 }
 0x365   : > { %v2687_v39 = vmul.f32 %v2652_v32, %v5200_v17  ;;  %v2511_v1 = vadd.f32 %v2510_v14, %v5152_v63  ;;  %v2558_v48 = vpop.f32.mrf.mxu3  ;;  %v2726_v63 = vrot.slane %v2725_v25, 1 }
 0x367   : > { %v2608_v28 = vpop.f32.mrf.mxu0  ;;  %v2731_v4 = vadd.f32 %v2730_v13, %v2687_v39  ;;  %v2559_v50 = vadd.f32 %v2558_v48, %v2511_v1  ;;  %v2727_v33 = vadd.f32 %v2726_v63, %v2725_v25 }
 0x368   : > { %v2656_v9 = vpop.f32.mrf.mxu1 }
 0x369   : > { %v2732_v57 = vrot.slane %v2731_v4, 4  ;;  %v2607_v56 = vadd.f32 %v2606_v18, %v2559_v50 }
 0x36b   : > { %v2733_v55 = vadd.f32 %v2732_v57, %v2731_v4  ;;  %v2655_v22 = vadd.f32 %v2654_v24, %v2607_v56 }
 0x36c   : > { %v2512_v52 = vpop.f32.mrf.mxu2 }
 0x36d   : > { %v2734_v8 = vrot.slane %v2733_v55, 2  ;;  %v2513_v36 = vadd.f32 %v2512_v52, %v5160_v34  ;;  %v2560_v23 = vpop.f32.mrf.mxu3  ;;  %v2689_v59 = vmul.f32 %v2655_v22, %v5182_v7 }
 0x36f   : > { %v2611_v42 = vpop.f32.mrf.mxu0  ;;  %v2735_v29 = vadd.f32 %v2734_v8, %v2733_v55  ;;  %v2561_v11 = vadd.f32 %v2560_v23, %v2513_v36 }
 0x370   : > { %v2659_v6 = vpop.f32.mrf.mxu1 }
 0x371   : > { %v2736_v47 = vrot.slane %v2735_v29, 1  ;;  %v2609_v40 = vadd.f32 %v2608_v28, %v2561_v11 }
 0x373   : > { %v2737_v45 = vadd.f32 %v2736_v47, %v2735_v29  ;;  %v2657_v15 = vadd.f32 %v2656_v9, %v2609_v40 }
 0x374   : > { %v2515_v30 = vpop.f32.mrf.mxu2 }
 0x375   : > { %v2765_v2 = vrot.slane %v2737_v45, 4  ;;  %v2691_v26 = vmul.f32 %v2657_v15, %v5184_v46  ;;  %v2516_v34 = vadd.f32 %v2515_v30, %v5163_v53  ;;  %v2563_v49 = vpop.f32.mrf.mxu3 }
 0x377   : > { %v2613_v12 = vpop.f32.mrf.mxu0  ;;  %v2768_v3 = vsel %vm1605_vm8, %v2727_v33, %v2765_v2  ;;  %v2748_v10 = vadd.f32 %v2691_v26, %v2689_v59  ;;  %v2564_v41 = vadd.f32 %v2563_v49, %v2516_v34 }
 0x378   : > { %v2661_v35 = vpop.f32.mrf.mxu1  ;;  %v2770_v37 = vrot.slane %v2768_v3, 7 }
 0x379   : > { %v2612_v61 = vadd.f32 %v2611_v42, %v2564_v41 }
 0x37a   : > { %v2771_v27 = vsel %vm372_vm4, %v2770_v37, %v5210_v31 }
 0x37b   : > { %v2772_v51 = vsel %vm384_vm3, %v2770_v37, %v2771_v27  ;;  %v2660_v58 = vadd.f32 %v2659_v6, %v2612_v61 }
 0x37c   : > { %v2517_v7 = vpop.f32.mrf.mxu2 }
 0x37d   : > { %v2693_v46 = vmul.f32 %v2660_v58, %v5190_v43  ;;  %v2518_v53 = vadd.f32 %v2517_v7, %v5171_v38  ;;  %v2565_v19 = vpop.f32.mrf.mxu3  ;;  %v2742_v43 = vrot.slane %v5089_v44, 4 }
 0x37f   : > { %v2616_v5 = vpop.f32.mrf.mxu0  ;;  %v2749_v18 = vadd.f32 %v2748_v10, %v2693_v46  ;;  %v2566_v13 = vadd.f32 %v2565_v19, %v2518_v53  ;;  %v2743_v9 = vadd.f32 %v2742_v43, %v5089_v44 }
 0x380   : > { %v2664_v0 = vpop.f32.mrf.mxu1 }
 0x381   : > { %v2614_v24 = vadd.f32 %v2613_v12, %v2566_v13 }
 0x383   : > { %v2662_v62 = vadd.f32 %v2661_v35, %v2614_v24 }
 0x384   : > { %v2520_v54 = vpop.f32.mrf.mxu2 }
 0x385   : > { %v2695_v32 = vmul.f32 %v2662_v62, %v5195_v60  ;;  %v2521_v31 = vadd.f32 %v2520_v54, %v5174_v20  ;;  %v2568_v21 = vpop.f32.mrf.mxu3  ;;  %v2744_v60 = vrot.slane %v2743_v9, 2 }
 0x387   : > { %v2618_v14 = vpop.f32.mrf.mxu0  ;;  %v2750_v39 = vadd.f32 %v2749_v18, %v2695_v32  ;;  %v2569_v1 = vadd.f32 %v2568_v21, %v2521_v31  ;;  %v2745_v25 = vadd.f32 %v2744_v60, %v2743_v9 }
 0x388   : > { %v2666_v48 = vpop.f32.mrf.mxu1 }
 0x389   : > { %v2617_v38 = vadd.f32 %v2616_v5, %v2569_v1  ;;  %v2746_v56 = vrot.slane %v2745_v25, 1 }
 0x38b   : > { %v2665_v28 = vadd.f32 %v2664_v0, %v2617_v38  ;;  %v2747_v42 = vadd.f32 %v2746_v56, %v2745_v25 }
 0x38c   : > { %v2522_v4 = vpop.f32.mrf.mxu2 }
 0x38d   : > { %v2697_v16 = vmul.f32 %v2665_v28, %v5200_v17  ;;  %v2570_v57 = vpop.f32.mrf.mxu3 }
 0x38f   : > { %v2751_v50 = vadd.f32 %v2750_v39, %v2697_v16 }
 0x391   : > { %v2752_v55 = vrot.slane %v2751_v50, 4 }
 0x393   : > { %v2753_v20 = vadd.f32 %v2752_v55, %v2751_v50 }
 0x395   : > { %v2754_v52 = vrot.slane %v2753_v20, 2 }
 0x397   : > { %v2755_v8 = vadd.f32 %v2754_v52, %v2753_v20 }
 0x399   : > { %v2756_v36 = vrot.slane %v2755_v8, 1 }
 0x39b   : > { %v2757_v23 = vadd.f32 %v2756_v36, %v2755_v8 }
 0x39d   : > { %v2766_v29 = vrot.slane %v2757_v23, 4 }
 0x39f   : > { %v2769_v11 = vsel %vm1605_vm8, %v2747_v42, %v2766_v29 }
 0x3a0   : > { %v2773_v6 = vrot.slane %v2769_v11, 6 }
 0x3a2   : > { %v2774_v44 = vsel %vm375_vm0, %v2773_v6, %v2772_v51 }
 0x3a3   : > { %v2775_v17 = vsel %vm387_vm2, %v2773_v6, %v2774_v44 }
 0x3a4   : > { %2777 = vst [vmem:[%s198_s27] sm:$0x77] %v2775_v17 }
 0x3a5 PF: > { %s13_s11 = sadd.s32 1, %s3402_s11   ;;  %s5627_s9 = smov %s3398_s10 }
 0x3a6   : > { %p10_p8 = scmp.ge.s32.totalorder %s13_s11, 4   ;;  %s5628_s10 = smov %s5630_s13 }
 0x3a8   :  { %12 = sbr.rel (!%p10_p8) target bundleno = 2 (0x2), region = 63 }
 0x3ad   :  { %2808 = vsyncpa [#allocation3], 1 }
 0x3ae   :  { %2810 = vsyncpa [#allocation3 + $0x1], 1 }

</bundles_post_ra>
